<compile_context>
chip_gen: v7x
topology: tpu7x:2x2x1
jax: 0.10.0
libtpu: 0.0.40
codegen_flags: <defaults>
</compile_context>

<pallas_src>
import functools

import jax
import jax.numpy as jnp
from jax import lax
from jax.experimental import pallas as pl
from jax.experimental.pallas import tpu as pltpu


def convnet_kernel(p_ref, wbig_ref, bc_ref, wpt_ref, sel_ref, bf_ref, out_ref):
    # p_ref   : (TB*64, 81)    im2col patches, column index = w*9 + k
    # wbig_ref: (81, 27)       block-diagonal conv weight, output column = c*9 + w
    # bc_ref  : (1, 3)         conv bias
    # wpt_ref : (3, TB*64, 10) FC weight, permuted (torch channel-major flatten) and
    #                          tiled per sample block: wpt[c, n*64+pq, j] = Wfc[j, c*64+pq]
    # sel_ref : (TB, TB*64)    constant 0/1 per-sample row-selection matrix
    # bf_ref  : (1, 10)        FC bias
    # out_ref : (TB, 10)       log-probabilities

    # Conv for all 3 channels x 9 pool offsets in ONE MXU matmul (K=81, N=27).
    acc = jnp.dot(p_ref[...], wbig_ref[...],
                  preferred_element_type=jnp.float32)               # (R, 27)

    # Fused max-pool (over 9 adjacent lanes) + bias + ReLU + FC channel-combine.
    # (conv bias is constant per channel, so adding it after the max is equivalent.)
    v = None
    for c in range(3):                                               # 3 static channels
        pooled_c = jnp.max(acc[:, 9 * c:9 * (c + 1)], axis=-1, keepdims=True)  # (R, 1)
        h_c = jnp.maximum(pooled_c + bc_ref[:, c:c + 1], 0.0)        # (R, 1)
        term = h_c * wpt_ref[c]                                      # (R, 10)
        v = term if v is None else v + term

    # Per-sample sum over the 64 pool positions as one (TB, R) @ (R, 10) MXU matmul
    # with a precomputed 0/1 selector (hoisted to the wrapper, fetched once).
    logits = jnp.dot(sel_ref[...], v,
                     preferred_element_type=jnp.float32) + bf_ref[...]          # (TB, 10)

    # Batched log_softmax + a single store for the whole tile.
    m = jnp.max(logits, axis=-1, keepdims=True)
    lse = jnp.log(jnp.sum(jnp.exp(logits - m), axis=-1, keepdims=True)) + m
    out_ref[...] = logits - lse


@functools.partial(jax.jit, static_argnames=("tb",))
def convnet_forward(x, w_conv, b_conv, w_fc, b_fc, *, tb=8):
    """x: (B, 1, 28, 28) float32 (NCHW). Returns (B, 10) log-probs."""
    B = x.shape[0]
    assert x.shape[1:] == (1, 28, 28)
    x2 = x[:, 0].astype(jnp.float32)                       # (B, 28, 28)

    # Pad the batch to a multiple of the batch tile (padded rows are sliced off).
    n_tiles = pl.cdiv(B, tb)
    Bp = n_tiles * tb
    if Bp != B:
        x2 = jnp.pad(x2, ((0, Bp - B), (0, 0), (0, 0)))

    # --- glue: lane-dense im2col, (Bp*64, 81), column index = w*9 + k ----------
    cols = []
    for a in range(3):                 # pool-window row offset
        for b in range(3):             # pool-window col offset
            for kh in range(3):        # conv tap row
                for kw in range(3):    # conv tap col
                    sl = x2[:, a + kh:a + kh + 24:3, b + kw:b + kw + 24:3]  # (Bp,8,8)
                    cols.append(sl.reshape(Bp, 64))
    patches = jnp.stack(cols, axis=-1).reshape(Bp * 64, 81)

    # --- glue: parameter repacking ---------------------------------------------
    # Wbig[w*9+k, c*9+w'] = Wconv[c,0,kh,kw] * (w == w')
    wc_t = w_conv.reshape(3, 9).T.astype(jnp.float32)                        # (9,3) [k,c]
    eye9 = jnp.eye(9, dtype=jnp.float32)
    wbig = (wc_t[None, :, :, None] * eye9[:, None, None, :]).reshape(81, 27)
    bc = b_conv.reshape(1, 3).astype(jnp.float32)
    # wp[c, pq, j] = Wfc[j, c*64 + pq]  (absorbs torch's channel-major flatten)
    wp = w_fc.reshape(10, 3, 64).transpose(1, 2, 0).astype(jnp.float32)      # (3,64,10)
    wpt = jnp.tile(wp, (1, tb, 1))                                           # (3,tb*64,10)
    bf = b_fc.reshape(1, 10).astype(jnp.float32)

    # Constant per-sample 0/1 selection matrix (hoisted out of the kernel body).
    R = tb * 64
    r_idx = jnp.arange(R, dtype=jnp.int32)[None, :]
    n_idx = jnp.arange(tb, dtype=jnp.int32)[:, None]
    sel = ((r_idx >= n_idx * 64) & (r_idx < (n_idx + 1) * 64)).astype(jnp.float32)

    out = pl.pallas_call(
        convnet_kernel,
        out_shape=jax.ShapeDtypeStruct((Bp, 10), jnp.float32),
        grid=(n_tiles,),
        in_specs=[
            pl.BlockSpec((R, 81), lambda i: (i, 0)),          # patches (batch-tiled)
            pl.BlockSpec((81, 27), lambda i: (0, 0)),         # conv weight (resident)
            pl.BlockSpec((1, 3), lambda i: (0, 0)),           # conv bias
            pl.BlockSpec((3, R, 10), lambda i: (0, 0, 0)),    # FC weight (tiled, resident)
            pl.BlockSpec((tb, R), lambda i: (0, 0)),          # selection matrix (resident)
            pl.BlockSpec((1, 10), lambda i: (0, 0)),          # FC bias
        ],
        out_specs=pl.BlockSpec((tb, 10), lambda i: (i, 0)),
        compiler_params=pltpu.CompilerParams(
            dimension_semantics=("parallel",),     # v7x: batch tiles across both TCs
            vmem_limit_bytes=32 * 1024 * 1024,     # safe on all gens incl. v7x 64 MiB
        ),
    )(patches, wbig, bc, wpt, sel, bf)
    return out[:B]


def convnet_reference(x, w_conv, b_conv, w_fc, b_fc):
    """Pure-JAX reference mirroring the PyTorch forward pass."""
    conv = lax.conv_general_dilated(
        x, w_conv, window_strides=(1, 1), padding="VALID",
        dimension_numbers=("NCHW", "OIHW", "NCHW"),
    ) + b_conv[None, :, None, None]
    pooled = lax.reduce_window(
        conv, -jnp.inf, lax.max,
        window_dimensions=(1, 1, 3, 3), window_strides=(1, 1, 3, 3),
        padding="VALID",
    )
    feat = jnp.maximum(pooled, 0.0).reshape(x.shape[0], 192)
    logits = feat @ w_fc.T + b_fc
    return jax.nn.log_softmax(logits, axis=1)


if __name__ == "__main__":
    key = jax.random.PRNGKey(0)
    k1, k2, k3, k4, k5 = jax.random.split(key, 5)

    # Deterministic synthetic parameters (shapes from ConvNet.__init__).
    w_conv = 0.1 * jax.random.normal(k1, (3, 1, 3, 3), dtype=jnp.float32)
    b_conv = 0.1 * jax.random.normal(k2, (3,), dtype=jnp.float32)
    w_fc = 0.1 * jax.random.normal(k3, (10, 192), dtype=jnp.float32)
    b_fc = 0.1 * jax.random.normal(k4, (10,), dtype=jnp.float32)

    # forward() implies 28x28 inputs: conv -> 26x26, pool(3) -> 8x8, 3*8*8 = 192.
    x = jax.random.normal(k5, (2, 1, 28, 28), dtype=jnp.float32)

    out = jax.block_until_ready(convnet_forward(x, w_conv, b_conv, w_fc, b_fc))
    ref = jax.block_until_ready(convnet_reference(x, w_conv, b_conv, w_fc, b_fc))

    if out.shape != (2, 10):
        raise RuntimeError(f"bad output shape {out.shape}")
    if not jnp.allclose(out, ref, atol=1e-4, rtol=1e-4):
        raise RuntimeError("Pallas kernel does not match reference")
    print("KERNEL_OK")
</pallas_src>

<mosaic_0001>
module attributes {stable_mosaic.version = 11 : i64} {
  func.func @convnet_kernel(%arg0: i32, %arg1: memref<512x81xf32, #tpu.memory_space<vmem>>, %arg2: memref<81x27xf32, #tpu.memory_space<vmem>>, %arg3: memref<1x3xf32, #tpu.memory_space<vmem>>, %arg4: memref<3x512x10xf32, #tpu.memory_space<vmem>>, %arg5: memref<8x512xf32, #tpu.memory_space<vmem>>, %arg6: memref<1x10xf32, #tpu.memory_space<vmem>>, %arg7: memref<8x10xf32, #tpu.memory_space<vmem>>) attributes {dimension_semantics = [#tpu.dimension_semantics<parallel>], iteration_bounds = array<i64: 1>, scalar_prefetch = 0 : i64, scratch_operands = 0 : i64, tpu.core_type = #tpu.core_type<tc>, window_params = [{transform_indices = @transform_0, window_bounds = array<i64: 512, 81>}, {pipeline_mode = #tpu.pipeline_mode<synchronous>, transform_indices = @transform_1, window_bounds = array<i64: 81, 27>}, {pipeline_mode = #tpu.pipeline_mode<synchronous>, transform_indices = @transform_2, window_bounds = array<i64: 1, 3>}, {pipeline_mode = #tpu.pipeline_mode<synchronous>, transform_indices = @transform_3, window_bounds = array<i64: 3, 512, 10>}, {pipeline_mode = #tpu.pipeline_mode<synchronous>, transform_indices = @transform_4, window_bounds = array<i64: 8, 512>}, {pipeline_mode = #tpu.pipeline_mode<synchronous>, transform_indices = @transform_5, window_bounds = array<i64: 1, 10>}, {transform_indices = @transform_6, window_bounds = array<i64: 8, 10>}]} {
    %c0 = arith.constant 0 : index
    %c0_0 = arith.constant 0 : index
    %0 = vector.load %arg1[%c0, %c0_0] : memref<512x81xf32, #tpu.memory_space<vmem>>, vector<512x81xf32>
    %c0_1 = arith.constant 0 : index
    %c0_2 = arith.constant 0 : index
    %1 = vector.load %arg2[%c0_1, %c0_2] : memref<81x27xf32, #tpu.memory_space<vmem>>, vector<81x27xf32>
    %cst = arith.constant dense<0.000000e+00> : vector<512x27xf32>
    %2 = tpu.matmul %0, %1, %cst {dimension_numbers = #tpu.dot_dimension_numbers<[1], [0], [0], [1], [0, 0, 1, 1], [], []>} : vector<512x81xf32>, vector<81x27xf32>, vector<512x27xf32> -> vector<512x27xf32>
    %3 = vector.extract_strided_slice %2 {offsets = [0, 0], sizes = [512, 9], strides = [1, 1]} : vector<512x27xf32> to vector<512x9xf32>
    %cst_3 = arith.constant dense<0xFF800000> : vector<512xf32>
    %4 = vector.multi_reduction <maximumf>, %3, %cst_3 [1] : vector<512x9xf32> to vector<512xf32>
    %5 = vector.shape_cast %4 : vector<512xf32> to vector<512x1xf32>
    %c0_4 = arith.constant 0 : index
    %c0_5 = arith.constant 0 : index
    %6 = vector.load %arg3[%c0_4, %c0_5] : memref<1x3xf32, #tpu.memory_space<vmem>>, vector<1x1xf32>
    %7 = vector.broadcast %6 : vector<1x1xf32> to vector<512x1xf32>
    %8 = arith.addf %5, %7 : vector<512x1xf32>
    %cst_6 = arith.constant 0.000000e+00 : f32
    %9 = vector.broadcast %cst_6 : f32 to vector<512x1xf32>
    %10 = arith.maximumf %8, %9 : vector<512x1xf32>
    %c0_7 = arith.constant 0 : index
    %c0_8 = arith.constant 0 : index
    %c0_9 = arith.constant 0 : index
    %11 = vector.load %arg4[%c0_7, %c0_8, %c0_9] : memref<3x512x10xf32, #tpu.memory_space<vmem>>, vector<1x512x10xf32>
    %12 = vector.shape_cast %11 : vector<1x512x10xf32> to vector<512x10xf32>
    %13 = vector.broadcast %10 : vector<512x1xf32> to vector<512x10xf32>
    %14 = arith.mulf %13, %12 : vector<512x10xf32>
    %15 = vector.extract_strided_slice %2 {offsets = [0, 9], sizes = [512, 9], strides = [1, 1]} : vector<512x27xf32> to vector<512x9xf32>
    %cst_10 = arith.constant dense<0xFF800000> : vector<512xf32>
    %16 = vector.multi_reduction <maximumf>, %15, %cst_10 [1] : vector<512x9xf32> to vector<512xf32>
    %17 = vector.shape_cast %16 : vector<512xf32> to vector<512x1xf32>
    %c0_11 = arith.constant 0 : index
    %c1 = arith.constant 1 : index
    %18 = vector.load %arg3[%c0_11, %c1] : memref<1x3xf32, #tpu.memory_space<vmem>>, vector<1x1xf32>
    %19 = vector.broadcast %18 : vector<1x1xf32> to vector<512x1xf32>
    %20 = arith.addf %17, %19 : vector<512x1xf32>
    %cst_12 = arith.constant 0.000000e+00 : f32
    %21 = vector.broadcast %cst_12 : f32 to vector<512x1xf32>
    %22 = arith.maximumf %20, %21 : vector<512x1xf32>
    %c1_13 = arith.constant 1 : index
    %c0_14 = arith.constant 0 : index
    %c0_15 = arith.constant 0 : index
    %23 = vector.load %arg4[%c1_13, %c0_14, %c0_15] : memref<3x512x10xf32, #tpu.memory_space<vmem>>, vector<1x512x10xf32>
    %24 = vector.shape_cast %23 : vector<1x512x10xf32> to vector<512x10xf32>
    %25 = vector.broadcast %22 : vector<512x1xf32> to vector<512x10xf32>
    %26 = arith.mulf %25, %24 : vector<512x10xf32>
    %27 = arith.addf %14, %26 : vector<512x10xf32>
    %28 = vector.extract_strided_slice %2 {offsets = [0, 18], sizes = [512, 9], strides = [1, 1]} : vector<512x27xf32> to vector<512x9xf32>
    %cst_16 = arith.constant dense<0xFF800000> : vector<512xf32>
    %29 = vector.multi_reduction <maximumf>, %28, %cst_16 [1] : vector<512x9xf32> to vector<512xf32>
    %30 = vector.shape_cast %29 : vector<512xf32> to vector<512x1xf32>
    %c0_17 = arith.constant 0 : index
    %c2 = arith.constant 2 : index
    %31 = vector.load %arg3[%c0_17, %c2] : memref<1x3xf32, #tpu.memory_space<vmem>>, vector<1x1xf32>
    %32 = vector.broadcast %31 : vector<1x1xf32> to vector<512x1xf32>
    %33 = arith.addf %30, %32 : vector<512x1xf32>
    %cst_18 = arith.constant 0.000000e+00 : f32
    %34 = vector.broadcast %cst_18 : f32 to vector<512x1xf32>
    %35 = arith.maximumf %33, %34 : vector<512x1xf32>
    %c2_19 = arith.constant 2 : index
    %c0_20 = arith.constant 0 : index
    %c0_21 = arith.constant 0 : index
    %36 = vector.load %arg4[%c2_19, %c0_20, %c0_21] : memref<3x512x10xf32, #tpu.memory_space<vmem>>, vector<1x512x10xf32>
    %37 = vector.shape_cast %36 : vector<1x512x10xf32> to vector<512x10xf32>
    %38 = vector.broadcast %35 : vector<512x1xf32> to vector<512x10xf32>
    %39 = arith.mulf %38, %37 : vector<512x10xf32>
    %40 = arith.addf %27, %39 : vector<512x10xf32>
    %c0_22 = arith.constant 0 : index
    %c0_23 = arith.constant 0 : index
    %41 = vector.load %arg5[%c0_22, %c0_23] : memref<8x512xf32, #tpu.memory_space<vmem>>, vector<8x512xf32>
    %cst_24 = arith.constant dense<0.000000e+00> : vector<8x10xf32>
    %42 = tpu.matmul %41, %40, %cst_24 {dimension_numbers = #tpu.dot_dimension_numbers<[1], [0], [0], [1], [0, 0, 1, 1], [], []>} : vector<8x512xf32>, vector<512x10xf32>, vector<8x10xf32> -> vector<8x10xf32>
    %c0_25 = arith.constant 0 : index
    %c0_26 = arith.constant 0 : index
    %43 = vector.load %arg6[%c0_25, %c0_26] : memref<1x10xf32, #tpu.memory_space<vmem>>, vector<1x10xf32>
    %44 = vector.broadcast %43 : vector<1x10xf32> to vector<8x10xf32>
    %45 = arith.addf %42, %44 : vector<8x10xf32>
    %cst_27 = arith.constant dense<0xFF800000> : vector<8xf32>
    %46 = vector.multi_reduction <maximumf>, %45, %cst_27 [1] : vector<8x10xf32> to vector<8xf32>
    %47 = vector.shape_cast %46 : vector<8xf32> to vector<8x1xf32>
    %48 = vector.broadcast %47 : vector<8x1xf32> to vector<8x10xf32>
    %49 = arith.subf %45, %48 : vector<8x10xf32>
    %50 = math.exp %49 : vector<8x10xf32>
    %cst_28 = arith.constant dense<0.000000e+00> : vector<8xf32>
    %51 = vector.multi_reduction <add>, %50, %cst_28 [1] : vector<8x10xf32> to vector<8xf32>
    %52 = vector.shape_cast %51 : vector<8xf32> to vector<8x1xf32>
    %53 = math.log %52 : vector<8x1xf32>
    %54 = arith.addf %53, %47 : vector<8x1xf32>
    %55 = vector.broadcast %54 : vector<8x1xf32> to vector<8x10xf32>
    %56 = arith.subf %45, %55 : vector<8x10xf32>
    %c0_29 = arith.constant 0 : index
    %c0_30 = arith.constant 0 : index
    %57 = vector.load %arg7[%c0_29, %c0_30] : memref<8x10xf32, #tpu.memory_space<vmem>>, vector<8x10xf32>
    tpu.vector_store %arg7[%c0_29, %c0_30], %56 {strides = array<i32>} : memref<8x10xf32, #tpu.memory_space<vmem>>, vector<8x10xf32>,
    return
  }
  func.func @transform_0(%arg0: i32) -> (i32, i32) {
    %c0_i32 = arith.constant 0 : i32
    %c0_i32_0 = arith.constant 0 : i32
    return %arg0, %c0_i32 : i32, i32
  }
  func.func @transform_1(%arg0: i32) -> (i32, i32) {
    %c0_i32 = arith.constant 0 : i32
    %c0_i32_0 = arith.constant 0 : i32
    %c0_i32_1 = arith.constant 0 : i32
    return %c0_i32, %c0_i32_0 : i32, i32
  }
  func.func @transform_2(%arg0: i32) -> (i32, i32) {
    %c0_i32 = arith.constant 0 : i32
    %c0_i32_0 = arith.constant 0 : i32
    %c0_i32_1 = arith.constant 0 : i32
    return %c0_i32, %c0_i32_0 : i32, i32
  }
  func.func @transform_3(%arg0: i32) -> (i32, i32, i32) {
    %c0_i32 = arith.constant 0 : i32
    %c0_i32_0 = arith.constant 0 : i32
    %c0_i32_1 = arith.constant 0 : i32
    %c0_i32_2 = arith.constant 0 : i32
    return %c0_i32, %c0_i32_0, %c0_i32_1 : i32, i32, i32
  }
  func.func @transform_4(%arg0: i32) -> (i32, i32) {
    %c0_i32 = arith.constant 0 : i32
    %c0_i32_0 = arith.constant 0 : i32
    %c0_i32_1 = arith.constant 0 : i32
    return %c0_i32, %c0_i32_0 : i32, i32
  }
  func.func @transform_5(%arg0: i32) -> (i32, i32) {
    %c0_i32 = arith.constant 0 : i32
    %c0_i32_0 = arith.constant 0 : i32
    %c0_i32_1 = arith.constant 0 : i32
    return %c0_i32, %c0_i32_0 : i32, i32
  }
  func.func @transform_6(%arg0: i32) -> (i32, i32) {
    %c0_i32 = arith.constant 0 : i32
    %c0_i32_0 = arith.constant 0 : i32
    return %arg0, %c0_i32 : i32, i32
  }
}

</mosaic_0001>

<bundles_post_ra>
// kernel: convnet_forward.1
= control target key start
LH: loop header
LB: loop body
LE: loop exit
PB: predicated region body
PF: predicated region fallthrough
CT: control target
= control target key end

     0   :  { %vm98_vm0 = vcmask 662528   ;;  %vm291_vm1 = vcmask 1040384   ;;  %vm680_vm2 = vcmask 72704   ;;  %vm1456_vm3 = vcmask 146504   ;;  %s6424_s1 = inlined_call_operand.vmem [shape: f32[81,27], index: 1, kind: input, shape index: {}]   ;;  %s6425_s0 = inlined_call_operand.vmem [shape: f32[512,81], index: 0, kind: input, shape index: {}]   ;;  %s6426_s2 = inlined_call_operand.vmem [shape: f32[1,3], index: 2, kind: input, shape index: {}]   ;;  %s6427_s3 = inlined_call_operand.vmem [shape: f32[3,512,10], index: 3, kind: input, shape index: {}]   ;;  %s6428_s4 = inlined_call_operand.vmem [shape: f32[8,512], index: 4, kind: input, shape index: {}]   ;;  %s6429_s5 = inlined_call_operand.vmem [shape: f32[1,10], index: 5, kind: input, shape index: {}]   ;;  %s6430_s6 = inlined_call_operand.vmem [shape: f32[8,10], index: 6, kind: output, shape index: {}]  }
   0x1   :  { %v87_v0 = vld [vmem:[%s6424_s1] sm:$0xff]  ;;  %v88_v1 = vld [vmem:[%s6424_s1 + $0x8] sm:$0xff]  ;;  %v89_v2 = vld [vmem:[%s6424_s1 + $0x10] sm:$0xff]  ;;  %vm2290_vm4 = vcmask 220304   ;;  %vm3275_vm5 = vcmask 80896  }
   0x2   :  { %v3752_v3 = vpack.c.bf16 %v88_v1, %v87_v0  ;;  %v90_v4 = vld [vmem:[%s6424_s1 + $0x18] sm:$0xff]  ;;  %v91_v6 = vld [vmem:[%s6424_s1 + $0x20] sm:$0xff]  ;;  %v92_v7 = vld [vmem:[%s6424_s1 + $0x28] sm:$0xff] }
   0x3   :  { %v3756_v5 = vpack.c.bf16 %v90_v4, %v89_v2  ;;  %v23_v8 = vld [vmem:[%s6425_s0] sm:$0xff]  ;;  %v65_v9 = vld [vmem:[%s6425_s0 + $0x150] sm:$0xff]  ;;  %v3760_v10 = vpack.c.bf16 %v92_v7, %v91_v6  ;;  %v94_v12 = vld [vmem:[%s6424_s1 + $0x38] sm:$0xff] }
   0x4   :  { %3753 = vmatprep.subr.bf16.mxu0 %v3752_v3  ;;  %3836 = vmatprep.subr.bf16.mxu1 %v3752_v3  ;;  %v93_v11 = vld [vmem:[%s6424_s1 + $0x30] sm:$0xff]  ;;  %v95_v14 = vld [vmem:[%s6424_s1 + $0x40] sm:$0xff]  ;;  %v96_v15 = vld [vmem:[%s6424_s1 + $0x48] sm:$0xff] }
   0x5   :  { %3755 = vmatpush3.bf16.msra.mxu0 %v3752_v3  ;;  %3842 = vmatpush3.bf16.msra.mxu1 %v3752_v3  ;;  %v3764_v13 = vpack.c.bf16 %v94_v12, %v93_v11  ;;  %v3768_v16 = vpack.c.bf16 %v96_v15, %v95_v14  ;;  %v97_v17 = vld [vmem:[%s6424_s1 + $0x50] sm:$0x1]  ;;  %v24_v18 = vld [vmem:[%s6425_s0 + $0x8] sm:$0xff]  ;;  %v66_v19 = vld [vmem:[%s6425_s0 + $0x158] sm:$0xff] }
   0x6   :  { %3757 = vmatprep.subr.bf16.mxu0 %v3756_v5  ;;  %3837 = vmatprep.subr.bf16.mxu1 %v3756_v5  ;;  %v25_v20 = vld [vmem:[%s6425_s0 + $0x10] sm:$0xff]  ;;  %v67_v21 = vld [vmem:[%s6425_s0 + $0x160] sm:$0xff]  ;;  %v26_v22 = vld [vmem:[%s6425_s0 + $0x18] sm:$0xff] }
   0x7   :  { %3656 = vmatprep.mubr.msk.f32.mxu0 %vm98_vm0, %v23_v8  ;;  %3719 = vmatprep.mubr.msk.f32.mxu1 %vm98_vm0, %v65_v9  ;;  %v68_v23 = vld [vmem:[%s6425_s0 + $0x168] sm:$0xff]  ;;  %v27_v24 = vld [vmem:[%s6425_s0 + $0x20] sm:$0xff]  ;;  %v69_v25 = vld [vmem:[%s6425_s0 + $0x170] sm:$0xff] }
   0x8   :  { %v28_v26 = vld [vmem:[%s6425_s0 + $0x28] sm:$0xff]  ;;  %v70_v27 = vld [vmem:[%s6425_s0 + $0x178] sm:$0xff]  ;;  %v29_v28 = vld [vmem:[%s6425_s0 + $0x30] sm:$0xff] }
   0x9   :  { %3759 = vmatpush3.bf16.msra.mxu0 %v3756_v5  ;;  %3843 = vmatpush3.bf16.msra.mxu1 %v3756_v5  ;;  %v71_v29 = vld [vmem:[%s6425_s0 + $0x180] sm:$0xff]  ;;  %v30_v30 = vld [vmem:[%s6425_s0 + $0x38] sm:$0xff]  ;;  %v72_v31 = vld [vmem:[%s6425_s0 + $0x188] sm:$0xff] }
   0xa   :  { %3761 = vmatprep.subr.bf16.mxu0 %v3760_v10  ;;  %3838 = vmatprep.subr.bf16.mxu1 %v3760_v10  ;;  %v31_v32 = vld [vmem:[%s6425_s0 + $0x40] sm:$0xff]  ;;  %v73_v33 = vld [vmem:[%s6425_s0 + $0x190] sm:$0xff]  ;;  %v32_v34 = vld [vmem:[%s6425_s0 + $0x48] sm:$0xff] }
   0xb   :  { %v74_v35 = vld [vmem:[%s6425_s0 + $0x198] sm:$0xff]  ;;  %v33_v36 = vld [vmem:[%s6425_s0 + $0x50] sm:$0xff]  ;;  %v75_v37 = vld [vmem:[%s6425_s0 + $0x1a0] sm:$0xff] }
   0xc   :  { %v34_v38 = vld [vmem:[%s6425_s0 + $0x58] sm:$0xff]  ;;  %v76_v39 = vld [vmem:[%s6425_s0 + $0x1a8] sm:$0xff]  ;;  %v35_v40 = vld [vmem:[%s6425_s0 + $0x60] sm:$0xff] }
   0xd   :  { %3763 = vmatpush3.bf16.msra.mxu0 %v3760_v10  ;;  %3844 = vmatpush3.bf16.msra.mxu1 %v3760_v10  ;;  %v77_v41 = vld [vmem:[%s6425_s0 + $0x1b0] sm:$0xff]  ;;  %v36_v42 = vld [vmem:[%s6425_s0 + $0x68] sm:$0xff]  ;;  %v78_v43 = vld [vmem:[%s6425_s0 + $0x1b8] sm:$0xff] }
   0xe   :  { %3765 = vmatprep.subr.bf16.mxu0 %v3764_v13  ;;  %3839 = vmatprep.subr.bf16.mxu1 %v3764_v13  ;;  %v37_v44 = vld [vmem:[%s6425_s0 + $0x70] sm:$0xff]  ;;  %v79_v45 = vld [vmem:[%s6425_s0 + $0x1c0] sm:$0xff]  ;;  %v38_v46 = vld [vmem:[%s6425_s0 + $0x78] sm:$0xff] }
   0xf   :  { %v80_v47 = vld [vmem:[%s6425_s0 + $0x1c8] sm:$0xff]  ;;  %v39_v48 = vld [vmem:[%s6425_s0 + $0x80] sm:$0xff]  ;;  %v81_v49 = vld [vmem:[%s6425_s0 + $0x1d0] sm:$0xff] }
  0x10   :  { %v40_v50 = vld [vmem:[%s6425_s0 + $0x88] sm:$0xff]  ;;  %v82_v51 = vld [vmem:[%s6425_s0 + $0x1d8] sm:$0xff]  ;;  %v41_v52 = vld [vmem:[%s6425_s0 + $0x90] sm:$0xff] }
  0x11   :  { %3767 = vmatpush3.bf16.msra.mxu0 %v3764_v13  ;;  %3845 = vmatpush3.bf16.msra.mxu1 %v3764_v13  ;;  %v83_v53 = vld [vmem:[%s6425_s0 + $0x1e0] sm:$0xff]  ;;  %v42_v54 = vld [vmem:[%s6425_s0 + $0x98] sm:$0xff]  ;;  %v84_v55 = vld [vmem:[%s6425_s0 + $0x1e8] sm:$0xff] }
  0x12   :  { %3769 = vmatprep.subr.bf16.mxu0 %v3768_v16  ;;  %3840 = vmatprep.subr.bf16.mxu1 %v3768_v16  ;;  %v43_v56 = vld [vmem:[%s6425_s0 + $0xa0] sm:$0xff]  ;;  %v85_v57 = vld [vmem:[%s6425_s0 + $0x1f0] sm:$0xff]  ;;  %v44_v58 = vld [vmem:[%s6425_s0 + $0xa8] sm:$0xff] }
  0x13   :  { %v86_v59 = vld [vmem:[%s6425_s0 + $0x1f8] sm:$0xff]  ;;  %v45_v60 = vld [vmem:[%s6425_s0 + $0xb0] sm:$0xff]  ;;  %v47_v62 = vld [vmem:[%s6425_s0 + $0xc0] sm:$0xff] }
  0x14   :  { %v46_v61 = vld [vmem:[%s6425_s0 + $0xb8] sm:$0xff]  ;;  %v48_v63 = vld [vmem:[%s6425_s0 + $0xc8] sm:$0xff]  ;;  %v49_v0 = vld [vmem:[%s6425_s0 + $0xd0] sm:$0xff] }
  0x15   :  { %3771 = vmatpush3.bf16.msra.mxu0 %v3768_v16  ;;  %3846 = vmatpush3.bf16.msra.mxu1 %v3768_v16  ;;  %v50_v1 = vld [vmem:[%s6425_s0 + $0xd8] sm:$0xff]  ;;  %v51_v2 = vld [vmem:[%s6425_s0 + $0xe0] sm:$0xff]  ;;  %v52_v3 = vld [vmem:[%s6425_s0 + $0xe8] sm:$0xff] }
  0x16   :  { %3654 = vmatprep.subr.msk.mxu0 %vm291_vm1, %v97_v17  ;;  %3841 = vmatprep.subr.msk.mxu1 %vm291_vm1, %v97_v17  ;;  %v53_v4 = vld [vmem:[%s6425_s0 + $0xf0] sm:$0xff]  ;;  %v54_v5 = vld [vmem:[%s6425_s0 + $0xf8] sm:$0xff]  ;;  %v55_v6 = vld [vmem:[%s6425_s0 + $0x100] sm:$0xff] }
  0x17   :  { %v56_v7 = vld [vmem:[%s6425_s0 + $0x108] sm:$0xff]  ;;  %v57_v8 = vld [vmem:[%s6425_s0 + $0x110] sm:$0xff]  ;;  %v58_v9 = vld [vmem:[%s6425_s0 + $0x118] sm:$0xff] }
  0x18   :  { %v59_v10 = vld [vmem:[%s6425_s0 + $0x120] sm:$0xff]  ;;  %v60_v11 = vld [vmem:[%s6425_s0 + $0x128] sm:$0xff]  ;;  %v61_v12 = vld [vmem:[%s6425_s0 + $0x130] sm:$0xff] }
  0x19   :  { %3655 = vmatpush3.msk.msra.mxu0 %vm291_vm1, %v97_v17  ;;  %3847 = vmatpush3.msk.msra.mxu1 %vm291_vm1, %v97_v17  ;;  %v62_v13 = vld [vmem:[%s6425_s0 + $0x138] sm:$0xff]  ;;  %v63_v14 = vld [vmem:[%s6425_s0 + $0x140] sm:$0xff]  ;;  %v64_v15 = vld [vmem:[%s6425_s0 + $0x148] sm:$0xff] }
  0x1a   :  { %3657 = vmatmul.mubr.msk.f32.vlgmr.msra.gmra.mrb[0].mxu0 %vm98_vm0, %v24_v18  ;;  %3720 = vmatmul.mubr.msk.f32.vlgmr.msra.gmra.mrb[0].mxu1 %vm98_vm0, %v66_v19 }
  0x1b   :  { %3659 = vmatprep.mubr.msk.f32.mxu0 %vm98_vm0, %v25_v20  ;;  %3722 = vmatprep.mubr.msk.f32.mxu1 %vm98_vm0, %v67_v21 }
  0x1e   :  { %3660 = vmatmul.mubr.msk.f32.gmra.mrb[2].mxu0 %vm98_vm0, %v26_v22  ;;  %3723 = vmatmul.mubr.msk.f32.gmra.mrb[2].mxu1 %vm98_vm0, %v68_v23 }
  0x1f   :  { %3662 = vmatprep.mubr.msk.f32.mxu0 %vm98_vm0, %v27_v24  ;;  %3725 = vmatprep.mubr.msk.f32.mxu1 %vm98_vm0, %v69_v25 }
  0x22   :  { %3663 = vmatmul.mubr.msk.f32.gmra.mrb[4].mxu0 %vm98_vm0, %v28_v26  ;;  %3726 = vmatmul.mubr.msk.f32.gmra.mrb[4].mxu1 %vm98_vm0, %v70_v27 }
  0x23   :  { %3665 = vmatprep.mubr.msk.f32.mxu0 %vm98_vm0, %v29_v28  ;;  %3728 = vmatprep.mubr.msk.f32.mxu1 %vm98_vm0, %v71_v29 }
  0x26   :  { %3666 = vmatmul.mubr.msk.f32.gmra.mrb[6].mxu0 %vm98_vm0, %v30_v30  ;;  %3729 = vmatmul.mubr.msk.f32.gmra.mrb[6].mxu1 %vm98_vm0, %v72_v31 }
  0x27   :  { %3668 = vmatprep.mubr.msk.f32.mxu0 %vm98_vm0, %v31_v32  ;;  %3731 = vmatprep.mubr.msk.f32.mxu1 %vm98_vm0, %v73_v33 }
  0x2a   :  { %3669 = vmatmul.mubr.msk.f32.gmra.mrb[8].mxu0 %vm98_vm0, %v32_v34  ;;  %3732 = vmatmul.mubr.msk.f32.gmra.mrb[8].mxu1 %vm98_vm0, %v74_v35 }
  0x2b   :  { %3671 = vmatprep.mubr.msk.f32.mxu0 %vm98_vm0, %v33_v36  ;;  %3734 = vmatprep.mubr.msk.f32.mxu1 %vm98_vm0, %v75_v37 }
  0x2e   :  { %3672 = vmatmul.mubr.msk.f32.gmra.mrb[10].mxu0 %vm98_vm0, %v34_v38  ;;  %3735 = vmatmul.mubr.msk.f32.gmra.mrb[10].mxu1 %vm98_vm0, %v76_v39 }
  0x2f   :  { %3674 = vmatprep.mubr.msk.f32.mxu0 %vm98_vm0, %v35_v40  ;;  %3737 = vmatprep.mubr.msk.f32.mxu1 %vm98_vm0, %v77_v41 }
  0x32   :  { %3675 = vmatmul.mubr.msk.f32.gmra.mrb[12].mxu0 %vm98_vm0, %v36_v42  ;;  %3738 = vmatmul.mubr.msk.f32.gmra.mrb[12].mxu1 %vm98_vm0, %v78_v43 }
  0x33   :  { %3677 = vmatprep.mubr.msk.f32.mxu0 %vm98_vm0, %v37_v44  ;;  %3740 = vmatprep.mubr.msk.f32.mxu1 %vm98_vm0, %v79_v45 }
  0x36   :  { %3678 = vmatmul.mubr.msk.f32.gmra.mrb[14].mxu0 %vm98_vm0, %v38_v46  ;;  %3741 = vmatmul.mubr.msk.f32.gmra.mrb[14].mxu1 %vm98_vm0, %v80_v47 }
  0x37   :  { %3680 = vmatprep.mubr.msk.f32.mxu0 %vm98_vm0, %v39_v48  ;;  %3743 = vmatprep.mubr.msk.f32.mxu1 %vm98_vm0, %v81_v49 }
  0x3a   :  { %3681 = vmatmul.mubr.msk.f32.gmra.mrb[16].mxu0 %vm98_vm0, %v40_v50  ;;  %3744 = vmatmul.mubr.msk.f32.gmra.mrb[16].mxu1 %vm98_vm0, %v82_v51 }
  0x3b   :  { %3683 = vmatprep.mubr.msk.f32.mxu0 %vm98_vm0, %v41_v52  ;;  %3746 = vmatprep.mubr.msk.f32.mxu1 %vm98_vm0, %v83_v53 }
  0x3e   :  { %3684 = vmatmul.mubr.msk.f32.gmra.mrb[18].mxu0 %vm98_vm0, %v42_v54  ;;  %3747 = vmatmul.mubr.msk.f32.gmra.mrb[18].mxu1 %vm98_vm0, %v84_v55 }
  0x3f   :  { %3686 = vmatprep.mubr.msk.f32.mxu0 %vm98_vm0, %v43_v56  ;;  %3749 = vmatprep.mubr.msk.f32.mxu1 %vm98_vm0, %v85_v57 }
  0x42   :  { %3687 = vmatmul.mubr.msk.f32.gmra.mrb[20].mxu0 %vm98_vm0, %v44_v58  ;;  %3750 = vmatmul.mubr.msk.f32.gmra.mrb[20].mxu1 %vm98_vm0, %v86_v59 }
  0x43   :  { %3689 = vmatprep.mubr.msk.f32.mxu0 %vm98_vm0, %v45_v60 }
  0x46   :  { %3690 = vmatmul.mubr.msk.f32.gmra.mrb[22].mxu0 %vm98_vm0, %v46_v61 }
  0x47   :  { %3692 = vmatprep.mubr.msk.f32.mxu0 %vm98_vm0, %v47_v62 }
  0x4a   :  { %3693 = vmatmul.mubr.msk.f32.gmra.mrb[24].mxu0 %vm98_vm0, %v48_v63 }
  0x4b   :  { %3695 = vmatprep.mubr.msk.f32.mxu0 %vm98_vm0, %v49_v0 }
  0x4e   :  { %3696 = vmatmul.mubr.msk.f32.gmra.mrb[26].mxu0 %vm98_vm0, %v50_v1 }
  0x4f   :  { %3698 = vmatprep.mubr.msk.f32.mxu0 %vm98_vm0, %v51_v2 }
  0x52   :  { %3699 = vmatmul.mubr.msk.f32.gmra.mrb[28].mxu0 %vm98_vm0, %v52_v3 }
  0x53   :  { %3701 = vmatprep.mubr.msk.f32.mxu0 %vm98_vm0, %v53_v4 }
  0x56   :  { %3702 = vmatmul.mubr.msk.f32.gmra.mrb[30].mxu0 %vm98_vm0, %v54_v5 }
  0x57   :  { %3704 = vmatprep.mubr.msk.f32.mxu0 %vm98_vm0, %v55_v6 }
  0x5a   :  { %3705 = vmatmul.mubr.msk.f32.gmra.mrb[32].mxu0 %vm98_vm0, %v56_v7 }
  0x5b   :  { %3707 = vmatprep.mubr.msk.f32.mxu0 %vm98_vm0, %v57_v8 }
  0x5e   :  { %3708 = vmatmul.mubr.msk.f32.gmra.mrb[34].mxu0 %vm98_vm0, %v58_v9 }
  0x5f   :  { %3710 = vmatprep.mubr.msk.f32.mxu0 %vm98_vm0, %v59_v10 }
  0x62   :  { %3711 = vmatmul.mubr.msk.f32.gmra.mrb[36].mxu0 %vm98_vm0, %v60_v11 }
  0x63   :  { %3713 = vmatprep.mubr.msk.f32.mxu0 %vm98_vm0, %v61_v12 }
  0x66   :  { %3714 = vmatmul.mubr.msk.f32.gmra.mrb[38].mxu0 %vm98_vm0, %v62_v13 }
  0x67   :  { %3716 = vmatprep.mubr.msk.f32.mxu0 %vm98_vm0, %v63_v14 }
  0x6a   :  { %3717 = vmatmul.mubr.msk.f32.gmra.mrb[40].mxu0 %vm98_vm0, %v64_v15 }
  0xed   :  { %v4226_v16 = vpop.f32.mrb[0].mxu0  ;;  %v4228_v17 = vpop.f32.mrb[0].mxu1 }
  0xee   :  { %6493 = vst [vmem:[#allocation2_spill] sm:$0xff] %v4228_v17  ;;  %v4230_v18 = vpop.f32.mrb[1].mxu1  ;;  %v810_v19 = vsel %vm680_vm2, %v4228_v17, -inf  ;;  %v684_v20 = vsel %vm680_vm2, %v4226_v16, -inf  ;;  %v4236_v21 = vpop.f32.mrb[1].mxu0  ;;  %v1460_v22 = vsel %vm1456_vm3, %v4226_v16, -inf }
  0xef   :  { %6494 = vst [vmem:[#allocation3_spill] sm:$0xff] %v4230_v18  ;;  %811 = vmax.xlane.f32.xlu1 %v810_v19  ;;  %685 = vmax.xlane.f32.xlu0 %v684_v20  ;;  %v1586_v25 = vsel %vm1456_vm3, %v4228_v17, -inf  ;;  %v1457_v28 = vsel %vm1456_vm3, %v4236_v21, -inf  ;;  %v681_v29 = vsel %vm680_vm2, %v4236_v21, -inf  ;;  %v807_v37 = vsel %vm680_vm2, %v4230_v18, -inf }
  0xf0   :  { %v1583_v43 = vsel %vm1456_vm3, %v4230_v18, -inf }
  0xf1   :  { %v4240_v23 = vpop.f32.mrb[2].mxu0  ;;  %v4242_v24 = vpop.f32.mrb[2].mxu1 }
  0xf2   :  { %6495 = vst [vmem:[#allocation4_spill] sm:$0xff] %v4240_v23  ;;  %6496 = vst [vmem:[#allocation5_spill] sm:$0xff] %v4242_v24  ;;  %v4246_v26 = vpop.f32.mrb[3].mxu0  ;;  %v4248_v27 = vpop.f32.mrb[3].mxu1  ;;  %v690_v34 = vsel %vm680_vm2, %v4240_v23, -inf  ;;  %v816_v40 = vsel %vm680_vm2, %v4242_v24, -inf }
  0xf3   :  { %6497 = vst [vmem:[#allocation6_spill] sm:$0xff] %v4248_v27  ;;  %1587 = vmax.xlane.f32.xlu1 %v1586_v25  ;;  %1461 = vmax.xlane.f32.xlu0 %v1460_v22  ;;  %v813_v48 = vsel %vm680_vm2, %v4248_v27, -inf  ;;  %v1466_v49 = vsel %vm1456_vm3, %v4240_v23, -inf  ;;  %v1592_v54 = vsel %vm1456_vm3, %v4242_v24, -inf  ;;  %v1463_v55 = vsel %vm1456_vm3, %v4246_v26, -inf }
  0xf4   :  { %v1589_v60 = vsel %vm1456_vm3, %v4248_v27, -inf  ;;  %v687_v61 = vsel %vm680_vm2, %v4246_v26, -inf }
  0xf5   :  { %v4254_v30 = vpop.f32.mrb[4].mxu0  ;;  %v4256_v31 = vpop.f32.mrb[4].mxu1 }
  0xf6   :  { %6498 = vst [vmem:[#allocation7_spill] sm:$0xff] %v4254_v30  ;;  %6499 = vst [vmem:[#allocation8_spill] sm:$0xff] %v4256_v31  ;;  %v4258_v32 = vpop.f32.mrb[5].mxu0  ;;  %v4260_v33 = vpop.f32.mrb[5].mxu1  ;;  %v696_v0 = vsel %vm680_vm2, %v4254_v30, -inf  ;;  %v822_v6 = vsel %vm680_vm2, %v4256_v31, -inf }
  0xf7   :  { %6500 = vst [vmem:[#allocation9_spill] sm:$0xff] %v4260_v33  ;;  %1458 = vmax.xlane.f32.xlu1 %v1457_v28  ;;  %682 = vmax.xlane.f32.xlu0 %v681_v29  ;;  %v693_v1 = vsel %vm680_vm2, %v4258_v32, -inf  ;;  %v819_v7 = vsel %vm680_vm2, %v4260_v33, -inf  ;;  %v1472_v14 = vsel %vm1456_vm3, %v4254_v30, -inf  ;;  %v1469_v15 = vsel %vm1456_vm3, %v4258_v32, -inf }
  0xf8   :  { %v1598_v22 = vsel %vm1456_vm3, %v4256_v31, -inf  ;;  %v1595_v25 = vsel %vm1456_vm3, %v4260_v33, -inf }
  0xf9   :  { %v4264_v35 = vpop.f32.mrb[6].mxu0  ;;  %v4266_v36 = vpop.f32.mrb[6].mxu1 }
  0xfa   :  { %6501 = vst [vmem:[#allocation10_spill] sm:$0xff] %v4264_v35  ;;  %6502 = vst [vmem:[#allocation11_spill] sm:$0xff] %v4266_v36  ;;  %v4270_v38 = vpop.f32.mrb[7].mxu0  ;;  %v4272_v39 = vpop.f32.mrb[7].mxu1  ;;  %v702_v28 = vsel %vm680_vm2, %v4264_v35, -inf }
  0xfb   :  { %6503 = vst [vmem:[#allocation12_spill] sm:$0xff] %v4270_v38  ;;  %6504 = vst [vmem:[#allocation13_spill] sm:$0xff] %v4272_v39  ;;  %808 = vmax.xlane.f32.xlu0 %v807_v37  ;;  %691 = vmax.xlane.f32.xlu1 %v690_v34  ;;  %v699_v29 = vsel %vm680_vm2, %v4270_v38, -inf }
  0xfd   :  { %v4276_v41 = vpop.f32.mrb[8].mxu0  ;;  %v4278_v42 = vpop.f32.mrb[8].mxu1 }
  0xfe   :  { %6505 = vst [vmem:[#allocation14_spill] sm:$0xff] %v4276_v41  ;;  %6506 = vst [vmem:[#allocation15_spill] sm:$0xff] %v4278_v42  ;;  %v4282_v44 = vpop.f32.mrb[9].mxu0  ;;  %v4284_v45 = vpop.f32.mrb[9].mxu1 }
  0xff   :  { %6507 = vst [vmem:[#allocation16_spill] sm:$0xff] %v4282_v44  ;;  %6508 = vst [vmem:[#allocation17_spill] sm:$0xff] %v4284_v45  ;;  %1584 = vmax.xlane.f32.xlu0 %v1583_v43  ;;  %817 = vmax.xlane.f32.xlu1 %v816_v40  ;;  %v828_v40 = vsel %vm680_vm2, %v4266_v36, -inf  ;;  %v825_v43 = vsel %vm680_vm2, %v4272_v39, -inf }
 0x101   :  { %v4286_v46 = vpop.f32.mrb[10].mxu0  ;;  %v4288_v47 = vpop.f32.mrb[10].mxu1 }
 0x102   :  { %6509 = vst [vmem:[#allocation18_spill] sm:$0xff] %v4286_v46  ;;  %6510 = vst [vmem:[#allocation19_spill] sm:$0xff] %v4288_v47  ;;  %v4294_v50 = vpop.f32.mrb[11].mxu0  ;;  %v4296_v51 = vpop.f32.mrb[11].mxu1 }
 0x103   :  { %6511 = vst [vmem:[#allocation20_spill] sm:$0xff] %v4294_v50  ;;  %6512 = vst [vmem:[#allocation21_spill] sm:$0xff] %v4296_v51  ;;  %814 = vmax.xlane.f32.xlu0 %v813_v48  ;;  %1467 = vmax.xlane.f32.xlu1 %v1466_v49 }
 0x105   :  { %v4298_v52 = vpop.f32.mrb[12].mxu0  ;;  %v4300_v53 = vpop.f32.mrb[12].mxu1 }
 0x106   :  { %6513 = vst [vmem:[#allocation22_spill] sm:$0xff] %v4298_v52  ;;  %6514 = vst [vmem:[#allocation23_spill] sm:$0xff] %v4300_v53  ;;  %v4306_v56 = vpop.f32.mrb[13].mxu0  ;;  %v4308_v57 = vpop.f32.mrb[13].mxu1  ;;  %v1496_v31 = vsel %vm1456_vm3, %v4298_v52, -inf }
 0x107   :  { %6515 = vst [vmem:[#allocation24_spill] sm:$0xff] %v4306_v56  ;;  %6516 = vst [vmem:[#allocation25_spill] sm:$0xff] %v4308_v57  ;;  %1593 = vmax.xlane.f32.xlu1 %v1592_v54  ;;  %1464 = vmax.xlane.f32.xlu0 %v1463_v55  ;;  %v1478_v54 = vsel %vm1456_vm3, %v4264_v35, -inf  ;;  %v1475_v55 = vsel %vm1456_vm3, %v4270_v38, -inf  ;;  %v1493_v24 = vsel %vm1456_vm3, %v4306_v56, -inf }
 0x109   :  { %v4310_v58 = vpop.f32.mrb[14].mxu0  ;;  %v4312_v59 = vpop.f32.mrb[14].mxu1 }
 0x10a   :  { %6517 = vst [vmem:[#allocation26_spill] sm:$0xff] %v4310_v58  ;;  %6518 = vst [vmem:[#allocation27_spill] sm:$0xff] %v4312_v59  ;;  %v4318_v62 = vpop.f32.mrb[15].mxu0  ;;  %v4320_v63 = vpop.f32.mrb[15].mxu1 }
 0x10b   :  { %6519 = vst [vmem:[#allocation28_spill] sm:$0xff] %v4318_v62  ;;  %6520 = vst [vmem:[#allocation29_spill] sm:$0xff] %v4320_v63  ;;  %1590 = vmax.xlane.f32.xlu0 %v1589_v60  ;;  %688 = vmax.xlane.f32.xlu1 %v687_v61  ;;  %v1604_v60 = vsel %vm1456_vm3, %v4266_v36, -inf  ;;  %v1601_v61 = vsel %vm1456_vm3, %v4272_v39, -inf }
 0x10d   :  { %v4326_v2 = vpop.f32.mrb[16].mxu0  ;;  %v4328_v3 = vpop.f32.mrb[16].mxu1 }
 0x10e   :  { %6521 = vst [vmem:[#allocation30_spill] sm:$0xff] %v4326_v2  ;;  %6522 = vst [vmem:[#allocation31_spill] sm:$0xff] %v4328_v3  ;;  %v4330_v4 = vpop.f32.mrb[17].mxu0  ;;  %v4332_v5 = vpop.f32.mrb[17].mxu1 }
 0x10f   :  { %6523 = vst [vmem:[#allocation32_spill] sm:$0xff] %v4332_v5  ;;  %697 = vmax.xlane.f32.xlu1 %v696_v0  ;;  %694 = vmax.xlane.f32.xlu0 %v693_v1  ;;  %v708_v0 = vsel %vm680_vm2, %v4276_v41, -inf  ;;  %v705_v1 = vsel %vm680_vm2, %v4282_v44, -inf }
 0x111   :  { %v4338_v8 = vpop.f32.mrb[18].mxu0  ;;  %v4340_v9 = vpop.f32.mrb[18].mxu1 }
 0x112   :  { %6524 = vst [vmem:[#allocation33_spill] sm:$0xff] %v4338_v8  ;;  %6525 = vst [vmem:[#allocation34_spill] sm:$0xff] %v4340_v9  ;;  %v4342_v10 = vpop.f32.mrb[19].mxu0  ;;  %v4344_v11 = vpop.f32.mrb[19].mxu1 }
 0x113   :  { %6526 = vst [vmem:[#allocation35_spill] sm:$0xff] %v4344_v11  ;;  %823 = vmax.xlane.f32.xlu1 %v822_v6  ;;  %820 = vmax.xlane.f32.xlu0 %v819_v7  ;;  %v735_v36 = vsel %vm680_vm2, %v4342_v10, -inf }
 0x115   :  { %v4346_v12 = vpop.f32.mrb[20].mxu0  ;;  %v4348_v13 = vpop.f32.mrb[20].mxu1 }
 0x116   :  { %6527 = vst [vmem:[#allocation36_spill] sm:$0xff] %v4346_v12  ;;  %6528 = vst [vmem:[#allocation37_spill] sm:$0xff] %v4348_v13  ;;  %v4354_v19 = vpop.f32.mrb[21].mxu0  ;;  %v4356_v20 = vpop.f32.mrb[21].mxu1 }
 0x117   :  { %6529 = vst [vmem:[#allocation38_spill] sm:$0xff] %v4356_v20  ;;  %1473 = vmax.xlane.f32.xlu1 %v1472_v14  ;;  %1470 = vmax.xlane.f32.xlu0 %v1469_v15  ;;  %v834_v14 = vsel %vm680_vm2, %v4278_v42, -inf  ;;  %v831_v15 = vsel %vm680_vm2, %v4284_v45, -inf }
 0x119   :  { %v4366_v34 = vpop.f32.mrb[22].mxu0 }
 0x11a   :  { %6530 = vst [vmem:[#allocation39_spill] sm:$0xff] %v4366_v34  ;;  %v4368_v37 = vpop.f32.mrb[23].mxu0 }
 0x11b   :  { %1599 = vmax.xlane.f32.xlu1 %v1598_v22  ;;  %1596 = vmax.xlane.f32.xlu0 %v1595_v25 }
 0x11d   :  { %v4374_v48 = vpop.f32.mrb[24].mxu0 }
 0x11e   :  { %6531 = vst [vmem:[#allocation40_spill] sm:$0xff] %v4374_v48  ;;  %v4376_v49 = vpop.f32.mrb[25].mxu0 }
 0x11f   :  { %703 = vmax.xlane.f32.xlu1 %v702_v28  ;;  %700 = vmax.xlane.f32.xlu0 %v699_v29  ;;  %6532 = vst [vmem:[#allocation41_spill] sm:$0xff] %v4376_v49  ;;  %v1484_v28 = vsel %vm1456_vm3, %v4276_v41, -inf  ;;  %v1481_v29 = vsel %vm1456_vm3, %v4282_v44, -inf }
 0x121   :  { %v4390_v6 = vpop.f32.mrb[26].mxu0 }
 0x122   :  { %6533 = vst [vmem:[#allocation42_spill] sm:$0xff] %v4390_v6  ;;  %v4392_v7 = vpop.f32.mrb[27].mxu0 }
 0x123   :  { %829 = vmax.xlane.f32.xlu1 %v828_v40  ;;  %826 = vmax.xlane.f32.xlu0 %v825_v43  ;;  %6534 = vst [vmem:[#allocation43_spill] sm:$0xff] %v4392_v7  ;;  %v1610_v40 = vsel %vm1456_vm3, %v4278_v42, -inf  ;;  %v1607_v43 = vsel %vm1456_vm3, %v4284_v45, -inf  ;;  %v1499_v42 = vsel %vm1456_vm3, %v4318_v62, -inf }
 0x125   :  { %v4398_v22 = vpop.f32.mrb[28].mxu0 }
 0x126   :  { %6535 = vst [vmem:[#allocation44_spill] sm:$0xff] %v4398_v22  ;;  %v4400_v25 = vpop.f32.mrb[29].mxu0 }
 0x127   :  { %1479 = vmax.xlane.f32.xlu1 %v1478_v54  ;;  %1476 = vmax.xlane.f32.xlu0 %v1475_v55  ;;  %6536 = vst [vmem:[#allocation45_spill] sm:$0xff] %v4400_v25  ;;  %v714_v54 = vsel %vm680_vm2, %v4286_v46, -inf  ;;  %v711_v55 = vsel %vm680_vm2, %v4294_v50, -inf }
 0x12b   :  { %1605 = vmax.xlane.f32.xlu1 %v1604_v60  ;;  %1602 = vmax.xlane.f32.xlu0 %v1601_v61  ;;  %v4414_v60 = vpop.f32.mrb[30].mxu0 }
 0x12c   :  { %6537 = vst [vmem:[#allocation46_spill] sm:$0xff] %v4414_v60  ;;  %v4416_v61 = vpop.f32.mrb[31].mxu0 }
 0x12d   :  { %6538 = vst [vmem:[#allocation47_spill] sm:$0xff] %v4416_v61 }
 0x12f   :  { %709 = vmax.xlane.f32.xlu1 %v708_v0  ;;  %706 = vmax.xlane.f32.xlu0 %v705_v1  ;;  %v840_v0 = vsel %vm680_vm2, %v4288_v47, -inf  ;;  %v837_v1 = vsel %vm680_vm2, %v4296_v51, -inf }
 0x133   :  { %835 = vmax.xlane.f32.xlu1 %v834_v14  ;;  %832 = vmax.xlane.f32.xlu0 %v831_v15  ;;  %v4422_v14 = vpop.f32.mrb[32].mxu0 }
 0x134   :  { %6539 = vst [vmem:[#allocation48_spill] sm:$0xff] %v4422_v14  ;;  %v4424_v15 = vpop.f32.mrb[33].mxu0 }
 0x135   :  { %6540 = vst [vmem:[#allocation49_spill] sm:$0xff] %v4424_v15 }
 0x137   :  { %1485 = vmax.xlane.f32.xlu1 %v1484_v28  ;;  %1482 = vmax.xlane.f32.xlu0 %v1481_v29  ;;  %v1490_v28 = vsel %vm1456_vm3, %v4286_v46, -inf  ;;  %v1487_v29 = vsel %vm1456_vm3, %v4294_v50, -inf }
 0x13b   :  { %1611 = vmax.xlane.f32.xlu1 %v1610_v40  ;;  %1608 = vmax.xlane.f32.xlu0 %v1607_v43  ;;  %v1616_v40 = vsel %vm1456_vm3, %v4288_v47, -inf  ;;  %v1613_v43 = vsel %vm1456_vm3, %v4296_v51, -inf }
 0x13f   :  { %715 = vmax.xlane.f32.xlu1 %v714_v54  ;;  %712 = vmax.xlane.f32.xlu0 %v711_v55  ;;  %v720_v54 = vsel %vm680_vm2, %v4298_v52, -inf  ;;  %v717_v55 = vsel %vm680_vm2, %v4306_v56, -inf }
 0x143   :  { %841 = vmax.xlane.f32.xlu1 %v840_v0  ;;  %838 = vmax.xlane.f32.xlu0 %v837_v1  ;;  %v4438_v0 = vpop.f32.mrb[34].mxu0 }
 0x144   :  { %6541 = vst [vmem:[#allocation50_spill] sm:$0xff] %v4438_v0  ;;  %v4440_v1 = vpop.f32.mrb[35].mxu0 }
 0x145   :  { %6542 = vst [vmem:[#allocation51_spill] sm:$0xff] %v4440_v1 }
 0x147   :  { %1491 = vmax.xlane.f32.xlu1 %v1490_v28  ;;  %1488 = vmax.xlane.f32.xlu0 %v1487_v29  ;;  %v846_v28 = vsel %vm680_vm2, %v4300_v53, -inf  ;;  %v843_v29 = vsel %vm680_vm2, %v4308_v57, -inf }
 0x14b   :  { %1617 = vmax.xlane.f32.xlu1 %v1616_v40  ;;  %1614 = vmax.xlane.f32.xlu0 %v1613_v43  ;;  %v4446_v40 = vpop.f32.mrb[36].mxu0 }
 0x14c   :  { %6543 = vst [vmem:[#allocation52_spill] sm:$0xff] %v4446_v40  ;;  %v4448_v43 = vpop.f32.mrb[37].mxu0 }
 0x14d   :  { %6544 = vst [vmem:[#allocation53_spill] sm:$0xff] %v4448_v43  ;;  %v4462_v17 = vpop.f32.mrb[38].mxu0 }
 0x14e   :  { %6545 = vst [vmem:[#allocation54_spill] sm:$0xff] %v4462_v17  ;;  %v4464_v47 = vpop.f32.mrb[39].mxu0 }
 0x14f   :  { %721 = vmax.xlane.f32.xlu1 %v720_v54  ;;  %718 = vmax.xlane.f32.xlu0 %v717_v55  ;;  %v1622_v54 = vsel %vm1456_vm3, %v4300_v53, -inf  ;;  %v1619_v55 = vsel %vm1456_vm3, %v4308_v57, -inf  ;;  %6546 = vst [vmem:[#allocation55_spill] sm:$0xff] %v4464_v47  ;;  %v1502_v53 = vsel %vm1456_vm3, %v4310_v58, -inf }
 0x153   :  { %847 = vmax.xlane.f32.xlu1 %v846_v28  ;;  %844 = vmax.xlane.f32.xlu0 %v843_v29  ;;  %v726_v28 = vsel %vm680_vm2, %v4310_v58, -inf  ;;  %v723_v29 = vsel %vm680_vm2, %v4318_v62, -inf }
 0x157   :  { %1497 = vmax.xlane.f32.xlu1 %v1496_v31  ;;  %1494 = vmax.xlane.f32.xlu0 %v1493_v24  ;;  %v852_v24 = vsel %vm680_vm2, %v4312_v59, -inf  ;;  %v849_v31 = vsel %vm680_vm2, %v4320_v63, -inf }
 0x15b   :  { %1623 = vmax.xlane.f32.xlu1 %v1622_v54  ;;  %1620 = vmax.xlane.f32.xlu0 %v1619_v55  ;;  %v4470_v54 = vpop.f32.mrb[40].mxu0 }
 0x15c   :  { %6547 = vst [vmem:[#allocation56_spill] sm:$0xff] %v4470_v54  ;;  %v4472_v55 = vpop.f32.mrb[41].mxu0 }
 0x15d   :  { %6548 = vst [vmem:[#allocation57_spill] sm:$0xff] %v4472_v55 }
 0x15f   :  { %727 = vmax.xlane.f32.xlu1 %v726_v28  ;;  %724 = vmax.xlane.f32.xlu0 %v723_v29  ;;  %v1628_v28 = vsel %vm1456_vm3, %v4312_v59, -inf  ;;  %v1625_v29 = vsel %vm1456_vm3, %v4320_v63, -inf }
 0x163   :  { %853 = vmax.xlane.f32.xlu1 %v852_v24  ;;  %850 = vmax.xlane.f32.xlu0 %v849_v31  ;;  %v732_v24 = vsel %vm680_vm2, %v4326_v2, -inf  ;;  %v729_v31 = vsel %vm680_vm2, %v4330_v4, -inf }
 0x167   :  { %1503 = vmax.xlane.f32.xlu1 %v1502_v53  ;;  %1500 = vmax.xlane.f32.xlu0 %v1499_v42  ;;  %v858_v53 = vsel %vm680_vm2, %v4328_v3, -inf  ;;  %v855_v42 = vsel %vm680_vm2, %v4332_v5, -inf }
 0x16b   :  { %1629 = vmax.xlane.f32.xlu1 %v1628_v28  ;;  %1626 = vmax.xlane.f32.xlu0 %v1625_v29  ;;  %v1508_v28 = vsel %vm1456_vm3, %v4326_v2, -inf  ;;  %v1505_v29 = vsel %vm1456_vm3, %v4330_v4, -inf }
 0x16f   :  { %733 = vmax.xlane.f32.xlu1 %v732_v24  ;;  %730 = vmax.xlane.f32.xlu0 %v729_v31  ;;  %v1634_v24 = vsel %vm1456_vm3, %v4328_v3, -inf  ;;  %v1631_v31 = vsel %vm1456_vm3, %v4332_v5, -inf  ;;  %v861_v3 = vsel %vm680_vm2, %v4344_v11, -inf }
 0x173   :  { %859 = vmax.xlane.f32.xlu1 %v858_v53  ;;  %856 = vmax.xlane.f32.xlu0 %v855_v42  ;;  %v738_v42 = vsel %vm680_vm2, %v4338_v8, -inf }
 0x177   :  { %1509 = vmax.xlane.f32.xlu1 %v1508_v28  ;;  %1506 = vmax.xlane.f32.xlu0 %v1505_v29  ;;  %v6442_v28 = vmov 0  }
 0x178   :  { %3851 = vset.pattern.permute.xlu1 %v6442_v28  ;;  %3852 = vset.pattern.permute.xlu0 %v6442_v28 }
 0x17b   :  { %1635 = vmax.xlane.f32.xlu1 %v1634_v24  ;;  %1632 = vmax.xlane.f32.xlu0 %v1631_v31  ;;  %v864_v31 = vsel %vm680_vm2, %v4340_v9, -inf }
 0x17c   :  { %v4498_v59 = vpop.xlane.xlu1 %811  ;;  %v4500_v53 = vpop.xlane.xlu0 %685 }
 0x17f   :  { %739 = vmax.xlane.f32.xlu1 %v738_v42  ;;  %736 = vmax.xlane.f32.xlu0 %v735_v36  ;;  %v1514_v42 = vsel %vm1456_vm3, %v4338_v8, -inf  ;;  %v1511_v36 = vsel %vm1456_vm3, %v4342_v10, -inf }
 0x180   :  { %v4508_v29 = vpop.xlane.xlu1 %1587  ;;  %v4510_v24 = vpop.xlane.xlu0 %1461 }
 0x181   :  { %6549 = vst [vmem:[#allocation58_spill] sm:$0xff] %v4508_v29 }
 0x183   :  { %865 = vmax.xlane.f32.xlu1 %v864_v31  ;;  %862 = vmax.xlane.f32.xlu0 %v861_v3  ;;  %v1640_v31 = vsel %vm1456_vm3, %v4340_v9, -inf  ;;  %v1637_v3 = vsel %vm1456_vm3, %v4344_v11, -inf }
 0x184   :  { %v4516_v58 = vpop.xlane.xlu1 %1458  ;;  %v4518_v52 = vpop.xlane.xlu0 %682 }
 0x185   :  { %6550 = vst [vmem:[#allocation59_spill] sm:$0xff] %v4516_v58 }
 0x187   :  { %1515 = vmax.xlane.f32.xlu1 %v1514_v42  ;;  %1512 = vmax.xlane.f32.xlu0 %v1511_v36  ;;  %v744_v42 = vsel %vm680_vm2, %v4346_v12, -inf  ;;  %v741_v36 = vsel %vm680_vm2, %v4354_v19, -inf }
 0x188   :  { %v4524_v28 = vpop.xlane.xlu0 %808  ;;  %v4526_v29 = vpop.xlane.xlu1 %691 }
 0x18b   :  { %1641 = vmax.xlane.f32.xlu1 %v1640_v31  ;;  %1638 = vmax.xlane.f32.xlu0 %v1637_v3  ;;  %v870_v31 = vsel %vm680_vm2, %v4348_v13, -inf  ;;  %v867_v3 = vsel %vm680_vm2, %v4356_v20, -inf }
 0x18c   :  { %v4532_v58 = vpop.xlane.xlu0 %1584  ;;  %v4534_v33 = vpop.xlane.xlu1 %817 }
 0x18d   :  { %6551 = vst [vmem:[#allocation60_spill] sm:$0xff] %v4532_v58 }
 0x18f   :  { %745 = vmax.xlane.f32.xlu1 %v744_v42  ;;  %742 = vmax.xlane.f32.xlu0 %v741_v36  ;;  %v1520_v42 = vsel %vm1456_vm3, %v4346_v12, -inf  ;;  %v1517_v36 = vsel %vm1456_vm3, %v4354_v19, -inf }
 0x190   :  { %v4540_v46 = vpop.xlane.xlu0 %814  ;;  %v4542_v9 = vpop.xlane.xlu1 %1467 }
 0x193   :  { %871 = vmax.xlane.f32.xlu1 %v870_v31  ;;  %868 = vmax.xlane.f32.xlu0 %v867_v3  ;;  %v1646_v31 = vsel %vm1456_vm3, %v4348_v13, -inf  ;;  %v1643_v3 = vsel %vm1456_vm3, %v4356_v20, -inf }
 0x194   :  { %v4548_v58 = vpop.xlane.xlu1 %1593  ;;  %v4550_v27 = vpop.xlane.xlu0 %1464 }
 0x195   :  { %6552 = vst [vmem:[#allocation61_spill] sm:$0xff] %v4548_v58 }
 0x197   :  { %1521 = vmax.xlane.f32.xlu1 %v1520_v42  ;;  %1518 = vmax.xlane.f32.xlu0 %v1517_v36  ;;  %v750_v42 = vsel %vm680_vm2, %v4366_v34, -inf  ;;  %v747_v36 = vsel %vm680_vm2, %v4368_v37, -inf }
 0x198   :  { %v4556_v11 = vpop.xlane.xlu0 %1590  ;;  %v4558_v41 = vpop.xlane.xlu1 %688 }
 0x199   :  { %6553 = vst [vmem:[#allocation62_spill] sm:$0xff] %v4556_v11 }
 0x19b   :  { %1647 = vmax.xlane.f32.xlu1 %v1646_v31  ;;  %1644 = vmax.xlane.f32.xlu0 %v1643_v3  ;;  %v1526_v31 = vsel %vm1456_vm3, %v4366_v34, -inf  ;;  %v1523_v3 = vsel %vm1456_vm3, %v4368_v37, -inf }
 0x19c   :  { %v4564_v58 = vpop.xlane.xlu1 %697  ;;  %v4566_v18 = vpop.xlane.xlu0 %694 }
 0x19f   :  { %751 = vmax.xlane.f32.xlu1 %v750_v42  ;;  %748 = vmax.xlane.f32.xlu0 %v747_v36  ;;  %v756_v42 = vsel %vm680_vm2, %v4374_v48, -inf  ;;  %v753_v36 = vsel %vm680_vm2, %v4376_v49, -inf }
 0x1a0   :  { %v4572_v11 = vpop.xlane.xlu1 %823  ;;  %v4574_v13 = vpop.xlane.xlu0 %820 }
 0x1a3   :  { %1527 = vmax.xlane.f32.xlu1 %v1526_v31  ;;  %1524 = vmax.xlane.f32.xlu0 %v1523_v3  ;;  %v1532_v31 = vsel %vm1456_vm3, %v4374_v48, -inf  ;;  %v1529_v3 = vsel %vm1456_vm3, %v4376_v49, -inf  ;;  %v6570_v49 = vmov 0  }
 0x1a4   :  { %v4580_v20 = vpop.xlane.xlu1 %1473  ;;  %v4582_v5 = vpop.xlane.xlu0 %1470 }
 0x1a7   :  { %757 = vmax.xlane.f32.xlu1 %v756_v42  ;;  %754 = vmax.xlane.f32.xlu0 %v753_v36  ;;  %v762_v42 = vsel %vm680_vm2, %v4390_v6, -inf  ;;  %v759_v36 = vsel %vm680_vm2, %v4392_v7, -inf }
 0x1a8   :  { %v4588_v35 = vpop.xlane.xlu1 %1599  ;;  %v4590_v34 = vpop.xlane.xlu0 %1596 }
 0x1a9   :  { %6554 = vst [vmem:[#allocation63_spill] sm:$0xff] %v4588_v35  ;;  %6555 = vst [vmem:[#allocation64_spill] sm:$0xff] %v4590_v34 }
 0x1ab   :  { %1533 = vmax.xlane.f32.xlu1 %v1532_v31  ;;  %1530 = vmax.xlane.f32.xlu0 %v1529_v3  ;;  %v1538_v31 = vsel %vm1456_vm3, %v4390_v6, -inf  ;;  %v1535_v3 = vsel %vm1456_vm3, %v4392_v7, -inf }
 0x1ac   :  { %v4596_v63 = vpop.xlane.xlu1 %703  ;;  %v4598_v30 = vpop.xlane.xlu0 %700 }
 0x1af   :  { %763 = vmax.xlane.f32.xlu1 %v762_v42  ;;  %760 = vmax.xlane.f32.xlu0 %v759_v36  ;;  %v768_v42 = vsel %vm680_vm2, %v4398_v22, -inf  ;;  %v765_v36 = vsel %vm680_vm2, %v4400_v25, -inf }
 0x1b0   :  { %v4604_v34 = vpop.xlane.xlu1 %829  ;;  %v4606_v35 = vpop.xlane.xlu0 %826 }
 0x1b3   :  { %1539 = vmax.xlane.f32.xlu1 %v1538_v31  ;;  %1536 = vmax.xlane.f32.xlu0 %v1535_v3  ;;  %v1544_v31 = vsel %vm1456_vm3, %v4398_v22, -inf  ;;  %v1541_v3 = vsel %vm1456_vm3, %v4400_v25, -inf }
 0x1b4   :  { %v4612_v48 = vpop.xlane.xlu1 %1479  ;;  %v4614_v12 = vpop.xlane.xlu0 %1476 }
 0x1b7   :  { %769 = vmax.xlane.f32.xlu1 %v768_v42  ;;  %766 = vmax.xlane.f32.xlu0 %v765_v36  ;;  %v774_v42 = vsel %vm680_vm2, %v4414_v60, -inf  ;;  %v771_v36 = vsel %vm680_vm2, %v4416_v61, -inf }
 0x1b8   :  { %v4620_v57 = vpop.xlane.xlu1 %1605  ;;  %v4622_v6 = vpop.xlane.xlu0 %1602 }
 0x1b9   :  { %6556 = vst [vmem:[#allocation65_spill] sm:$0xff] %v4620_v57  ;;  %6557 = vst [vmem:[#allocation66_spill] sm:$0xff] %v4622_v6 }
 0x1bb   :  { %1545 = vmax.xlane.f32.xlu1 %v1544_v31  ;;  %1542 = vmax.xlane.f32.xlu0 %v1541_v3  ;;  %v1550_v31 = vsel %vm1456_vm3, %v4414_v60, -inf  ;;  %v1547_v3 = vsel %vm1456_vm3, %v4416_v61, -inf }
 0x1bc   :  { %v4628_v23 = vpop.xlane.xlu1 %709  ;;  %v4630_v8 = vpop.xlane.xlu0 %706 }
 0x1bf   :  { %775 = vmax.xlane.f32.xlu1 %v774_v42  ;;  %772 = vmax.xlane.f32.xlu0 %v771_v36  ;;  %v780_v42 = vsel %vm680_vm2, %v4422_v14, -inf  ;;  %v777_v36 = vsel %vm680_vm2, %v4424_v15, -inf }
 0x1c0   :  { %v4636_v57 = vpop.xlane.xlu1 %835  ;;  %v4638_v6 = vpop.xlane.xlu0 %832 }
 0x1c3   :  { %1551 = vmax.xlane.f32.xlu1 %v1550_v31  ;;  %1548 = vmax.xlane.f32.xlu0 %v1547_v3  ;;  %v1556_v31 = vsel %vm1456_vm3, %v4422_v14, -inf  ;;  %v1553_v3 = vsel %vm1456_vm3, %v4424_v15, -inf }
 0x1c4   :  { %v4644_v22 = vpop.xlane.xlu1 %1485  ;;  %v4646_v51 = vpop.xlane.xlu0 %1482 }
 0x1c5   :  { %6558 = vst [vmem:[#allocation67_spill] sm:$0xff] %v4644_v22 }
 0x1c7   :  { %781 = vmax.xlane.f32.xlu1 %v780_v42  ;;  %778 = vmax.xlane.f32.xlu0 %v777_v36  ;;  %v786_v42 = vsel %vm680_vm2, %v4438_v0, -inf  ;;  %v783_v36 = vsel %vm680_vm2, %v4440_v1, -inf }
 0x1c8   :  { %v4652_v2 = vpop.xlane.xlu1 %1611  ;;  %v4654_v60 = vpop.xlane.xlu0 %1608 }
 0x1c9   :  { %6559 = vst [vmem:[#allocation68_spill] sm:$0xff] %v4652_v2  ;;  %6560 = vst [vmem:[#allocation69_spill] sm:$0xff] %v4654_v60 }
 0x1cb   :  { %1557 = vmax.xlane.f32.xlu1 %v1556_v31  ;;  %1554 = vmax.xlane.f32.xlu0 %v1553_v3  ;;  %v1562_v31 = vsel %vm1456_vm3, %v4438_v0, -inf  ;;  %v1559_v3 = vsel %vm1456_vm3, %v4440_v1, -inf }
 0x1cc   :  { %v4660_v22 = vpop.xlane.xlu1 %715  ;;  %v4662_v45 = vpop.xlane.xlu0 %712 }
 0x1cf   :  { %787 = vmax.xlane.f32.xlu1 %v786_v42  ;;  %784 = vmax.xlane.f32.xlu0 %v783_v36  ;;  %v792_v42 = vsel %vm680_vm2, %v4446_v40, -inf  ;;  %v789_v36 = vsel %vm680_vm2, %v4448_v43, -inf }
 0x1d0   :  { %v4668_v2 = vpop.xlane.xlu1 %841  ;;  %v4670_v60 = vpop.xlane.xlu0 %838 }
 0x1d3   :  { %1563 = vmax.xlane.f32.xlu1 %v1562_v31  ;;  %1560 = vmax.xlane.f32.xlu0 %v1559_v3  ;;  %v1568_v31 = vsel %vm1456_vm3, %v4446_v40, -inf  ;;  %v1565_v3 = vsel %vm1456_vm3, %v4448_v43, -inf }
 0x1d4   :  { %v4676_v14 = vpop.xlane.xlu1 %1491  ;;  %v4678_v15 = vpop.xlane.xlu0 %1488 }
 0x1d5   :  { %6561 = vst [vmem:[#allocation70_spill] sm:$0xff] %v4676_v14 }
 0x1d7   :  { %793 = vmax.xlane.f32.xlu1 %v792_v42  ;;  %790 = vmax.xlane.f32.xlu0 %v789_v36  ;;  %v798_v42 = vsel %vm680_vm2, %v4462_v17, -inf  ;;  %v795_v36 = vsel %vm680_vm2, %v4464_v47, -inf }
 0x1d8   :  { %v4684_v39 = vpop.xlane.xlu1 %1617  ;;  %v4686_v0 = vpop.xlane.xlu0 %1614 }
 0x1d9   :  { %6562 = vst [vmem:[#allocation71_spill] sm:$0xff] %v4684_v39  ;;  %6563 = vst [vmem:[#allocation72_spill] sm:$0xff] %v4686_v0 }
 0x1db   :  { %1569 = vmax.xlane.f32.xlu1 %v1568_v31  ;;  %1566 = vmax.xlane.f32.xlu0 %v1565_v3  ;;  %v1574_v31 = vsel %vm1456_vm3, %v4462_v17, -inf  ;;  %v1571_v3 = vsel %vm1456_vm3, %v4464_v47, -inf }
 0x1dc   :  { %v4692_v14 = vpop.xlane.xlu1 %721  ;;  %v4694_v1 = vpop.xlane.xlu0 %718 }
 0x1df   :  { %799 = vmax.xlane.f32.xlu1 %v798_v42  ;;  %796 = vmax.xlane.f32.xlu0 %v795_v36  ;;  %v804_v42 = vsel %vm680_vm2, %v4470_v54, -inf  ;;  %v801_v36 = vsel %vm680_vm2, %v4472_v55, -inf }
 0x1e0   :  { %v4700_v39 = vpop.xlane.xlu1 %847  ;;  %v4702_v0 = vpop.xlane.xlu0 %844 }
 0x1e3   :  { %1575 = vmax.xlane.f32.xlu1 %v1574_v31  ;;  %1572 = vmax.xlane.f32.xlu0 %v1571_v3  ;;  %v1580_v31 = vsel %vm1456_vm3, %v4470_v54, -inf  ;;  %v1577_v3 = vsel %vm1456_vm3, %v4472_v55, -inf }
 0x1e4   :  { %v4708_v40 = vpop.xlane.xlu1 %1497  ;;  %v4710_v43 = vpop.xlane.xlu0 %1494 }
 0x1e5   :  { %6564 = vst [vmem:[#allocation73_spill] sm:$0xff] %v4708_v40 }
 0x1e7   :  { %805 = vmax.xlane.f32.xlu1 %v804_v42  ;;  %802 = vmax.xlane.f32.xlu0 %v801_v36 }
 0x1e8   :  { %v4716_v62 = vpop.xlane.xlu1 %1623  ;;  %v4718_v17 = vpop.xlane.xlu0 %1620 }
 0x1e9   :  { %6565 = vst [vmem:[#allocation74_spill] sm:$0xff] %v4716_v62  ;;  %6566 = vst [vmem:[#allocation75_spill] sm:$0xff] %v4718_v17  ;;  %v4739_v17 = vld [vmem:[%s6426_s2] ss:$0 sm:$0xff] }
 0x1ea   :  { %v923_v56 = vadd.f32 %v4739_v17, %v4498_v59  ;;  %v6489_v59 = vmov 1  }
 0x1eb   :  { %1581 = vmax.xlane.f32.xlu1 %v1580_v31  ;;  %1578 = vmax.xlane.f32.xlu0 %v1577_v3  ;;  %v881_v31 = vadd.f32 %v4739_v17, %v4500_v53  ;;  %v880_v53 = vadd.f32 %v4739_v17, %v4518_v52  ;;  %v883_v52 = vadd.f32 %v4739_v17, %v4526_v29 }
 0x1ec   :  { %v4724_v40 = vpop.xlane.xlu1 %727  ;;  %v4726_v47 = vpop.xlane.xlu0 %724  ;;  %v987_v7 = vmax.f32 %v923_v56, 0.0  ;;  %v925_v56 = vadd.f32 %v4739_v17, %v4534_v33  ;;  %v1652_v29 = vadd.f32 %v4739_v17, %v4542_v9 }
 0x1ed   :  { %v945_v55 = vmax.f32 %v881_v31, 0.0 }
 0x1ee   :  { %v989_v38 = vmax.f32 %v925_v56, 0.0 }
 0x1f0   :  { %v4728_v61 = vpop.xlane.xlu1 %853  ;;  %v4730_v42 = vpop.xlane.xlu0 %850 }
 0x1f4   :  { %v4732_v36 = vpop.xlane.xlu1 %1503  ;;  %v4734_v62 = vpop.xlane.xlu0 %1500 }
 0x1f5   :  { %6567 = vst [vmem:[#allocation76_spill] sm:$0xff] %v4732_v36  ;;  %v1650_v36 = vadd.f32 %v4739_v17, %v4510_v24  ;;  %v944_v24 = vmax.f32 %v880_v53, 0.0 }
 0x1f7   :  { %v1714_v44 = vmax.f32 %v1650_v36, 0.0 }
 0x1f8   :  { %v4743_v3 = vpop.xlane.xlu1 %1629  ;;  %v4745_v54 = vpop.xlane.xlu0 %1626 }
 0x1f9   :  { %6568 = vst [vmem:[#allocation77_spill] sm:$0xff] %v4743_v3  ;;  %6569 = vst [vmem:[#allocation78_spill] sm:$0xff] %v4745_v54  ;;  %v922_v3 = vadd.f32 %v4739_v17, %v4524_v28 }
 0x1fc   :  { %v4751_v25 = vpop.xlane.xlu1 %733  ;;  %v4753_v50 = vpop.xlane.xlu0 %730  ;;  %1079 = vperm.xlu1 %3851, %v945_v55   ;;  %v986_v55 = vmax.f32 %v922_v3, 0.0 }
 0x200   :  { %v4759_v31 = vpop.xlane.xlu1 %859  ;;  %v4761_v54 = vpop.xlane.xlu0 %856  ;;  %3853 = vset.pattern.permute.xlu1 %v6489_v59  ;;  %v929_v59 = vadd.f32 %v4739_v17, %v4604_v34  ;;  %v924_v34 = vadd.f32 %v4739_v17, %v4540_v46  ;;  %v891_v46 = vadd.f32 %v4739_v17, %v4660_v22 }
 0x201   :  { %1849 = vperm.xlu1 %3853, %v1714_v44   ;;  %1289 = vperm.xlu0 %3852, %v987_v7   ;;  %v927_v44 = vadd.f32 %v4739_v17, %v4572_v11  ;;  %v947_v7 = vmax.f32 %v883_v52, 0.0  ;;  %v882_v11 = vadd.f32 %v4739_v17, %v4558_v41  ;;  %v6573_v52 = vmov 1  }
 0x202   :  { %v931_v41 = vadd.f32 %v4739_v17, %v4636_v57 }
 0x203   :  { %v991_v3 = vmax.f32 %v927_v44, 0.0 }
 0x204   :  { %v4768_v36 = vpop.xlane.xlu1 %1509  ;;  %v4770_v28 = vpop.xlane.xlu0 %1506 }
 0x205   :  { %3854 = vset.pattern.permute.xlu1 %v6570_v49  ;;  %1074 = vperm.xlu0 %3852, %v944_v24  }
 0x206   :  { %1284 = vperm.xlu1 %3854, %v986_v55   ;;  %v1716_v55 = vmax.f32 %v1652_v29, 0.0 }
 0x208   :  { %v4775_v53 = vpop.xlane.xlu1 %1635  ;;  %v4777_v33 = vpop.xlane.xlu0 %1632 }
 0x209   :  { %6571 = vst [vmem:[#allocation79_spill] sm:$0xff] %v4775_v53  ;;  %6572 = vst [vmem:[#allocation80_spill] sm:$0xff] %v4777_v33  ;;  %1299 = vperm.xlu0 %3852, %v989_v38   ;;  %v993_v53 = vmax.f32 %v929_v59, 0.0  ;;  %v889_v38 = vadd.f32 %v4739_v17, %v4628_v23  ;;  %v988_v23 = vmax.f32 %v924_v34, 0.0  ;;  %v955_v33 = vmax.f32 %v891_v46, 0.0 }
 0x20a   :  { %1089 = vperm.xlu1 %3854, %v947_v7   ;;  %v946_v7 = vmax.f32 %v882_v11, 0.0  ;;  %v885_v34 = vadd.f32 %v4739_v17, %v4564_v58 }
 0x20b   :  { %v953_v29 = vmax.f32 %v889_v38, 0.0 }
 0x20c   :  { %v4783_v24 = vpop.xlane.xlu1 %739  ;;  %v4785_v56 = vpop.xlane.xlu0 %736 }
 0x20d   :  { %1309 = vperm.xlu0 %3852, %v991_v3  }
 0x20e   :  { %3855 = vset.pattern.permute.xlu1 %v6573_v52 }
 0x20f   :  { %1859 = vperm.xlu1 %3855, %v1716_v55   ;;  %v995_v55 = vmax.f32 %v931_v41, 0.0  ;;  %v893_v41 = vadd.f32 %v4739_v17, %v4692_v14  ;;  %v926_v14 = vadd.f32 %v4739_v17, %v4574_v13 }
 0x210   :  { %v4792_v9 = vpop.xlane.xlu1 %865  ;;  %v4794_v44 = vpop.xlane.xlu0 %862 }
 0x211   :  { %1319 = vperm.xlu0 %3852, %v993_v53   ;;  %v1651_v53 = vadd.f32 %v4739_v17, %v4550_v27  ;;  %v957_v58 = vmax.f32 %v893_v41, 0.0 }
 0x213   :  { %3856 = vset.pattern.permute.xlu1 %v6570_v49  ;;  %v1715_v57 = vmax.f32 %v1651_v53, 0.0  ;;  %v884_v53 = vadd.f32 %v4739_v17, %v4566_v18 }
 0x214   :  { %v4801_v59 = vpop.xlane.xlu1 %1515  ;;  %v4803_v3 = vpop.xlane.xlu0 %1512  ;;  %1084 = vperm.xlu1 %3856, %v946_v7   ;;  %v933_v7 = vadd.f32 %v4739_v17, %v4668_v2 }
 0x215   :  { %1119 = vperm.xlu0 %3852, %v953_v29   ;;  %v948_v46 = vmax.f32 %v884_v53, 0.0  ;;  %v937_v53 = vadd.f32 %v4739_v17, %v4728_v61 }
 0x216   :  { %v997_v22 = vmax.f32 %v933_v7, 0.0 }
 0x218   :  { %v4809_v11 = vpop.xlane.xlu1 %1641  ;;  %v4811_v38 = vpop.xlane.xlu0 %1638  ;;  %1294 = vperm.xlu1 %3856, %v988_v23   ;;  %v949_v23 = vmax.f32 %v885_v34, 0.0  ;;  %v895_v34 = vadd.f32 %v4739_v17, %v4724_v40  ;;  %v887_v40 = vadd.f32 %v4739_v17, %v4596_v63  ;;  %v939_v63 = vadd.f32 %v4739_v17, %v4759_v31 }
 0x219   :  { %6574 = vst [vmem:[#allocation81_spill] sm:$0xff] %v4809_v11  ;;  %1329 = vperm.xlu0 %3852, %v995_v55   ;;  %v888_v31 = vadd.f32 %v4739_v17, %v4630_v8 }
 0x21a   :  { %v959_v13 = vmax.f32 %v895_v34, 0.0  ;;  %v951_v61 = vmax.f32 %v887_v40, 0.0  ;;  %v899_v40 = vadd.f32 %v4739_v17, %v4783_v24 }
 0x21b   :  { %v952_v24 = vmax.f32 %v888_v31, 0.0 }
 0x21c   :  { %v4817_v29 = vpop.xlane.xlu1 %745  ;;  %v4819_v27 = vpop.xlane.xlu0 %742  ;;  %3857 = vset.pattern.permute.xlu1 %v6573_v52 }
 0x21d   :  { %1854 = vperm.xlu1 %3857, %v1715_v57   ;;  %1129 = vperm.xlu0 %3852, %v955_v33   ;;  %v935_v33 = vadd.f32 %v4739_v17, %v4700_v39  ;;  %v1653_v39 = vadd.f32 %v4739_v17, %v4582_v5  ;;  %v897_v5 = vadd.f32 %v4739_v17, %v4751_v25 }
 0x21f   :  { %v999_v18 = vmax.f32 %v935_v33, 0.0  ;;  %v1717_v33 = vmax.f32 %v1653_v39, 0.0  ;;  %v961_v39 = vmax.f32 %v897_v5, 0.0 }
 0x220   :  { %v4826_v2 = vpop.xlane.xlu1 %871  ;;  %v4828_v55 = vpop.xlane.xlu0 %868 }
 0x221   :  { %3858 = vset.pattern.permute.xlu1 %v6570_v49  ;;  %1339 = vperm.xlu0 %3852, %v997_v22   ;;  %v990_v22 = vmax.f32 %v926_v14, 0.0  ;;  %v1001_v14 = vmax.f32 %v937_v53, 0.0 }
 0x222   :  { %1099 = vperm.xlu1 %3858, %v949_v23  }
 0x224   :  { %v4835_v57 = vpop.xlane.xlu1 %1521  ;;  %v4837_v7 = vpop.xlane.xlu0 %1518 }
 0x225   :  { %1139 = vperm.xlu0 %3852, %v957_v58  }
 0x226   :  { %1094 = vperm.xlu1 %3858, %v948_v46  }
 0x228   :  { %v4841_v23 = vpop.xlane.xlu1 %1647  ;;  %v4843_v41 = vpop.xlane.xlu0 %1644 }
 0x229   :  { %6575 = vst [vmem:[#allocation82_spill] sm:$0xff] %v4841_v23  ;;  %1349 = vperm.xlu0 %3852, %v999_v18  }
 0x22a   :  { %1304 = vperm.xlu1 %3858, %v990_v22   ;;  %v886_v22 = vadd.f32 %v4739_v17, %v4598_v30 }
 0x22c   :  { %v752_v58 = vpop.xlane.xlu1 %751  ;;  %v4849_v46 = vpop.xlane.xlu0 %748  ;;  %v950_v25 = vmax.f32 %v886_v22, 0.0  ;;  %v941_v22 = vadd.f32 %v4739_v17, %v4792_v9 }
 0x22d   :  { %1149 = vperm.xlu0 %3852, %v959_v13  }
 0x22e   :  { %3859 = vset.pattern.permute.xlu1 %v6573_v52  ;;  %v1005_v23 = vmax.f32 %v941_v22, 0.0 }
 0x22f   :  { %1864 = vperm.xlu1 %3859, %v1717_v33   ;;  %v928_v33 = vadd.f32 %v4739_v17, %v4606_v35 }
 0x230   :  { %v4856_v18 = vpop.xlane.xlu1 %1527  ;;  %v4858_v34 = vpop.xlane.xlu0 %1524 }
 0x231   :  { %1359 = vperm.xlu0 %3852, %v1001_v14   ;;  %v1003_v14 = vmax.f32 %v939_v63, 0.0  ;;  %v930_v63 = vadd.f32 %v4739_v17, %v4638_v6 }
 0x233   :  { %3860 = vset.pattern.permute.xlu1 %v6570_v49  ;;  %v992_v49 = vmax.f32 %v928_v33, 0.0  ;;  %v994_v9 = vmax.f32 %v930_v63, 0.0 }
 0x234   :  { %v758_v13 = vpop.xlane.xlu1 %757  ;;  %v4865_v53 = vpop.xlane.xlu0 %754  ;;  %1109 = vperm.xlu1 %3860, %v951_v61   ;;  %v963_v61 = vmax.f32 %v899_v40, 0.0 }
 0x235   :  { %1159 = vperm.xlu0 %3852, %v961_v39  }
 0x238   :  { %v4871_v30 = vpop.xlane.xlu1 %1533  ;;  %v4873_v5 = vpop.xlane.xlu0 %1530  ;;  %1104 = vperm.xlu1 %3860, %v950_v25   ;;  %v901_v25 = vadd.f32 %v4739_v17, %v4817_v29 }
 0x239   :  { %1369 = vperm.xlu0 %3852, %v1003_v14   ;;  %v890_v14 = vadd.f32 %v4739_v17, %v4662_v45 }
 0x23a   :  { %v965_v40 = vmax.f32 %v901_v25, 0.0 }
 0x23b   :  { %v954_v29 = vmax.f32 %v890_v14, 0.0 }
 0x23c   :  { %v764_v39 = vpop.xlane.xlu1 %763  ;;  %v4879_v35 = vpop.xlane.xlu0 %760  ;;  %1314 = vperm.xlu1 %3860, %v992_v49   ;;  %v943_v49 = vadd.f32 %v4739_v17, %v4826_v2  ;;  %v892_v2 = vadd.f32 %v4739_v17, %v4694_v1 }
 0x23d   :  { %1169 = vperm.xlu0 %3852, %v963_v61   ;;  %v932_v61 = vadd.f32 %v4739_v17, %v4670_v60 }
 0x23e   :  { %v1007_v22 = vmax.f32 %v943_v49, 0.0  ;;  %v956_v60 = vmax.f32 %v892_v2, 0.0 }
 0x23f   :  { %v996_v45 = vmax.f32 %v932_v61, 0.0 }
 0x240   :  { %v4885_v33 = vpop.xlane.xlu1 %1539  ;;  %v4887_v8 = vpop.xlane.xlu0 %1536  ;;  %1114 = vperm.xlu1 %3860, %v952_v24  }
 0x241   :  { %1379 = vperm.xlu0 %3852, %v1005_v23   ;;  %v903_v23 = vadd.f32 %v4739_v17, %v752_v58  ;;  %v934_v58 = vadd.f32 %v4739_v17, %v4702_v0 }
 0x243   :  { %v967_v25 = vmax.f32 %v903_v23, 0.0  ;;  %v998_v1 = vmax.f32 %v934_v58, 0.0 }
 0x244   :  { %v770_v31 = vpop.xlane.xlu1 %769  ;;  %v4893_v6 = vpop.xlane.xlu0 %766  ;;  %1324 = vperm.xlu1 %3860, %v994_v9   ;;  %v905_v9 = vadd.f32 %v4739_v17, %v758_v13  ;;  %v894_v13 = vadd.f32 %v4739_v17, %v4726_v47 }
 0x245   :  { %1179 = vperm.xlu0 %3852, %v965_v40  }
 0x246   :  { %v969_v49 = vmax.f32 %v905_v9, 0.0  ;;  %v958_v0 = vmax.f32 %v894_v13, 0.0 }
 0x248   :  { %v4898_v24 = vpop.xlane.xlu1 %1545  ;;  %v4900_v63 = vpop.xlane.xlu0 %1542  ;;  %1124 = vperm.xlu1 %3860, %v954_v29   ;;  %v907_v29 = vadd.f32 %v4739_v17, %v764_v39  ;;  %v936_v39 = vadd.f32 %v4739_v17, %v4730_v42 }
 0x249   :  { %1389 = vperm.xlu0 %3852, %v1007_v22  }
 0x24a   :  { %v971_v23 = vmax.f32 %v907_v29, 0.0  ;;  %v1000_v47 = vmax.f32 %v936_v39, 0.0 }
 0x24c   :  { %v776_v14 = vpop.xlane.xlu1 %775  ;;  %v4905_v40 = vpop.xlane.xlu0 %772  ;;  %1334 = vperm.xlu1 %3860, %v996_v45   ;;  %v909_v45 = vadd.f32 %v4739_v17, %v770_v31  ;;  %v896_v31 = vadd.f32 %v4739_v17, %v4753_v50 }
 0x24d   :  { %1189 = vperm.xlu0 %3852, %v967_v25  }
 0x24e   :  { %v973_v9 = vmax.f32 %v909_v45, 0.0  ;;  %v960_v42 = vmax.f32 %v896_v31, 0.0 }
 0x250   :  { %v4910_v22 = vpop.xlane.xlu1 %1551  ;;  %v4912_v61 = vpop.xlane.xlu0 %1548  ;;  %1134 = vperm.xlu1 %3860, %v956_v60   ;;  %v911_v60 = vadd.f32 %v4739_v17, %v776_v14  ;;  %v938_v14 = vadd.f32 %v4739_v17, %v4761_v54 }
 0x251   :  { %1199 = vperm.xlu0 %3852, %v969_v49  }
 0x252   :  { %v975_v29 = vmax.f32 %v911_v60, 0.0  ;;  %v1002_v50 = vmax.f32 %v938_v14, 0.0 }
 0x254   :  { %v782_v2 = vpop.xlane.xlu1 %781  ;;  %v4917_v25 = vpop.xlane.xlu0 %778  ;;  %1344 = vperm.xlu1 %3860, %v998_v1  }
 0x255   :  { %1209 = vperm.xlu0 %3852, %v971_v23   ;;  %v913_v1 = vadd.f32 %v4739_v17, %v782_v2  ;;  %v898_v2 = vadd.f32 %v4739_v17, %v4785_v56  ;;  %v900_v56 = vadd.f32 %v4739_v17, %v4819_v27  ;;  %v902_v27 = vadd.f32 %v4739_v17, %v4849_v46 }
 0x257   :  { %v977_v45 = vmax.f32 %v913_v1, 0.0  ;;  %v962_v54 = vmax.f32 %v898_v2, 0.0  ;;  %v940_v1 = vadd.f32 %v4739_v17, %v4794_v44  ;;  %v964_v2 = vmax.f32 %v900_v56, 0.0 }
 0x258   :  { %v4922_v49 = vpop.xlane.xlu1 %1557  ;;  %v4924_v58 = vpop.xlane.xlu0 %1554  ;;  %1144 = vperm.xlu1 %3860, %v958_v0   ;;  %v942_v44 = vadd.f32 %v4739_v17, %v4828_v55  ;;  %v904_v56 = vadd.f32 %v4739_v17, %v4865_v53  ;;  %v908_v53 = vadd.f32 %v4739_v17, %v4893_v6 }
 0x259   :  { %1219 = vperm.xlu0 %3852, %v973_v9   ;;  %v1004_v14 = vmax.f32 %v940_v1, 0.0 }
 0x25c   :  { %v788_v13 = vpop.xlane.xlu1 %787  ;;  %v4929_v23 = vpop.xlane.xlu0 %784  ;;  %1354 = vperm.xlu1 %3860, %v1000_v47  }
 0x25d   :  { %1229 = vperm.xlu0 %3852, %v975_v29   ;;  %v915_v0 = vadd.f32 %v4739_v17, %v788_v13 }
 0x25f   :  { %v979_v60 = vmax.f32 %v915_v0, 0.0 }
 0x260   :  { %v4934_v9 = vpop.xlane.xlu1 %1563  ;;  %v4936_v39 = vpop.xlane.xlu0 %1560  ;;  %1154 = vperm.xlu1 %3860, %v960_v42  }
 0x261   :  { %1239 = vperm.xlu0 %3852, %v977_v45  }
 0x264   :  { %v794_v47 = vpop.xlane.xlu1 %793  ;;  %v791_v29 = vpop.xlane.xlu0 %790  ;;  %1364 = vperm.xlu1 %3860, %v1002_v50  }
 0x265   :  { %v917_v31 = vadd.f32 %v4739_v17, %v794_v47  ;;  %1249 = vperm.xlu0 %3852, %v979_v60  }
 0x267   :  { %v981_v13 = vmax.f32 %v917_v31, 0.0 }
 0x268   :  { %v4943_v11 = vpop.xlane.xlu1 %1569  ;;  %v4945_v42 = vpop.xlane.xlu0 %1566  ;;  %1164 = vperm.xlu1 %3860, %v962_v54   ;;  %v1006_v54 = vmax.f32 %v942_v44, 0.0  ;;  %v906_v44 = vadd.f32 %v4739_v17, %v4879_v35  ;;  %v910_v35 = vadd.f32 %v4739_v17, %v4905_v40 }
 0x269   :  { %6576 = vst [vmem:[#allocation83_spill] sm:$0xff] %v4945_v42  ;;  %1259 = vperm.xlu0 %3852, %v981_v13  }
 0x26c   :  { %v800_v45 = vpop.xlane.xlu1 %799  ;;  %v797_v0 = vpop.xlane.xlu0 %796  ;;  %1374 = vperm.xlu1 %3860, %v1004_v14   ;;  %v966_v14 = vmax.f32 %v902_v27, 0.0 }
 0x26d   :  { %v919_v50 = vadd.f32 %v4739_v17, %v800_v45 }
 0x26f   :  { %v983_v60 = vmax.f32 %v919_v50, 0.0 }
 0x270   :  { %v4952_v47 = vpop.xlane.xlu1 %1575  ;;  %v4954_v31 = vpop.xlane.xlu0 %1572  ;;  %1174 = vperm.xlu1 %3860, %v964_v2   ;;  %v968_v2 = vmax.f32 %v904_v56, 0.0 }
 0x271   :  { %6577 = vst [vmem:[#allocation84_spill] sm:$0xff] %v4954_v31  ;;  %1269 = vperm.xlu0 %3852, %v983_v60   ;;  %v6682_v31 = vld [vmem:[#allocation76_spill] sm:$0xff] }
 0x274   :  { %1384 = vperm.xlu1 %3860, %v1006_v54   ;;  %v806_v1 = vpop.xlane.xlu1 %805  ;;  %v803_v55 = vpop.xlane.xlu0 %802  ;;  %v970_v54 = vmax.f32 %v906_v44, 0.0 }
 0x275   :  { %v921_v13 = vadd.f32 %v4739_v17, %v806_v1 }
 0x277   :  { %v985_v45 = vmax.f32 %v921_v13, 0.0  ;;  %v972_v13 = vmax.f32 %v908_v53, 0.0  ;;  %v914_v53 = vadd.f32 %v4739_v17, %v4929_v23  ;;  %v920_v23 = vadd.f32 %v4739_v17, %v803_v55 }
 0x278   :  { %1184 = vperm.xlu1 %3860, %v966_v14   ;;  %v4961_v50 = vpop.xlane.xlu1 %1581  ;;  %v4965_v60 = vpop.xlane.xlu0 %1578 }
 0x279   :  { %1279 = vperm.xlu0 %3852, %v985_v45   ;;  %6578 = vst [vmem:[#allocation85_spill] sm:$0xff] %v4965_v60  ;;  %v974_v45 = vmax.f32 %v910_v35, 0.0  ;;  %v978_v40 = vmax.f32 %v914_v53, 0.0  ;;  %v984_v53 = vmax.f32 %v920_v23, 0.0 }
 0x27c   :  { %1194 = vperm.xlu1 %3860, %v968_v2   ;;  %v4967_v46 = vpop.permute.xlu1 %1079  ;;  %v912_v2 = vadd.f32 %v4739_v17, %v4917_v25  ;;  %v918_v25 = vadd.f32 %v4739_v17, %v797_v0  ;;  %v1654_v0 = vadd.f32 %v4739_v17, %v4580_v20 }
 0x27d   :  { %3862 = vset.pattern.permute.xlu0 %v6573_v52 }
 0x27e   :  { %v1718_v55 = vmax.f32 %v1654_v0, 0.0 }
 0x280   :  { %1204 = vperm.xlu1 %3860, %v970_v54   ;;  %v4972_v27 = vpop.permute.xlu1 %1849  ;;  %v4974_v1 = vpop.permute.xlu0 %1289  ;;  %v976_v54 = vmax.f32 %v912_v2, 0.0  ;;  %v982_v2 = vmax.f32 %v918_v25, 0.0  ;;  %v1655_v25 = vadd.f32 %v4739_v17, %v4614_v12 }
 0x281   :  { %6579 = vst [vmem:[#allocation86_spill] sm:$0xff] %v4974_v1 }
 0x282   :  { %v1719_v23 = vmax.f32 %v1655_v25, 0.0  ;;  %v2351_v25 = vsel %vm2290_vm4, %v4354_v19, -inf }
 0x284   :  { %1214 = vperm.xlu1 %3860, %v972_v13   ;;  %v4978_v14 = vpop.permute.xlu0 %1074  ;;  %v916_v13 = vadd.f32 %v4739_v17, %v791_v29  ;;  %v2339_v29 = vsel %vm2290_vm4, %v4330_v4, -inf  ;;  %v2294_v4 = vsel %vm2290_vm4, %v4226_v16, -inf }
 0x285   :  { %v4980_v56 = vpop.permute.xlu1 %1284 }
 0x286   :  { %6580 = vst [vmem:[#allocation87_spill] sm:$0xff] %v4980_v56  ;;  %v980_v35 = vmax.f32 %v916_v13, 0.0  ;;  %v2291_v13 = vsel %vm2290_vm4, %v4236_v21, -inf  ;;  %v1656_v21 = vadd.f32 %v4739_v17, %v4612_v48 }
 0x288   :  { %1224 = vperm.xlu1 %3860, %v974_v45   ;;  %v4984_v6 = vpop.permute.xlu0 %1299  ;;  %v1720_v16 = vmax.f32 %v1656_v21, 0.0 }
 0x289   :  { %6581 = vst [vmem:[#allocation88_spill] sm:$0xff] %v4984_v6  ;;  %v4986_v44 = vpop.permute.xlu1 %1089 }
 0x28c   :  { %1234 = vperm.xlu1 %3860, %v976_v54   ;;  %v4993_v56 = vpop.permute.xlu0 %1309 }
 0x28d   :  { %6582 = vst [vmem:[#allocation89_spill] sm:$0xff] %v4993_v56 }
 0x28e   :  { %v4991_v1 = vpop.permute.xlu1 %1859 }
 0x290   :  { %1244 = vperm.xlu1 %3860, %v978_v40   ;;  %v4998_v6 = vpop.permute.xlu0 %1319 }
 0x291   :  { %6583 = vst [vmem:[#allocation90_spill] sm:$0xff] %v4998_v6  ;;  %v6634_v6 = vld [vmem:[#allocation55_spill] sm:$0xff] }
 0x293   :  { %v4996_v45 = vpop.permute.xlu1 %1084 }
 0x294   :  { %1254 = vperm.xlu1 %3860, %v980_v35   ;;  %v5007_v40 = vpop.permute.xlu0 %1119 }
 0x295   :  { %6585 = vst [vmem:[#allocation92_spill] sm:$0xff] %v5007_v40  ;;  %v6679_v40 = vld [vmem:[#allocation73_spill] sm:$0xff] }
 0x297   :  { %v5001_v54 = vpop.permute.xlu1 %1294 }
 0x298   :  { %6584 = vst [vmem:[#allocation91_spill] sm:$0xff] %v5001_v54  ;;  %1264 = vperm.xlu1 %3860, %v982_v2   ;;  %2340 = vmax.xlane.f32.xlu0 %v2339_v29  ;;  %v5018_v20 = vpop.permute.xlu0 %1329  ;;  %v2345_v29 = vsel %vm2290_vm4, %v4342_v10, -inf  ;;  %v1659_v10 = vadd.f32 %v4739_v17, %v4678_v15  ;;  %v1663_v15 = vadd.f32 %v4739_v17, %v4734_v62 }
 0x299   :  { %6586 = vst [vmem:[#allocation93_spill] sm:$0xff] %v5018_v20 }
 0x29a   :  { %v1723_v21 = vmax.f32 %v1659_v10, 0.0 }
 0x29c   :  { %v5011_v35 = vpop.permute.xlu1 %1854  ;;  %2292 = vmax.xlane.f32.xlu0 %v2291_v13  ;;  %1274 = vperm.xlu1 %3860, %v984_v53   ;;  %v1657_v53 = vadd.f32 %v4739_v17, %v4646_v51  ;;  %v5030_v0 = vpop.permute.xlu0 %1129  ;;  %v2297_v13 = vsel %vm2290_vm4, %v4246_v26, -inf  ;;  %v1661_v26 = vadd.f32 %v4739_v17, %v4710_v43  ;;  %v1665_v43 = vadd.f32 %v4739_v17, %v4770_v28 }
 0x29d   :  { %6588 = vst [vmem:[#allocation95_spill] sm:$0xff] %v5030_v0 }
 0x29e   :  { %v1721_v48 = vmax.f32 %v1657_v53, 0.0  ;;  %v2357_v53 = vsel %vm2290_vm4, %v4368_v37, -inf }
 0x2a0   :  { %2295 = vmax.xlane.f32.xlu0 %v2294_v4  ;;  %3861 = vset.pattern.permute.xlu1 %v6573_v52  ;;  %v5040_v4 = vpop.permute.xlu0 %1339 }
 0x2a1   :  { %v5020_v2 = vpop.permute.xlu1 %1099  ;;  %1869 = vperm.xlu1 %3861, %v1718_v55   ;;  %6590 = vst [vmem:[#allocation97_spill] sm:$0xff] %v5040_v4 }
 0x2a4   :  { %2346 = vmax.xlane.f32.xlu0 %v2345_v29  ;;  %v1725_v29 = vmax.f32 %v1661_v26, 0.0  ;;  %v5050_v19 = vpop.permute.xlu0 %1139  ;;  %v6597_v26 = vld [vmem:[#allocation41_spill] sm:$0xff] }
 0x2a5   :  { %v5026_v12 = vpop.permute.xlu1 %1094  ;;  %1874 = vperm.xlu1 %3861, %v1719_v23   ;;  %v2303_v23 = vsel %vm2290_vm4, %v4258_v32, -inf  ;;  %6591 = vst [vmem:[#allocation98_spill] sm:$0xff] %v5050_v19  ;;  %v6648_v19 = vld [vmem:[#allocation3_spill] sm:$0xff] }
 0x2a6   :  { %6587 = vst [vmem:[#allocation94_spill] sm:$0xff] %v5026_v12 }
 0x2a8   :  { %2298 = vmax.xlane.f32.xlu0 %v2297_v13  ;;  %v1727_v13 = vmax.f32 %v1663_v15, 0.0  ;;  %v5062_v62 = vpop.permute.xlu0 %1349 }
 0x2a9   :  { %v5034_v55 = vpop.permute.xlu1 %1304  ;;  %1879 = vperm.xlu1 %3861, %v1720_v16  }
 0x2aa   :  { %6589 = vst [vmem:[#allocation96_spill] sm:$0xff] %v5034_v55 }
 0x2ac   :  { %2352 = vmax.xlane.f32.xlu0 %v2351_v25  ;;  %v1729_v25 = vmax.f32 %v1665_v43, 0.0  ;;  %v5072_v15 = vpop.permute.xlu0 %1149 }
 0x2ad   :  { %1884 = vperm.xlu1 %3861, %v1721_v48   ;;  %v6594_v48 = vld [vmem:[#allocation12_spill] sm:$0xff]  ;;  %6598 = vst [vmem:[#allocation41_spill] sm:$0xff] %v5072_v15 }
 0x2ae   :  { %v5042_v51 = vpop.permute.xlu1 %1864  ;;  %v2309_v10 = vsel %vm2290_vm4, %v6594_v48, -inf  ;;  %6595 = vst [vmem:[#allocation12_spill] sm:$0xff] %v5062_v62 }
 0x2b0   :  { %2304 = vmax.xlane.f32.xlu0 %v2303_v23  ;;  %v2363_v23 = vsel %vm2290_vm4, %v6597_v26, -inf }
 0x2b1   :  { %1894 = vperm.xlu1 %3861, %v1723_v21   ;;  %v1667_v21 = vadd.f32 %v4739_v17, %v4803_v3 }
 0x2b3   :  { %v5052_v16 = vpop.permute.xlu1 %1109  ;;  %v1731_v28 = vmax.f32 %v1667_v21, 0.0  ;;  %v6605_v21 = vld [vmem:[#allocation20_spill] sm:$0xff] }
 0x2b4   :  { %6592 = vst [vmem:[#allocation99_spill] sm:$0xff] %v5052_v16  ;;  %2358 = vmax.xlane.f32.xlu0 %v2357_v53 }
 0x2b5   :  { %1904 = vperm.xlu1 %3861, %v1725_v29   ;;  %v1669_v29 = vadd.f32 %v4739_v17, %v4837_v7 }
 0x2b7   :  { %v5058_v32 = vpop.permute.xlu1 %1104  ;;  %v1733_v3 = vmax.f32 %v1669_v29, 0.0 }
 0x2b8   :  { %6593 = vst [vmem:[#allocation100_spill] sm:$0xff] %v5058_v32  ;;  %2310 = vmax.xlane.f32.xlu0 %v2309_v10  ;;  %v6602_v10 = vld [vmem:[#allocation43_spill] sm:$0xff]  ;;  %v6695_v32 = vld [vmem:[#allocation34_spill] sm:$0xff] }
 0x2b9   :  { %1914 = vperm.xlu1 %3861, %v1727_v13   ;;  %v6600_v13 = vld [vmem:[#allocation16_spill] sm:$0xff]  ;;  %v2369_v26 = vsel %vm2290_vm4, %v6602_v10, -inf }
 0x2ba   :  { %v2315_v43 = vsel %vm2290_vm4, %v6600_v13, -inf  ;;  %v6609_v10 = vld [vmem:[#allocation24_spill] sm:$0xff] }
 0x2bb   :  { %v5066_v37 = vpop.permute.xlu1 %1314 }
 0x2bc   :  { %6596 = vst [vmem:[#allocation101_spill] sm:$0xff] %v5066_v37  ;;  %2364 = vmax.xlane.f32.xlu0 %v2363_v23  ;;  %v2321_v23 = vsel %vm2290_vm4, %v6605_v21, -inf  ;;  %v6612_v21 = vld [vmem:[#allocation47_spill] sm:$0xff]  ;;  %v6628_v37 = vld [vmem:[#allocation53_spill] sm:$0xff] }
 0x2bd   :  { %1924 = vperm.xlu1 %3861, %v1729_v25   ;;  %v5082_v25 = vpop.permute.xlu0 %1359 }
 0x2be   :  { %6603 = vst [vmem:[#allocation43_spill] sm:$0xff] %v5082_v25 }
 0x2bf   :  { %v5074_v53 = vpop.permute.xlu1 %1114 }
 0x2c0   :  { %6599 = vst [vmem:[#allocation102_spill] sm:$0xff] %v5074_v53  ;;  %2316 = vmax.xlane.f32.xlu0 %v2315_v43  ;;  %v6678_v53 = vld [vmem:[#allocation50_spill] sm:$0xff] }
 0x2c1   :  { %1934 = vperm.xlu1 %3861, %v1731_v28   ;;  %v5088_v55 = vpop.permute.xlu0 %1159  ;;  %v6607_v28 = vld [vmem:[#allocation45_spill] sm:$0xff] }
 0x2c2   :  { %v2375_v29 = vsel %vm2290_vm4, %v6607_v28, -inf  ;;  %v6614_v28 = vld [vmem:[#allocation28_spill] sm:$0xff] }
 0x2c3   :  { %v5078_v48 = vpop.permute.xlu1 %1324 }
 0x2c4   :  { %6601 = vst [vmem:[#allocation16_spill] sm:$0xff] %v5078_v48  ;;  %2370 = vmax.xlane.f32.xlu0 %v2369_v26  ;;  %v2327_v26 = vsel %vm2290_vm4, %v6609_v10, -inf  ;;  %v6616_v10 = vld [vmem:[#allocation13_spill] sm:$0xff] }
 0x2c5   :  { %1944 = vperm.xlu1 %3861, %v1733_v3   ;;  %v5098_v3 = vpop.permute.xlu0 %1369 }
 0x2c6   :  { %6610 = vst [vmem:[#allocation24_spill] sm:$0xff] %v5098_v3 }
 0x2c7   :  { %v5084_v7 = vpop.permute.xlu1 %1124 }
 0x2c8   :  { %6604 = vst [vmem:[#allocation103_spill] sm:$0xff] %v5084_v7  ;;  %2322 = vmax.xlane.f32.xlu0 %v2321_v23  ;;  %v2381_v23 = vsel %vm2290_vm4, %v6612_v21, -inf  ;;  %v6618_v21 = vld [vmem:[#allocation49_spill] sm:$0xff]  ;;  %v6658_v7 = vld [vmem:[#allocation38_spill] sm:$0xff] }
 0x2c9   :  { %v5104_v54 = vpop.permute.xlu0 %1169 }
 0x2cb   :  { %v5090_v13 = vpop.permute.xlu1 %1334 }
 0x2cc   :  { %6606 = vst [vmem:[#allocation20_spill] sm:$0xff] %v5090_v13  ;;  %2376 = vmax.xlane.f32.xlu0 %v2375_v29  ;;  %v2333_v29 = vsel %vm2290_vm4, %v6614_v28, -inf  ;;  %v6620_v28 = vld [vmem:[#allocation17_spill] sm:$0xff] }
 0x2cd   :  { %v5114_v3 = vpop.permute.xlu0 %1379 }
 0x2ce   :  { %6617 = vst [vmem:[#allocation13_spill] sm:$0xff] %v5114_v3  ;;  %v6622_v3 = vld [vmem:[#allocation30_spill] sm:$0xff] }
 0x2cf   :  { %v5094_v43 = vpop.permute.xlu1 %1134  ;;  %v2342_v48 = vsel %vm2290_vm4, %v6622_v3, -inf  ;;  %v6629_v3 = vld [vmem:[#allocation4_spill] sm:$0xff] }
 0x2d0   :  { %6608 = vst [vmem:[#allocation45_spill] sm:$0xff] %v5094_v43  ;;  %2328 = vmax.xlane.f32.xlu0 %v2327_v26  ;;  %v2435_v26 = vsel %vm2290_vm4, %v6616_v10, -inf }
 0x2d1   :  { %v5120_v13 = vpop.permute.xlu0 %1179 }
 0x2d3   :  { %v5100_v56 = vpop.permute.xlu1 %1344 }
 0x2d4   :  { %6611 = vst [vmem:[#allocation104_spill] sm:$0xff] %v5100_v56  ;;  %2382 = vmax.xlane.f32.xlu0 %v2381_v23  ;;  %v2387_v23 = vsel %vm2290_vm4, %v6618_v21, -inf  ;;  %v6624_v21 = vld [vmem:[#allocation21_spill] sm:$0xff] }
 0x2d5   :  { %v5132_v20 = vpop.permute.xlu0 %1389 }
 0x2d6   :  { %6623 = vst [vmem:[#allocation17_spill] sm:$0xff] %v5132_v20  ;;  %v2300_v20 = vsel %vm2290_vm4, %v6629_v3, -inf }
 0x2d7   :  { %v5106_v25 = vpop.permute.xlu1 %1144 }
 0x2d8   :  { %6613 = vst [vmem:[#allocation47_spill] sm:$0xff] %v5106_v25  ;;  %2334 = vmax.xlane.f32.xlu0 %v2333_v29  ;;  %v2441_v29 = vsel %vm2290_vm4, %v6620_v28, -inf  ;;  %v6638_v25 = vld [vmem:[#allocation29_spill] sm:$0xff] }
 0x2db   :  { %v5110_v62 = vpop.permute.xlu1 %1354 }
 0x2dc   :  { %6615 = vst [vmem:[#allocation28_spill] sm:$0xff] %v5110_v62  ;;  %2436 = vmax.xlane.f32.xlu0 %v2435_v26  ;;  %v6621_v62 = vld [vmem:[#allocation51_spill] sm:$0xff] }
 0x2dd   :  { %v2393_v10 = vsel %vm2290_vm4, %v6621_v62, -inf  ;;  %v5140_v62 = vpop.permute.xlu0 %1189 }
 0x2de   :  { %6627 = vst [vmem:[#allocation30_spill] sm:$0xff] %v5140_v62 }
 0x2df   :  { %v5116_v56 = vpop.permute.xlu1 %1154 }
 0x2e0   :  { %2388 = vmax.xlane.f32.xlu0 %v2387_v23  ;;  %v2447_v23 = vsel %vm2290_vm4, %v6624_v21, -inf }
 0x2e3   :  { %v5122_v4 = vpop.permute.xlu1 %1364 }
 0x2e4   :  { %6619 = vst [vmem:[#allocation49_spill] sm:$0xff] %v5122_v4  ;;  %2442 = vmax.xlane.f32.xlu0 %v2441_v29  ;;  %v6625_v4 = vld [vmem:[#allocation33_spill] sm:$0xff] }
 0x2e5   :  { %v2348_v28 = vsel %vm2290_vm4, %v6625_v4, -inf  ;;  %v6632_v4 = vld [vmem:[#allocation36_spill] sm:$0xff] }
 0x2e7   :  { %v5128_v26 = vpop.permute.xlu1 %1164 }
 0x2e8   :  { %2394 = vmax.xlane.f32.xlu0 %v2393_v10  ;;  %v2399_v10 = vsel %vm2290_vm4, %v6628_v37, -inf  ;;  %v2405_v37 = vsel %vm2290_vm4, %v6634_v6, -inf  ;;  %v6640_v6 = vld [vmem:[#allocation57_spill] sm:$0xff] }
 0x2e9   :  { %2343 = vmax.xlane.f32.xlu1 %v2342_v48  ;;  %v6630_v48 = vld [vmem:[#allocation25_spill] sm:$0xff] }
 0x2ea   :  { %v2453_v21 = vsel %vm2290_vm4, %v6630_v48, -inf }
 0x2eb   :  { %v5138_v29 = vpop.permute.xlu1 %1374 }
 0x2ec   :  { %2448 = vmax.xlane.f32.xlu0 %v2447_v23  ;;  %6626 = vst [vmem:[#allocation51_spill] sm:$0xff] %v5138_v29  ;;  %v5152_v29 = vpop.permute.xlu0 %1199 }
 0x2ed   :  { %2349 = vmax.xlane.f32.xlu1 %v2348_v28  ;;  %v2354_v28 = vsel %vm2290_vm4, %v6632_v4, -inf  ;;  %6633 = vst [vmem:[#allocation33_spill] sm:$0xff] %v5152_v29  ;;  %v6639_v4 = vld [vmem:[#allocation39_spill] sm:$0xff]  ;;  %v6690_v29 = vld [vmem:[#allocation56_spill] sm:$0xff] }
 0x2ee   :  { %v2360_v15 = vsel %vm2290_vm4, %v6639_v4, -inf  ;;  %v6645_v4 = vld [vmem:[#allocation40_spill] sm:$0xff] }
 0x2ef   :  { %v5148_v23 = vpop.permute.xlu1 %1174 }
 0x2f0   :  { %2400 = vmax.xlane.f32.xlu0 %v2399_v10  ;;  %6631 = vst [vmem:[#allocation21_spill] sm:$0xff] %v5148_v23  ;;  %v6635_v10 = vld [vmem:[#allocation7_spill] sm:$0xff]  ;;  %v5160_v48 = vpop.permute.xlu0 %1209 }
 0x2f1   :  { %2301 = vmax.xlane.f32.xlu1 %v2300_v20  ;;  %v2306_v3 = vsel %vm2290_vm4, %v6635_v10, -inf  ;;  %6637 = vst [vmem:[#allocation4_spill] sm:$0xff] %v5160_v48  ;;  %v6676_v48 = vld [vmem:[#allocation70_spill] sm:$0xff] }
 0x2f3   :  { %v5158_v20 = vpop.permute.xlu1 %1384 }
 0x2f4   :  { %2454 = vmax.xlane.f32.xlu0 %v2453_v21  ;;  %6636 = vst [vmem:[#allocation53_spill] sm:$0xff] %v5158_v20  ;;  %v2459_v21 = vsel %vm2290_vm4, %v6638_v25, -inf  ;;  %v5173_v43 = vpop.permute.xlu0 %1219  ;;  %v6644_v25 = vld [vmem:[#allocation32_spill] sm:$0xff] }
 0x2f5   :  { %2355 = vmax.xlane.f32.xlu1 %v2354_v28  ;;  %v6491_v28 = vmov 2   ;;  %6643 = vst [vmem:[#allocation36_spill] sm:$0xff] %v5173_v43 }
 0x2f6   :  { %3863 = vset.pattern.permute.xlu1 %v6491_v28  ;;  %v2366_v28 = vsel %vm2290_vm4, %v6645_v4, -inf  ;;  %v6652_v4 = vld [vmem:[#allocation42_spill] sm:$0xff] }
 0x2f7   :  { %v5169_v10 = vpop.permute.xlu1 %1184 }
 0x2f8   :  { %2406 = vmax.xlane.f32.xlu0 %v2405_v37  ;;  %v2411_v37 = vsel %vm2290_vm4, %v6640_v6, -inf  ;;  %6641 = vst [vmem:[#allocation25_spill] sm:$0xff] %v5169_v10  ;;  %v5181_v6 = vpop.permute.xlu0 %1229 }
 0x2f9   :  { %2307 = vmax.xlane.f32.xlu1 %v2306_v3  ;;  %v6642_v3 = vld [vmem:[#allocation10_spill] sm:$0xff]  ;;  %6647 = vst [vmem:[#allocation7_spill] sm:$0xff] %v5181_v6 }
 0x2fa   :  { %v2312_v20 = vsel %vm2290_vm4, %v6642_v3, -inf  ;;  %v6649_v3 = vld [vmem:[#allocation14_spill] sm:$0xff] }
 0x2fb   :  { %v2318_v43 = vsel %vm2290_vm4, %v6649_v3, -inf  ;;  %v6654_v6 = vld [vmem:[#allocation6_spill] sm:$0xff] }
 0x2fc   :  { %2460 = vmax.xlane.f32.xlu0 %v2459_v21  ;;  %v2465_v21 = vsel %vm2290_vm4, %v6644_v25, -inf  ;;  %v5193_v60 = vpop.permute.xlu0 %1239 }
 0x2fd   :  { %2361 = vmax.xlane.f32.xlu1 %v2360_v15  ;;  %v5179_v15 = vpop.permute.xlu1 %1194  ;;  %6653 = vst [vmem:[#allocation39_spill] sm:$0xff] %v5193_v60 }
 0x2fe   :  { %6646 = vst [vmem:[#allocation55_spill] sm:$0xff] %v5179_v15  ;;  %v6685_v15 = vld [vmem:[#allocation23_spill] sm:$0xff] }
 0x300   :  { %2412 = vmax.xlane.f32.xlu0 %v2411_v37  ;;  %v2417_v37 = vsel %vm2290_vm4, %v6648_v19, -inf  ;;  %v2423_v19 = vsel %vm2290_vm4, %v6654_v6, -inf }
 0x301   :  { %2313 = vmax.xlane.f32.xlu1 %v2312_v20  ;;  %v6650_v20 = vld [vmem:[#allocation35_spill] sm:$0xff] }
 0x302   :  { %v2471_v25 = vsel %vm2290_vm4, %v6650_v20, -inf  ;;  %v5201_v20 = vpop.permute.xlu0 %1249 }
 0x303   :  { %6657 = vst [vmem:[#allocation10_spill] sm:$0xff] %v5201_v20  ;;  %v6664_v20 = vld [vmem:[#allocation46_spill] sm:$0xff] }
 0x304   :  { %2466 = vmax.xlane.f32.xlu0 %v2465_v21  ;;  %v5189_v21 = vpop.permute.xlu1 %1204 }
 0x305   :  { %2367 = vmax.xlane.f32.xlu1 %v2366_v28  ;;  %6651 = vst [vmem:[#allocation29_spill] sm:$0xff] %v5189_v21  ;;  %v2372_v28 = vsel %vm2290_vm4, %v6652_v4, -inf  ;;  %v6659_v4 = vld [vmem:[#allocation44_spill] sm:$0xff]  ;;  %v6675_v21 = vld [vmem:[#allocation15_spill] sm:$0xff] }
 0x306   :  { %v2378_v60 = vsel %vm2290_vm4, %v6659_v4, -inf }
 0x308   :  { %2418 = vmax.xlane.f32.xlu0 %v2417_v37  ;;  %v6655_v37 = vld [vmem:[#allocation18_spill] sm:$0xff] }
 0x309   :  { %2319 = vmax.xlane.f32.xlu1 %v2318_v43  ;;  %v2324_v3 = vsel %vm2290_vm4, %v6655_v37, -inf  ;;  %v5199_v43 = vpop.permute.xlu1 %1214  ;;  %v6662_v37 = vld [vmem:[#allocation22_spill] sm:$0xff] }
 0x30a   :  { %6656 = vst [vmem:[#allocation57_spill] sm:$0xff] %v5199_v43  ;;  %v5213_v43 = vpop.permute.xlu0 %1259 }
 0x30b   :  { %6663 = vst [vmem:[#allocation40_spill] sm:$0xff] %v5213_v43 }
 0x30c   :  { %2472 = vmax.xlane.f32.xlu0 %v2471_v25  ;;  %v2477_v25 = vsel %vm2290_vm4, %v6658_v7, -inf  ;;  %v2384_v7 = vsel %vm2290_vm4, %v6664_v20, -inf  ;;  %v6671_v20 = vld [vmem:[#allocation59_spill] sm:$0xff] }
 0x30d   :  { %2373 = vmax.xlane.f32.xlu1 %v2372_v28  ;;  %v6660_v28 = vld [vmem:[#allocation9_spill] sm:$0xff] }
 0x30e   :  { %v2429_v6 = vsel %vm2290_vm4, %v6660_v28, -inf }
 0x310   :  { %2424 = vmax.xlane.f32.xlu0 %v2423_v19  ;;  %v5209_v19 = vpop.permute.xlu1 %1224 }
 0x311   :  { %2325 = vmax.xlane.f32.xlu1 %v2324_v3  ;;  %6661 = vst [vmem:[#allocation32_spill] sm:$0xff] %v5209_v19  ;;  %v2330_v3 = vsel %vm2290_vm4, %v6662_v37, -inf  ;;  %v6670_v37 = vld [vmem:[#allocation11_spill] sm:$0xff] }
 0x312   :  { %v2438_v43 = vsel %vm2290_vm4, %v6670_v37, -inf }
 0x314   :  { %2478 = vmax.xlane.f32.xlu0 %v2477_v25  ;;  %v5217_v25 = vpop.permute.xlu0 %1269  ;;  %v5219_v4 = vpop.permute.xlu1 %1234 }
 0x315   :  { %2379 = vmax.xlane.f32.xlu1 %v2378_v60  ;;  %6665 = vst [vmem:[#allocation3_spill] sm:$0xff] %v5217_v25  ;;  %6666 = vst [vmem:[#allocation14_spill] sm:$0xff] %v5219_v4  ;;  %v6667_v60 = vld [vmem:[#allocation26_spill] sm:$0xff]  ;;  %v1649_v25 = vadd.f32 %v4739_v17, %v6671_v20 }
 0x316   :  { %v2336_v28 = vsel %vm2290_vm4, %v6667_v60, -inf }
 0x318   :  { %2430 = vmax.xlane.f32.xlu0 %v2429_v6  ;;  %v5223_v0 = vpop.permute.xlu0 %1279  ;;  %v5225_v6 = vpop.permute.xlu1 %1244 }
 0x319   :  { %2331 = vmax.xlane.f32.xlu1 %v2330_v3  ;;  %6668 = vst [vmem:[#allocation35_spill] sm:$0xff] %v5223_v0  ;;  %6669 = vst [vmem:[#allocation42_spill] sm:$0xff] %v5225_v6  ;;  %v6674_v0 = vld [vmem:[#allocation67_spill] sm:$0xff] }
 0x31a   :  { %v1658_v6 = vadd.f32 %v4739_v17, %v6674_v0 }
 0x31c   :  { %v5237_v60 = vpop.permute.xlu1 %1254  ;;  %v1722_v20 = vmax.f32 %v1658_v6, 0.0 }
 0x31d   :  { %2385 = vmax.xlane.f32.xlu1 %v2384_v7  ;;  %v6672_v7 = vld [vmem:[#allocation48_spill] sm:$0xff]  ;;  %6673 = vst [vmem:[#allocation6_spill] sm:$0xff] %v5237_v60  ;;  %v2396_v60 = vsel %vm2290_vm4, %v6678_v53, -inf  ;;  %v1664_v53 = vadd.f32 %v4739_v17, %v6682_v31 }
 0x31e   :  { %v2390_v4 = vsel %vm2290_vm4, %v6672_v7, -inf  ;;  %v1660_v7 = vadd.f32 %v4739_v17, %v6676_v48 }
 0x320   :  { %v1724_v0 = vmax.f32 %v1660_v7, 0.0 }
 0x321   :  { %2337 = vmax.xlane.f32.xlu1 %v2336_v28  ;;  %v1713_v28 = vmax.f32 %v1649_v25, 0.0 }
 0x325   :  { %2439 = vmax.xlane.f32.xlu1 %v2438_v43  ;;  %v5229_v3 = vpop.xlane.xlu0 %2340  ;;  %v2444_v43 = vsel %vm2290_vm4, %v6675_v21, -inf  ;;  %v1662_v21 = vadd.f32 %v4739_v17, %v6679_v40  ;;  %v1728_v40 = vmax.f32 %v1664_v53, 0.0  ;;  %v6686_v53 = vld [vmem:[#allocation54_spill] sm:$0xff] }
 0x329   :  { %2391 = vmax.xlane.f32.xlu1 %v2390_v4  ;;  %v5235_v19 = vpop.xlane.xlu0 %2292  ;;  %v5247_v4 = vpop.permute.xlu1 %1264 }
 0x32a   :  { %6677 = vst [vmem:[#allocation18_spill] sm:$0xff] %v5247_v4  ;;  %v1726_v4 = vmax.f32 %v1662_v21, 0.0 }
 0x32d   :  { %2445 = vmax.xlane.f32.xlu1 %v2444_v43  ;;  %v5243_v37 = vpop.xlane.xlu0 %2295  ;;  %v6680_v43 = vld [vmem:[#allocation19_spill] sm:$0xff]  ;;  %v5259_v48 = vpop.permute.xlu1 %1274 }
 0x32e   :  { %1844 = vperm.xlu0 %3862, %v1713_v28   ;;  %v2450_v28 = vsel %vm2290_vm4, %v6680_v43, -inf  ;;  %6681 = vst [vmem:[#allocation38_spill] sm:$0xff] %v5259_v48  ;;  %v1666_v43 = vadd.f32 %v4739_v17, %v4768_v36  ;;  %v2408_v17 = vsel %vm2290_vm4, %v6686_v53, -inf }
 0x330   :  { %v1730_v31 = vmax.f32 %v1666_v43, 0.0  ;;  %v6688_v43 = vld [vmem:[#allocation27_spill] sm:$0xff] }
 0x331   :  { %2397 = vmax.xlane.f32.xlu1 %v2396_v60  ;;  %v5251_v25 = vpop.xlane.xlu0 %2346  ;;  %v6683_v60 = vld [vmem:[#allocation52_spill] sm:$0xff] }
 0x332   :  { %1889 = vperm.xlu0 %3862, %v1722_v20   ;;  %v2402_v20 = vsel %vm2290_vm4, %v6683_v60, -inf  ;;  %v5278_v60 = vld [vmem:[%s6426_s2] ss:$0 sm:$0xff] }
 0x333   :  { %v1673_v53 = vadd.f32 %v5278_v60, %v4873_v5 }
 0x335   :  { %2451 = vmax.xlane.f32.xlu1 %v2450_v28  ;;  %v5257_v6 = vpop.xlane.xlu0 %2298  ;;  %v5269_v28 = vpop.permute.xlu1 %1869 }
 0x336   :  { %1899 = vperm.xlu0 %3862, %v1724_v0   ;;  %6684 = vst [vmem:[#allocation44_spill] sm:$0xff] %v5269_v28  ;;  %v2456_v0 = vsel %vm2290_vm4, %v6685_v15, -inf }
 0x339   :  { %2403 = vmax.xlane.f32.xlu1 %v2402_v20  ;;  %v5265_v7 = vpop.xlane.xlu0 %2352  ;;  %v5286_v15 = vpop.permute.xlu1 %1874 }
 0x33a   :  { %1909 = vperm.xlu0 %3862, %v1726_v4   ;;  %v1668_v4 = vadd.f32 %v5278_v60, %v4801_v59  ;;  %6687 = vst [vmem:[#allocation9_spill] sm:$0xff] %v5286_v15  ;;  %v6702_v15 = vld [vmem:[#allocation8_spill] sm:$0xff] }
 0x33c   :  { %v1732_v20 = vmax.f32 %v1668_v4, 0.0 }
 0x33d   :  { %2457 = vmax.xlane.f32.xlu1 %v2456_v0  ;;  %v5273_v21 = vpop.xlane.xlu0 %2304  ;;  %v2462_v0 = vsel %vm2290_vm4, %v6688_v43, -inf  ;;  %v1675_v43 = vadd.f32 %v5278_v60, %v4887_v8 }
 0x33e   :  { %1919 = vperm.xlu0 %3862, %v1728_v40   ;;  %v1671_v40 = vadd.f32 %v5278_v60, %v4858_v34  ;;  %v1737_v34 = vmax.f32 %v1673_v53, 0.0 }
 0x33f   :  { %v1739_v16 = vmax.f32 %v1675_v43, 0.0 }
 0x340   :  { %v1735_v59 = vmax.f32 %v1671_v40, 0.0 }
 0x341   :  { %2409 = vmax.xlane.f32.xlu1 %v2408_v17  ;;  %v5284_v36 = vpop.xlane.xlu0 %2358  ;;  %v5296_v17 = vpop.permute.xlu1 %1879 }
 0x342   :  { %1929 = vperm.xlu0 %3862, %v1730_v31   ;;  %6689 = vst [vmem:[#allocation22_spill] sm:$0xff] %v5296_v17  ;;  %v2414_v31 = vsel %vm2290_vm4, %v6690_v29, -inf  ;;  %v1677_v29 = vadd.f32 %v5278_v60, %v4900_v63  ;;  %v6696_v63 = vld [vmem:[#allocation66_spill] sm:$0xff] }
 0x344   :  { %v1741_v8 = vmax.f32 %v1677_v29, 0.0 }
 0x345   :  { %2463 = vmax.xlane.f32.xlu1 %v2462_v0  ;;  %v5292_v48 = vpop.xlane.xlu0 %2310  ;;  %v6691_v0 = vld [vmem:[#allocation31_spill] sm:$0xff]  ;;  %v5308_v5 = vpop.permute.xlu1 %1884 }
 0x346   :  { %1939 = vperm.xlu0 %3862, %v1732_v20   ;;  %v2468_v20 = vsel %vm2290_vm4, %v6691_v0, -inf  ;;  %6692 = vst [vmem:[#allocation46_spill] sm:$0xff] %v5308_v5  ;;  %v1679_v0 = vadd.f32 %v5278_v60, %v4912_v61  ;;  %v6697_v5 = vld [vmem:[#allocation5_spill] sm:$0xff] }
 0x349   :  { %2415 = vmax.xlane.f32.xlu1 %v2414_v31  ;;  %v5300_v4 = vpop.xlane.xlu0 %2364  ;;  %v6693_v31 = vld [vmem:[#allocation2_spill] sm:$0xff] }
 0x34a   :  { %1954 = vperm.xlu0 %3862, %v1735_v59   ;;  %v2420_v59 = vsel %vm2290_vm4, %v6693_v31, -inf  ;;  %v1697_v31 = vadd.f32 %v5278_v60, %v6696_v63 }
 0x34d   :  { %2469 = vmax.xlane.f32.xlu1 %v2468_v20  ;;  %v5306_v40 = vpop.xlane.xlu0 %2316  ;;  %v5318_v20 = vpop.permute.xlu1 %1894 }
 0x34e   :  { %1964 = vperm.xlu0 %3862, %v1737_v34   ;;  %6694 = vst [vmem:[#allocation26_spill] sm:$0xff] %v5318_v20  ;;  %v2474_v34 = vsel %vm2290_vm4, %v6695_v32, -inf  ;;  %v1761_v20 = vmax.f32 %v1697_v31, 0.0  ;;  %v1682_v32 = vadd.f32 %v5278_v60, %v4922_v49 }
 0x350   :  { %v1746_v63 = vmax.f32 %v1682_v32, 0.0 }
 0x351   :  { %2421 = vmax.xlane.f32.xlu1 %v2420_v59  ;;  %v5314_v53 = vpop.xlane.xlu0 %2370  ;;  %v1743_v59 = vmax.f32 %v1679_v0, 0.0  ;;  %v5330_v61 = vpop.permute.xlu1 %1904  ;;  %v6700_v0 = vld [vmem:[#allocation69_spill] sm:$0xff] }
 0x352   :  { %1974 = vperm.xlu0 %3862, %v1739_v16   ;;  %v2426_v16 = vsel %vm2290_vm4, %v6697_v5, -inf  ;;  %6698 = vst [vmem:[#allocation11_spill] sm:$0xff] %v5330_v61  ;;  %v1699_v5 = vadd.f32 %v5278_v60, %v6700_v0  ;;  %v6703_v0 = vld [vmem:[#allocation72_spill] sm:$0xff] }
 0x353   :  { %v1701_v32 = vadd.f32 %v5278_v60, %v6703_v0 }
 0x354   :  { %v1763_v49 = vmax.f32 %v1699_v5, 0.0 }
 0x355   :  { %2475 = vmax.xlane.f32.xlu1 %v2474_v34  ;;  %v5322_v43 = vpop.xlane.xlu0 %2322  ;;  %v6699_v34 = vld [vmem:[#allocation37_spill] sm:$0xff] }
 0x356   :  { %1984 = vperm.xlu0 %3862, %v1741_v8   ;;  %v2480_v8 = vsel %vm2290_vm4, %v6699_v34, -inf  ;;  %v1684_v34 = vadd.f32 %v5278_v60, %v4934_v9  ;;  %v6704_v9 = vld [vmem:[#allocation75_spill] sm:$0xff] }
 0x357   :  { %v1703_v42 = vadd.f32 %v5278_v60, %v6704_v9 }
 0x359   :  { %2427 = vmax.xlane.f32.xlu1 %v2426_v16  ;;  %v5328_v29 = vpop.xlane.xlu0 %2376  ;;  %v5340_v16 = vpop.permute.xlu1 %1914 }
 0x35a   :  { %1994 = vperm.xlu0 %3862, %v1743_v59   ;;  %6701 = vst [vmem:[#allocation59_spill] sm:$0xff] %v5340_v16  ;;  %v2432_v59 = vsel %vm2290_vm4, %v6702_v15, -inf  ;;  %v1748_v16 = vmax.f32 %v1684_v34, 0.0  ;;  %v1765_v15 = vmax.f32 %v1701_v32, 0.0  ;;  %v1767_v34 = vmax.f32 %v1703_v42, 0.0 }
 0x35d   :  { %2481 = vmax.xlane.f32.xlu1 %v2480_v8  ;;  %v5336_v17 = vpop.xlane.xlu0 %2328 }
 0x35e   :  { %2084 = vperm.xlu0 %3862, %v1761_v20   ;;  %v5350_v20 = vpop.permute.xlu1 %1924 }
 0x361   :  { %2433 = vmax.xlane.f32.xlu1 %v2432_v59  ;;  %v5344_v31 = vpop.xlane.xlu0 %2382 }
 0x362   :  { %2009 = vperm.xlu0 %3862, %v1746_v63   ;;  %v1686_v63 = vadd.f32 %v5278_v60, %v4943_v11  ;;  %v5358_v5 = vpop.permute.xlu1 %1934 }
 0x365   :  { %v5348_v8 = vpop.xlane.xlu0 %2334 }
 0x366   :  { %2094 = vperm.xlu0 %3862, %v1763_v49   ;;  %v1750_v49 = vmax.f32 %v1686_v63, 0.0  ;;  %v5366_v0 = vpop.permute.xlu1 %1944  ;;  %v2483_v63 = vadd.f32 %v5278_v60, %v5235_v19  ;;  %v6709_v19 = vld [vmem:[#allocation80_spill] sm:$0xff] }
 0x367   :  { %6705 = vst [vmem:[#allocation48_spill] sm:$0xff] %v5366_v0 }
 0x369   :  { %v5354_v61 = vpop.xlane.xlu0 %2436 }
 0x36a   :  { %2019 = vperm.xlu0 %3862, %v1748_v16   ;;  %v1688_v16 = vadd.f32 %v5278_v60, %v4952_v47 }
 0x36c   :  { %v1752_v9 = vmax.f32 %v1688_v16, 0.0 }
 0x36d   :  { %v5360_v59 = vpop.xlane.xlu0 %2388 }
 0x36e   :  { %2104 = vperm.xlu0 %3862, %v1765_v15   ;;  %v6706_v15 = vld [vmem:[#allocation78_spill] sm:$0xff] }
 0x36f   :  { %v1705_v12 = vadd.f32 %v5278_v60, %v6706_v15 }
 0x371   :  { %v5364_v10 = vpop.xlane.xlu0 %2442  ;;  %v1769_v47 = vmax.f32 %v1705_v12, 0.0  ;;  %v2501_v12 = vadd.f32 %v5278_v60, %v5251_v25  ;;  %v1709_v25 = vadd.f32 %v5278_v60, %v4811_v38 }
 0x372   :  { %2029 = vperm.xlu0 %3862, %v1750_v49   ;;  %v1690_v49 = vadd.f32 %v5278_v60, %v4961_v50 }
 0x374   :  { %v1754_v15 = vmax.f32 %v1690_v49, 0.0 }
 0x375   :  { %v5370_v32 = vpop.xlane.xlu0 %2394 }
 0x376   :  { %v2344_v11 = vpop.xlane.xlu1 %2343  ;;  %2114 = vperm.xlu0 %3862, %v1767_v34   ;;  %v2547_v34 = vmax.f32 %v2483_v63, 0.0 }
 0x377   :  { %v2500_v62 = vadd.f32 %v5278_v60, %v2344_v11  ;;  %v2484_v11 = vadd.f32 %v5278_v60, %v5243_v37 }
 0x379   :  { %v2564_v28 = vmax.f32 %v2500_v62, 0.0  ;;  %v5377_v0 = vpop.xlane.xlu0 %2448  ;;  %v1707_v62 = vadd.f32 %v5278_v60, %v6709_v19 }
 0x37a   :  { %6707 = vst [vmem:[#allocation67_spill] sm:$0xff] %v5377_v0  ;;  %v2350_v42 = vpop.xlane.xlu1 %2349  ;;  %2039 = vperm.xlu0 %3862, %v1752_v9   ;;  %v2548_v0 = vmax.f32 %v2484_v11, 0.0  ;;  %v6710_v9 = vld [vmem:[#allocation58_spill] sm:$0xff]  ;;  %v2485_v11 = vadd.f32 %v5278_v60, %v5257_v6  ;;  %v1711_v6 = vadd.f32 %v5278_v60, %v4843_v41 }
 0x37b   :  { %2763 = vperm.xlu1 %3863, %v2564_v28   ;;  %v1692_v37 = vadd.f32 %v5278_v60, %v6710_v9  ;;  %v1771_v63 = vmax.f32 %v1707_v62, 0.0  ;;  %v6713_v62 = vld [vmem:[#allocation61_spill] sm:$0xff] }
 0x37d   :  { %v5383_v23 = vpop.xlane.xlu0 %2400  ;;  %v1756_v49 = vmax.f32 %v1692_v37, 0.0 }
 0x37e   :  { %6708 = vst [vmem:[#allocation15_spill] sm:$0xff] %v5383_v23  ;;  %v2302_v16 = vpop.xlane.xlu1 %2301  ;;  %2124 = vperm.xlu0 %3862, %v1769_v47   ;;  %v2565_v23 = vmax.f32 %v2501_v12, 0.0  ;;  %v2502_v47 = vadd.f32 %v5278_v60, %v2350_v42  ;;  %v1694_v42 = vadd.f32 %v5278_v60, %v6713_v62  ;;  %v1773_v12 = vmax.f32 %v1709_v25, 0.0  ;;  %v6715_v25 = vld [vmem:[#allocation63_spill] sm:$0xff] }
 0x37f   :  { %2678 = vperm.xlu1 %3863, %v2547_v34  }
 0x380   :  { %v1758_v38 = vmax.f32 %v1694_v42, 0.0 }
 0x381   :  { %v5389_v28 = vpop.xlane.xlu0 %2454 }
 0x382   :  { %v2356_v50 = vpop.xlane.xlu1 %2355  ;;  %2049 = vperm.xlu0 %3862, %v1754_v15  }
 0x383   :  { %2683 = vperm.xlu1 %3863, %v2548_v0   ;;  %v2566_v0 = vmax.f32 %v2502_v47, 0.0  ;;  %v2504_v41 = vadd.f32 %v5278_v60, %v2356_v50  ;;  %v2503_v50 = vadd.f32 %v5278_v60, %v5265_v7 }
 0x385   :  { %v5394_v34 = vpop.xlane.xlu0 %2406 }
 0x386   :  { %6711 = vst [vmem:[#allocation70_spill] sm:$0xff] %v5394_v34  ;;  %v2308_v19 = vpop.xlane.xlu1 %2307  ;;  %2134 = vperm.xlu0 %3862, %v1771_v63   ;;  %v2549_v34 = vmax.f32 %v2485_v11, 0.0  ;;  %v1775_v11 = vmax.f32 %v1711_v6, 0.0  ;;  %v2568_v6 = vmax.f32 %v2504_v41, 0.0  ;;  %v2567_v41 = vmax.f32 %v2503_v50, 0.0 }
 0x387   :  { %2768 = vperm.xlu1 %3863, %v2565_v23   ;;  %v2486_v23 = vadd.f32 %v5278_v60, %v2302_v16  ;;  %v1696_v16 = vadd.f32 %v5278_v60, %v6715_v25 }
 0x389   :  { %v5400_v15 = vpop.xlane.xlu0 %2460  ;;  %v2550_v47 = vmax.f32 %v2486_v23, 0.0 }
 0x38a   :  { %6712 = vst [vmem:[#allocation50_spill] sm:$0xff] %v5400_v15  ;;  %v2362_v9 = vpop.xlane.xlu1 %2361  ;;  %2059 = vperm.xlu0 %3862, %v1756_v49   ;;  %v1670_v49 = vadd.f32 %v5278_v60, %v4835_v57  ;;  %v2499_v57 = vadd.f32 %v5278_v60, %v5229_v3 }
 0x38b   :  { %2773 = vperm.xlu1 %3863, %v2566_v0  }
 0x38c   :  { %v2563_v25 = vmax.f32 %v2499_v57, 0.0 }
 0x38d   :  { %v5405_v37 = vpop.xlane.xlu0 %2412 }
 0x38e   :  { %v2314_v63 = vpop.xlane.xlu1 %2313  ;;  %2144 = vperm.xlu0 %3862, %v1773_v12   ;;  %v1760_v12 = vmax.f32 %v1696_v16, 0.0 }
 0x38f   :  { %2688 = vperm.xlu1 %3863, %v2549_v34   ;;  %v1734_v34 = vmax.f32 %v1670_v49, 0.0  ;;  %v6718_v49 = vmov 2  }
 0x391   :  { %v5409_v15 = vpop.xlane.xlu0 %2466 }
 0x392   :  { %6714 = vst [vmem:[#allocation73_spill] sm:$0xff] %v5409_v15  ;;  %v2368_v0 = vpop.xlane.xlu1 %2367  ;;  %2069 = vperm.xlu0 %3862, %v1758_v38   ;;  %v3377_v15 = vld [vmem:[%s6427_s3 + $0x288] sm:$0xff] }
 0x393   :  { %2693 = vperm.xlu1 %3863, %v2550_v47   ;;  %v2488_v47 = vadd.f32 %v5278_v60, %v2308_v19  ;;  %v2487_v19 = vadd.f32 %v5278_v60, %v5273_v21  ;;  %v2489_v21 = vadd.f32 %v5278_v60, %v5292_v48 }
 0x395   :  { %v5415_v62 = vpop.xlane.xlu0 %2418  ;;  %v2552_v3 = vmax.f32 %v2488_v47, 0.0  ;;  %v2506_v47 = vadd.f32 %v5278_v60, %v2362_v9  ;;  %v2490_v9 = vadd.f32 %v5278_v60, %v2314_v63 }
 0x396   :  { %6716 = vst [vmem:[#allocation19_spill] sm:$0xff] %v5415_v62  ;;  %v5417_v42 = vpop.xlane.xlu1 %2319  ;;  %2154 = vperm.xlu0 %3862, %v1775_v11   ;;  %v1026_v62 = vld [vmem:[%s6427_s3 + $0x90] sm:$0xff] }
 0x397   :  { %3864 = vset.pattern.permute.xlu1 %v6573_v52  ;;  %v2570_v50 = vmax.f32 %v2506_v47, 0.0  ;;  %v2554_v48 = vmax.f32 %v2490_v9, 0.0  ;;  %v2507_v9 = vadd.f32 %v5278_v60, %v5300_v4 }
 0x398   :  { %1949 = vperm.xlu1 %3864, %v1734_v34   ;;  %v1672_v34 = vadd.f32 %v5278_v60, %v4856_v18 }
 0x399   :  { %v5423_v23 = vpop.xlane.xlu0 %2472 }
 0x39a   :  { %6717 = vst [vmem:[#allocation76_spill] sm:$0xff] %v5423_v23  ;;  %v2374_v38 = vpop.xlane.xlu1 %2373  ;;  %2079 = vperm.xlu0 %3862, %v1760_v12   ;;  %v1736_v7 = vmax.f32 %v1672_v34, 0.0 }
 0x39c   :  { %3865 = vset.pattern.permute.xlu1 %v6718_v49 }
 0x39d   :  { %2783 = vperm.xlu1 %3865, %v2568_v6   ;;  %v5429_v11 = vpop.xlane.xlu0 %2424  ;;  %v2551_v6 = vmax.f32 %v2487_v19, 0.0 }
 0x39e   :  { %6719 = vst [vmem:[#allocation52_spill] sm:$0xff] %v5429_v11  ;;  %v5431_v16 = vpop.xlane.xlu1 %2325  ;;  %3891 = vset.pattern.permute.xlu0 %v6718_v49  ;;  %v2505_v11 = vadd.f32 %v5278_v60, %v5284_v36  ;;  %v2553_v36 = vmax.f32 %v2489_v21, 0.0 }
 0x39f   :  { %2758 = vperm.xlu0 %3891, %v2563_v25  }
 0x3a0   :  { %v2569_v18 = vmax.f32 %v2505_v11, 0.0 }
 0x3a1   :  { %2703 = vperm.xlu1 %3865, %v2552_v3   ;;  %v5438_v57 = vpop.xlane.xlu0 %2478  ;;  %v2508_v3 = vadd.f32 %v5278_v60, %v2368_v0 }
 0x3a2   :  { %v2380_v12 = vpop.xlane.xlu1 %2379  ;;  %6720 = vst [vmem:[#allocation23_spill] sm:$0xff] %v5438_v57  ;;  %v1678_v57 = vadd.f32 %v5278_v60, %v4898_v24 }
 0x3a3   :  { %2778 = vperm.xlu0 %3891, %v2567_v41   ;;  %v2572_v19 = vmax.f32 %v2508_v3, 0.0  ;;  %v2512_v47 = vadd.f32 %v5278_v60, %v2380_v12 }
 0x3a5   :  { %3866 = vset.pattern.permute.xlu1 %v6573_v52  ;;  %v5449_v34 = vpop.xlane.xlu0 %2430  ;;  %v2576_v63 = vmax.f32 %v2512_v47, 0.0 }
 0x3a6   :  { %v5444_v25 = vpop.xlane.xlu1 %2331  ;;  %1959 = vperm.xlu1 %3866, %v1736_v7   ;;  %6721 = vst [vmem:[#allocation54_spill] sm:$0xff] %v5449_v34  ;;  %v2510_v7 = vadd.f32 %v5278_v60, %v2374_v38 }
 0x3a7   :  { %2698 = vperm.xlu0 %3891, %v2551_v6  }
 0x3a8   :  { %v2574_v0 = vmax.f32 %v2510_v7, 0.0 }
 0x3aa   :  { %v2386_v41 = vpop.xlane.xlu1 %2385  ;;  %3867 = vset.pattern.permute.xlu1 %v6718_v49 }
 0x3ab   :  { %2788 = vperm.xlu1 %3867, %v2569_v18   ;;  %2793 = vperm.xlu0 %3891, %v2570_v50   ;;  %v1674_v18 = vadd.f32 %v5278_v60, %v4871_v30  ;;  %v2514_v38 = vadd.f32 %v5278_v60, %v2386_v41  ;;  %v2491_v41 = vadd.f32 %v5278_v60, %v5306_v40 }
 0x3ad   :  { %v5454_v11 = vpop.permute.xlu0 %1844  ;;  %v1738_v3 = vmax.f32 %v1674_v18, 0.0  ;;  %v2578_v12 = vmax.f32 %v2514_v38, 0.0 }
 0x3ae   :  { %v5456_v6 = vpop.xlane.xlu1 %2337 }
 0x3af   :  { %2708 = vperm.xlu1 %3867, %v2553_v36   ;;  %2803 = vperm.xlu0 %3891, %v2572_v19  }
 0x3b1   :  { %v5459_v34 = vpop.permute.xlu0 %1889 }
 0x3b2   :  { %v2440_v21 = vpop.xlane.xlu1 %2439 }
 0x3b3   :  { %2713 = vperm.xlu1 %3867, %v2554_v48   ;;  %2813 = vperm.xlu0 %3891, %v2574_v0   ;;  %v2532_v30 = vadd.f32 %v5278_v60, %v2440_v21  ;;  %v2571_v48 = vmax.f32 %v2507_v9, 0.0  ;;  %v2492_v21 = vadd.f32 %v5278_v60, %v5417_v42 }
 0x3b5   :  { %v5464_v50 = vpop.permute.xlu0 %1899  ;;  %v2596_v0 = vmax.f32 %v2532_v30, 0.0  ;;  %v2556_v9 = vmax.f32 %v2492_v21, 0.0  ;;  %v1676_v30 = vadd.f32 %v5278_v60, %v4885_v33 }
 0x3b6   :  { %v5466_v36 = vpop.xlane.xlu1 %2391 }
 0x3b7   :  { %3868 = vset.pattern.permute.xlu1 %v6573_v52  ;;  %2823 = vperm.xlu0 %3891, %v2576_v63   ;;  %v2555_v63 = vmax.f32 %v2491_v41, 0.0  ;;  %v1740_v42 = vmax.f32 %v1676_v30, 0.0  ;;  %v2494_v30 = vadd.f32 %v5278_v60, %v5431_v16  ;;  %v1742_v16 = vmax.f32 %v1678_v57, 0.0 }
 0x3b8   :  { %1969 = vperm.xlu1 %3868, %v1738_v3  }
 0x3b9   :  { %v5472_v19 = vpop.permute.xlu0 %1909 }
 0x3ba   :  { %v2446_v7 = vpop.xlane.xlu1 %2445 }
 0x3bb   :  { %2833 = vperm.xlu0 %3891, %v2578_v12   ;;  %v2534_v4 = vadd.f32 %v5278_v60, %v2446_v7 }
 0x3bc   :  { %3869 = vset.pattern.permute.xlu1 %v6718_v49 }
 0x3bd   :  { %2798 = vperm.xlu1 %3869, %v2571_v48   ;;  %v5478_v47 = vpop.permute.xlu0 %1919  ;;  %v2598_v38 = vmax.f32 %v2534_v4, 0.0 }
 0x3be   :  { %6722 = vst [vmem:[#allocation27_spill] sm:$0xff] %v5478_v47  ;;  %v5480_v18 = vpop.xlane.xlu1 %2397 }
 0x3bf   :  { %2923 = vperm.xlu0 %3891, %v2596_v0   ;;  %v2509_v0 = vadd.f32 %v5278_v60, %v5314_v53 }
 0x3c1   :  { %2718 = vperm.xlu1 %3869, %v2555_v63   ;;  %v5484_v3 = vpop.permute.xlu0 %1929  ;;  %v2573_v33 = vmax.f32 %v2509_v0, 0.0 }
 0x3c2   :  { %v2452_v40 = vpop.xlane.xlu1 %2451 }
 0x3c3   :  { %v2536_v12 = vadd.f32 %v5278_v60, %v2452_v40  ;;  %2933 = vperm.xlu0 %3891, %v2598_v38   ;;  %v2493_v38 = vadd.f32 %v5278_v60, %v5322_v43  ;;  %v2558_v43 = vmax.f32 %v2494_v30, 0.0 }
 0x3c5   :  { %v2600_v7 = vmax.f32 %v2536_v12, 0.0  ;;  %2723 = vperm.xlu1 %3869, %v2556_v9   ;;  %v5489_v48 = vpop.permute.xlu0 %1939  ;;  %v2557_v53 = vmax.f32 %v2493_v38, 0.0 }
 0x3c6   :  { %v5491_v41 = vpop.xlane.xlu1 %2403 }
 0x3c7   :  { %2943 = vperm.xlu0 %3891, %v2600_v7  }
 0x3c9   :  { %3870 = vset.pattern.permute.xlu1 %v6573_v52  ;;  %v5496_v4 = vpop.permute.xlu0 %1954 }
 0x3ca   :  { %v2458_v63 = vpop.xlane.xlu1 %2457  ;;  %1979 = vperm.xlu1 %3870, %v1740_v42  }
 0x3cb   :  { %v2538_v21 = vadd.f32 %v5278_v60, %v2458_v63 }
 0x3cd   :  { %v2602_v40 = vmax.f32 %v2538_v21, 0.0  ;;  %v5501_v9 = vpop.permute.xlu0 %1964 }
 0x3ce   :  { %v5503_v12 = vpop.xlane.xlu1 %2409  ;;  %3871 = vset.pattern.permute.xlu1 %v6718_v49 }
 0x3cf   :  { %2808 = vperm.xlu1 %3871, %v2573_v33   ;;  %2953 = vperm.xlu0 %3891, %v2602_v40   ;;  %v2511_v40 = vadd.f32 %v5278_v60, %v5328_v29 }
 0x3d1   :  { %v5508_v7 = vpop.permute.xlu0 %1974 }
 0x3d2   :  { %v2464_v42 = vpop.xlane.xlu1 %2463 }
 0x3d3   :  { %v2540_v0 = vadd.f32 %v5278_v60, %v2464_v42  ;;  %2728 = vperm.xlu1 %3871, %v2557_v53  }
 0x3d5   :  { %v2604_v63 = vmax.f32 %v2540_v0, 0.0  ;;  %v5511_v21 = vpop.permute.xlu0 %1984  ;;  %v2575_v0 = vmax.f32 %v2511_v40, 0.0 }
 0x3d6   :  { %v5515_v23 = vpop.xlane.xlu1 %2415 }
 0x3d7   :  { %2733 = vperm.xlu1 %3871, %v2558_v43   ;;  %2963 = vperm.xlu0 %3891, %v2604_v63   ;;  %v2495_v43 = vadd.f32 %v5278_v60, %v5336_v17 }
 0x3d9   :  { %v5517_v33 = vpop.permute.xlu0 %1994  ;;  %v2559_v63 = vmax.f32 %v2495_v43, 0.0 }
 0x3da   :  { %6723 = vst [vmem:[#allocation56_spill] sm:$0xff] %v5517_v33  ;;  %v2470_v38 = vpop.xlane.xlu1 %2469  ;;  %v3379_v33 = vld [vmem:[%s6427_s3 + $0x298] sm:$0xff] }
 0x3db   :  { %v2542_v53 = vadd.f32 %v5278_v60, %v2470_v38  ;;  %3872 = vset.pattern.permute.xlu1 %v6573_v52 }
 0x3dc   :  { %1989 = vperm.xlu1 %3872, %v1742_v16   ;;  %v2496_v16 = vadd.f32 %v5278_v60, %v5444_v25 }
 0x3dd   :  { %v2606_v30 = vmax.f32 %v2542_v53, 0.0  ;;  %v5523_v42 = vpop.permute.xlu0 %2084 }
 0x3de   :  { %6724 = vst [vmem:[#allocation31_spill] sm:$0xff] %v5523_v42  ;;  %v5525_v24 = vpop.xlane.xlu1 %2421  ;;  %v2560_v17 = vmax.f32 %v2496_v16, 0.0 }
 0x3df   :  { %6725 = vst [vmem:[#allocation2_spill] sm:$0xff] %v5525_v24  ;;  %2973 = vperm.xlu0 %3891, %v2606_v30   ;;  %v1680_v30 = vadd.f32 %v5278_v60, %v4910_v22  ;;  %v2497_v22 = vadd.f32 %v5278_v60, %v5348_v8  ;;  %v3376_v24 = vld [vmem:[%s6427_s3 + $0x280] sm:$0xff] }
 0x3e0   :  { %3873 = vset.pattern.permute.xlu1 %v6718_v49 }
 0x3e1   :  { %2818 = vperm.xlu1 %3873, %v2575_v0   ;;  %v5530_v57 = vpop.permute.xlu0 %2009  ;;  %v1744_v25 = vmax.f32 %v1680_v30, 0.0 }
 0x3e2   :  { %6726 = vst [vmem:[#allocation34_spill] sm:$0xff] %v5530_v57  ;;  %v2476_v29 = vpop.xlane.xlu1 %2475 }
 0x3e3   :  { %v2544_v38 = vadd.f32 %v5278_v60, %v2476_v29  ;;  %v2513_v29 = vadd.f32 %v5278_v60, %v5344_v31  ;;  %v2498_v31 = vadd.f32 %v5278_v60, %v5456_v6  ;;  %v1681_v6 = vadd.f32 %v5278_v60, %v4924_v58 }
 0x3e4   :  { %v2515_v58 = vadd.f32 %v5278_v60, %v5360_v59 }
 0x3e5   :  { %v2608_v53 = vmax.f32 %v2544_v38, 0.0  ;;  %2738 = vperm.xlu1 %3873, %v2559_v63   ;;  %v5535_v42 = vpop.permute.xlu0 %2094  ;;  %v2577_v16 = vmax.f32 %v2513_v29, 0.0  ;;  %v6735_v29 = vld [vmem:[#allocation65_spill] sm:$0xff] }
 0x3e6   :  { %6727 = vst [vmem:[#allocation66_spill] sm:$0xff] %v5535_v42  ;;  %v5537_v40 = vpop.xlane.xlu1 %2427  ;;  %v1698_v8 = vadd.f32 %v5278_v60, %v6735_v29  ;;  %v2531_v29 = vadd.f32 %v5278_v60, %v5354_v61  ;;  %v2516_v61 = vadd.f32 %v5278_v60, %v5466_v36  ;;  %v3362_v36 = vld [vmem:[%s6427_s3 + $0x210] sm:$0xff]  ;;  %v1013_v42 = vld [vmem:[%s6427_s3 + $0x28] sm:$0xff] }
 0x3e7   :  { %6728 = vst [vmem:[#allocation5_spill] sm:$0xff] %v5537_v40  ;;  %2983 = vperm.xlu0 %3891, %v2608_v53   ;;  %v3364_v40 = vld [vmem:[%s6427_s3 + $0x220] sm:$0xff] }
 0x3e9   :  { %2743 = vperm.xlu1 %3873, %v2560_v17   ;;  %v5541_v0 = vpop.permute.xlu0 %2019  ;;  %v2561_v17 = vmax.f32 %v2497_v22, 0.0 }
 0x3ea   :  { %6729 = vst [vmem:[#allocation37_spill] sm:$0xff] %v5541_v0  ;;  %v2482_v43 = vpop.xlane.xlu1 %2481  ;;  %v2164_v0 = vmul.f32 %v3362_v36, %v5011_v35  ;;  %v1029_v36 = vld [vmem:[%s6427_s3 + $0xa8] sm:$0xff] }
 0x3eb   :  { %v2546_v57 = vadd.f32 %v5278_v60, %v2482_v43  ;;  %v2562_v43 = vmax.f32 %v2498_v31, 0.0  ;;  %v1745_v31 = vmax.f32 %v1681_v6, 0.0 }
 0x3ed   :  { %v2610_v63 = vmax.f32 %v2546_v57, 0.0  ;;  %3874 = vset.pattern.permute.xlu1 %v6573_v52  ;;  %v5547_v38 = vpop.permute.xlu0 %2104 }
 0x3ee   :  { %6730 = vst [vmem:[#allocation69_spill] sm:$0xff] %v5547_v38  ;;  %1999 = vperm.xlu1 %3874, %v1744_v25   ;;  %v5558_v30 = vpop.xlane.xlu1 %2433  ;;  %v1010_v38 = vld [vmem:[%s6427_s3 + $0x10] sm:$0xff] }
 0x3ef   :  { %2993 = vperm.xlu0 %3891, %v2610_v63   ;;  %6733 = vst [vmem:[#allocation75_spill] sm:$0xff] %v5558_v30  ;;  %v1008_v30 = vld [vmem:[%s6427_s3] sm:$0xff] }
 0x3f0   :  { %v1392_v47 = vmul.f32 %v4978_v14, %v1008_v30  ;;  %v5685_v14 = vmul.f32 %v3364_v40, %v5042_v51  ;;  %v2178_v30 = vmul.f32 %v3376_v24, %v5350_v20  ;;  %v2517_v20 = vadd.f32 %v5278_v60, %v5370_v32  ;;  %v3443_v24 = vld [vmem:[%s6427_s3 + $0x498] sm:$0xff] }
 0x3f1   :  { %v5551_v53 = vpop.permute.xlu0 %2029  ;;  %v2181_v32 = vmul.f32 %v3379_v33, %v5489_v48 }
 0x3f2   :  { %6731 = vst [vmem:[#allocation8_spill] sm:$0xff] %v5551_v53  ;;  %3875 = vset.pattern.permute.xlu1 %v6718_v49 }
 0x3f3   :  { %2828 = vperm.xlu1 %3875, %v2577_v16   ;;  %v1762_v16 = vmax.f32 %v1698_v8, 0.0 }
 0x3f5   :  { %v5556_v57 = vpop.permute.xlu0 %2114 }
 0x3f6   :  { %6732 = vst [vmem:[#allocation72_spill] sm:$0xff] %v5556_v57  ;;  %v6741_v57 = vld [vmem:[#allocation68_spill] sm:$0xff] }
 0x3f7   :  { %2748 = vperm.xlu1 %3875, %v2561_v17   ;;  %v1700_v59 = vadd.f32 %v5278_v60, %v6741_v57  ;;  %v1683_v57 = vadd.f32 %v5278_v60, %v4936_v39 }
 0x3f9   :  { %v5560_v25 = vpop.permute.xlu0 %2039 }
 0x3fa   :  { %6734 = vst [vmem:[#allocation78_spill] sm:$0xff] %v5560_v25  ;;  %v5564_v63 = vpop.permute.xlu1 %2763 }
 0x3fb   :  { %2753 = vperm.xlu1 %3875, %v2562_v43  }
 0x3fd   :  { %v5566_v53 = vpop.permute.xlu0 %2124 }
 0x3fe   :  { %6736 = vst [vmem:[#allocation80_spill] sm:$0xff] %v5566_v53  ;;  %v5570_v22 = vpop.permute.xlu1 %2678  ;;  %v2595_v53 = vmax.f32 %v2531_v29, 0.0  ;;  %v2580_v29 = vmax.f32 %v2516_v61, 0.0  ;;  %v1009_v61 = vld [vmem:[%s6427_s3 + $0x8] sm:$0xff] }
 0x3ff   :  { %3876 = vset.pattern.permute.xlu1 %v6573_v52 }
 0x400   :  { %2089 = vperm.xlu1 %3876, %v1762_v16  }
 0x401   :  { %v5573_v17 = vpop.permute.xlu0 %2049 }
 0x402   :  { %6737 = vst [vmem:[#allocation58_spill] sm:$0xff] %v5573_v17  ;;  %v5575_v25 = vpop.permute.xlu1 %2683  ;;  %v2579_v17 = vmax.f32 %v2515_v58, 0.0  ;;  %v3363_v58 = vld [vmem:[%s6427_s3 + $0x218] sm:$0xff] }
 0x403   :  { %v2165_v39 = vmul.f32 %v3363_v58, %v4991_v1  ;;  %v1393_v1 = vmul.f32 %v4967_v46, %v1009_v61  ;;  %v1027_v58 = vld [vmem:[%s6427_s3 + $0x98] sm:$0xff]  ;;  %v3125_v61 = vld [vmem:[%s6428_s4 + $0x8] sm:$0xff] }
 0x404   :  { %2004 = vperm.xlu1 %3876, %v1745_v31   ;;  %3199 = vmatprep.mubr.f32.mxu1 %v3125_v61  ;;  %v1411_v40 = vmul.f32 %v5104_v54, %v1027_v58  ;;  %v3380_v54 = vld [vmem:[%s6427_s3 + $0x2a0] sm:$0xff]  ;;  %v1410_v58 = vmul.f32 %v5128_v26, %v1026_v62  ;;  %v3427_v62 = vld [vmem:[%s6427_s3 + $0x418] sm:$0xff] }
 0x405   :  { %v5579_v43 = vpop.permute.xlu0 %2134 }
 0x406   :  { %6738 = vst [vmem:[#allocation61_spill] sm:$0xff] %v5579_v43  ;;  %v5581_v8 = vpop.permute.xlu1 %2768 }
 0x408   :  { %3877 = vset.pattern.permute.xlu1 %v6718_v49 }
 0x409   :  { %2918 = vperm.xlu1 %3877, %v2595_v53   ;;  %v5586_v16 = vpop.permute.xlu0 %2059  ;;  %v3361_v53 = vld [vmem:[%s6427_s3 + $0x208] sm:$0xff] }
 0x40a   :  { %6739 = vst [vmem:[#allocation63_spill] sm:$0xff] %v5586_v16  ;;  %v5588_v6 = vpop.permute.xlu1 %2773  ;;  %v1011_v16 = vld [vmem:[%s6427_s3 + $0x18] sm:$0xff] }
 0x40b   :  { %v1395_v35 = vmul.f32 %v4986_v44, %v1011_v16  ;;  %v1747_v44 = vmax.f32 %v1683_v57, 0.0  ;;  %v3015_v26 = vmul.f32 %v3443_v24, %v5588_v6  ;;  %v2518_v24 = vadd.f32 %v5278_v60, %v5480_v18 }
 0x40d   :  { %2838 = vperm.xlu1 %3877, %v2579_v17   ;;  %v5592_v31 = vpop.permute.xlu0 %2144 }
 0x40e   :  { %6740 = vst [vmem:[#allocation65_spill] sm:$0xff] %v5592_v31  ;;  %v5594_v43 = vpop.permute.xlu1 %2688 }
 0x411   :  { %2843 = vperm.xlu1 %3877, %v2580_v29   ;;  %v5607_v17 = vpop.permute.xlu0 %2069  ;;  %v1764_v29 = vmax.f32 %v1700_v59, 0.0 }
 0x412   :  { %6742 = vst [vmem:[#allocation68_spill] sm:$0xff] %v5607_v17  ;;  %v5609_v31 = vpop.permute.xlu1 %2693  ;;  %v2163_v17 = vmul.f32 %v3361_v53, %v4972_v27  ;;  %v1025_v27 = vld [vmem:[%s6427_s3 + $0x88] sm:$0xff]  ;;  %v1394_v53 = vmul.f32 %v4996_v45, %v1010_v38  ;;  %v1024_v45 = vld [vmem:[%s6427_s3 + $0x80] sm:$0xff]  ;;  %v3378_v38 = vld [vmem:[%s6427_s3 + $0x290] sm:$0xff] }
 0x413   :  { %v1409_v51 = vmul.f32 %v5088_v55, %v1025_v27  ;;  %v1408_v55 = vmul.f32 %v5116_v56, %v1024_v45  ;;  %v3424_v27 = vld [vmem:[%s6427_s3 + $0x400] sm:$0xff] }
 0x414   :  { %v5670_v57 = vadd.f32 %v2164_v0, %v1394_v53  ;;  %v1028_v0 = vld [vmem:[%s6427_s3 + $0xa0] sm:$0xff]  ;;  %v5713_v53 = vmul.f32 %v5120_v13, %v1029_v36  ;;  %v3442_v36 = vld [vmem:[%s6427_s3 + $0x490] sm:$0xff] }
 0x415   :  { %3878 = vset.pattern.permute.xlu1 %v6573_v52  ;;  %v5638_v59 = vpop.permute.xlu0 %2154 }
 0x416   :  { %6743 = vst [vmem:[#allocation105_spill] sm:$0xff] %v5638_v59  ;;  %2099 = vperm.xlu1 %3878, %v1764_v29   ;;  %v6744_v59 = vld [vmem:[#allocation71_spill] sm:$0xff]  ;;  %v2227_v29 = vadd.f32 %v2163_v17, %v1393_v1  ;;  %v5682_v17 = vmul.f32 %v5020_v2, %v1013_v42  ;;  %v3360_v1 = vld [vmem:[%s6427_s3 + $0x200] sm:$0xff] }
 0x417   :  { %v5654_v46 = vadd.f32 %v5278_v60, %v6744_v59  ;;  %v5662_v16 = vpop.permute.xlu1 %1949  ;;  %v5668_v59 = vadd.f32 %v2165_v39, %v1395_v35  ;;  %v2533_v39 = vadd.f32 %v5278_v60, %v5364_v10  ;;  %v3425_v2 = vld [vmem:[%s6427_s3 + $0x408] sm:$0xff]  ;;  %v2180_v35 = vmul.f32 %v3378_v38, %v5358_v5 }
 0x418   :  { %v3441_v10 = vld [vmem:[%s6427_s3 + $0x488] sm:$0xff]  ;;  %v2179_v5 = vmul.f32 %v3377_v15, %v5484_v3  ;;  %v2162_v13 = vmul.f32 %v3360_v1, %v5454_v11  ;;  %v2997_v56 = vmul.f32 %v3425_v2, %v5575_v25  ;;  %v3440_v15 = vld [vmem:[%s6427_s3 + $0x480] sm:$0xff]  ;;  %v2242_v3 = vadd.f32 %v2178_v30, %v1408_v55  ;;  %v6746_v25 = vld [vmem:[#allocation48_spill] sm:$0xff] }
 0x419   :  { %v5699_v42 = vpop.permute.xlu0 %2079  ;;  %v2597_v48 = vmax.f32 %v2533_v39, 0.0  ;;  %v3013_v33 = vmul.f32 %v3441_v10, %v5564_v63  ;;  %v2244_v11 = vadd.f32 %v2180_v35, %v1410_v58  ;;  %v2182_v61 = vmul.f32 %v3380_v54, %v6746_v25  ;;  %v3381_v2 = vld [vmem:[%s6427_s3 + $0x2a8] sm:$0xff] }
 0x41a   :  { %2014 = vperm.xlu1 %3878, %v1747_v44   ;;  %v6745_v44 = vld [vmem:[#allocation21_spill] sm:$0xff]  ;;  %v2996_v1 = vmul.f32 %v3424_v27, %v5570_v22  ;;  %v3365_v63 = vld [vmem:[%s6427_s3 + $0x228] sm:$0xff]  ;;  %v2243_v6 = vadd.f32 %v2179_v5, %v1409_v51  ;;  %v2245_v39 = vadd.f32 %v2181_v32, %v1411_v40  ;;  %v3014_v35 = vmul.f32 %v3442_v36, %v5581_v8  ;;  %v3444_v8 = vld [vmem:[%s6427_s3 + $0x4a0] sm:$0xff] }
 0x41b   :  { %v1412_v38 = vmul.f32 %v6745_v44, %v1028_v0  ;;  %v2581_v0 = vmax.f32 %v2517_v20, 0.0  ;;  %v3426_v20 = vld [vmem:[%s6427_s3 + $0x410] sm:$0xff]  ;;  %v2226_v10 = vadd.f32 %v2162_v13, %v1392_v47  ;;  %v3061_v55 = vadd.f32 %v2997_v56, %v2227_v29  ;;  %v3445_v51 = vld [vmem:[%s6427_s3 + $0x4a8] sm:$0xff]  ;;  %v1012_v5 = vld [vmem:[%s6427_s3 + $0x20] sm:$0xff] }
 0x41c   :  { %v2784_v45 = vpop.permute.xlu1 %2783  ;;  %v2999_v54 = vmul.f32 %v3427_v62, %v5609_v31  ;;  %v3077_v47 = vadd.f32 %v3013_v33, %v2243_v6  ;;  %v3079_v32 = vadd.f32 %v3015_v26, %v2245_v39  ;;  %v2183_v18 = vmul.f32 %v3381_v2, %v5662_v16  ;;  %v6747_v27 = vld [vmem:[#allocation44_spill] sm:$0xff]  ;;  %v3429_v56 = vld [vmem:[%s6427_s3 + $0x428] sm:$0xff]  ;;  %v3383_v16 = vld [vmem:[%s6427_s3 + $0x2b8] sm:$0xff] }
 0x41d   :  { %v2167_v31 = vmul.f32 %v3365_v63, %v6747_v27  ;;  %v2246_v58 = vadd.f32 %v2182_v61, %v1412_v38  ;;  %v3060_v44 = vadd.f32 %v2996_v1, %v2226_v10  ;;  %v2998_v13 = vmul.f32 %v3426_v20, %v5594_v43  ;;  %v3428_v1 = vld [vmem:[%s6427_s3 + $0x420] sm:$0xff] }
 0x41e   :  { %3879 = vset.pattern.permute.xlu1 %v6718_v49  ;;  %v2759_v30 = vpop.permute.xlu0 %2758  ;;  %v3017_v33 = vmul.f32 %v3445_v51, %v2784_v45  ;;  %v2582_v62 = vmax.f32 %v2518_v24, 0.0  ;;  %v3063_v61 = vadd.f32 %v2999_v54, %v5668_v59  ;;  %v1031_v45 = vld [vmem:[%s6427_s3 + $0xb8] sm:$0xff] }
 0x41f   :  { %v3012_v22 = vmul.f32 %v3440_v15, %v2759_v30  ;;  %2928 = vperm.xlu1 %3879, %v2597_v48   ;;  %v3382_v15 = vld [vmem:[%s6427_s3 + $0x2b0] sm:$0xff]  ;;  %v3078_v48 = vadd.f32 %v3014_v35, %v2244_v11  ;;  %v3774_v25 = vpack.c.bf16 %v3061_v55, %v3060_v44  ;;  %v3062_v35 = vadd.f32 %v2998_v13, %v5670_v57  ;;  %v6750_v51 = vld [vmem:[#allocation25_spill] sm:$0xff] }
 0x420   :  { %v2704_v40 = vpop.permute.xlu1 %2703  ;;  %v1030_v11 = vld [vmem:[%s6427_s3 + $0xb0] sm:$0xff]  ;;  %v2184_v39 = vmul.f32 %v3382_v15, %v5496_v4  ;;  %v2231_v10 = vadd.f32 %v2167_v31, %v5682_v17  ;;  %v3447_v57 = vld [vmem:[%s6427_s3 + $0x4b8] sm:$0xff] }
 0x421   :  { %v3076_v29 = vadd.f32 %v3012_v22, %v2242_v3  ;;  %v6748_v3 = vld [vmem:[#allocation94_spill] sm:$0xff]  ;;  %v3001_v2 = vmul.f32 %v3429_v56, %v2704_v40  ;;  %v3776_v6 = vpack.c.bf16 %v3079_v32, %v3078_v48  ;;  %v1414_v40 = vmul.f32 %v6750_v51, %v1030_v11  ;;  %v3446_v4 = vld [vmem:[%s6427_s3 + $0x4b0] sm:$0xff]  ;;  %v6751_v32 = vld [vmem:[#allocation83_spill] sm:$0xff] }
 0x422   :  { %v2779_v36 = vpop.permute.xlu0 %2778  ;;  %v1396_v43 = vmul.f32 %v6748_v3, %v1012_v5  ;;  %v3366_v44 = vld [vmem:[%s6427_s3 + $0x230] sm:$0xff]  ;;  %v3385_v51 = vld [vmem:[%s6427_s3 + $0x2c8] sm:$0xff] }
 0x423   :  { %v3016_v26 = vmul.f32 %v3444_v8, %v2779_v36  ;;  %2848 = vperm.xlu1 %3879, %v2581_v0   ;;  %v3772_v38 = vpack.c.bf16 %v3077_v47, %v3076_v29  ;;  %v2247_v0 = vadd.f32 %v2183_v18, %v5713_v53  ;;  %v6749_v53 = vld [vmem:[#allocation30_spill] sm:$0xff]  ;;  %v3778_v8 = vpack.c.bf16 %v3063_v61, %v3062_v35  ;;  %v3430_v3 = vld [vmem:[%s6427_s3 + $0x430] sm:$0xff] }
 0x424   :  { %v2230_v59 = vadd.f32 %v5685_v14, %v1396_v43  ;;  %v1415_v54 = vmul.f32 %v6749_v53, %v1031_v45  ;;  %v3065_v14 = vadd.f32 %v3001_v2, %v2231_v10  ;;  %v1766_v47 = vmax.f32 %v5654_v46, 0.0  ;;  %v3367_v46 = vld [vmem:[%s6427_s3 + $0x238] sm:$0xff]  ;;  %v5824_v61 = vld [vmem:[%s6426_s2] ss:$0 sm:$0xff]  ;;  %v6757_v10 = vld [vmem:[#allocation15_spill] sm:$0xff] }
 0x425   :  { %v3080_v30 = vadd.f32 %v3016_v26, %v2246_v58  ;;  %v1960_v63 = vpop.permute.xlu1 %1959  ;;  %3773 = vmatprep.subr.bf16.mxu1 %v3772_v38  ;;  %v3081_v24 = vadd.f32 %v3017_v33, %v2247_v0  ;;  %v1685_v18 = vadd.f32 %v5278_v60, %v6751_v32  ;;  %v2248_v29 = vadd.f32 %v2184_v39, %v1414_v40  ;;  %v1014_v60 = vld [vmem:[%s6427_s3 + $0x30] sm:$0xff]  ;;  %v1015_v26 = vld [vmem:[%s6427_s3 + $0x38] sm:$0xff]  ;;  %v1033_v40 = vld [vmem:[%s6427_s3 + $0xc8] sm:$0xff] }
 0x426   :  { %v2185_v20 = vmul.f32 %v3383_v16, %v1960_v63  ;;  %3775 = vmatpush3.bf16.msra.mxu1 %v3774_v25  ;;  %v2699_v22 = vpop.permute.xlu0 %2698  ;;  %v6752_v16 = vld [vmem:[#allocation9_spill] sm:$0xff]  ;;  %v6755_v0 = vld [vmem:[#allocation100_spill] sm:$0xff]  ;;  %v6756_v63 = vld [vmem:[#allocation99_spill] sm:$0xff] }
 0x427   :  { %v3000_v55 = vmul.f32 %v3428_v1, %v2699_v22  ;;  %2853 = vperm.xlu1 %3879, %v2582_v62   ;;  %3777 = vmatprep.subr.bf16.mxu1 %v3776_v6  ;;  %v3780_v17 = vpack.c.bf16 %v3081_v24, %v3080_v30  ;;  %v1749_v33 = vmax.f32 %v1685_v18, 0.0  ;;  %v2168_v38 = vmul.f32 %v3366_v44, %v6752_v16  ;;  %v6753_v62 = vld [vmem:[#allocation22_spill] sm:$0xff]  ;;  %v6754_v1 = vld [vmem:[#allocation67_spill] sm:$0xff]  ;;  %v3431_v30 = vld [vmem:[%s6427_s3 + $0x438] sm:$0xff] }
 0x428   :  { %v2249_v27 = vadd.f32 %v2185_v20, %v1415_v54  ;;  %v2169_v25 = vmul.f32 %v3367_v46, %v6753_v62  ;;  %v2535_v45 = vadd.f32 %v5824_v61, %v6754_v1  ;;  %v1398_v2 = vmul.f32 %v6755_v0, %v1014_v60  ;;  %v6758_v32 = vld [vmem:[#allocation33_spill] sm:$0xff]  ;;  %v1016_v1 = vld [vmem:[%s6427_s3 + $0x40] sm:$0xff] }
 0x429   :  { %v3064_v5 = vadd.f32 %v3000_v55, %v2230_v59  ;;  %v1399_v6 = vmul.f32 %v6756_v63, %v1015_v26  ;;  %v2519_v24 = vadd.f32 %v5824_v61, %v6757_v10  ;;  %v1417_v18 = vmul.f32 %v6758_v32, %v1033_v40  ;;  %v3369_v26 = vld [vmem:[%s6427_s3 + $0x248] sm:$0xff]  ;;  %v6762_v0 = vld [vmem:[#allocation46_spill] sm:$0xff]  ;;  %v1034_v32 = vld [vmem:[%s6427_s3 + $0xd0] sm:$0xff] }
 0x42a   :  { %v2789_v31 = vpop.permute.xlu1 %2788  ;;  %3779 = vmatpush3.bf16.msra.mxu1 %v3778_v8  ;;  %v2794_v58 = vpop.permute.xlu0 %2793  ;;  %v2232_v39 = vadd.f32 %v2168_v38, %v1398_v2  ;;  %v2599_v22 = vmax.f32 %v2535_v45, 0.0  ;;  %v3384_v8 = vld [vmem:[%s6427_s3 + $0x2c0] sm:$0xff] }
 0x42b   :  { %v3782_v13 = vpack.c.bf16 %v3065_v14, %v3064_v5  ;;  %v3018_v56 = vmul.f32 %v3446_v4, %v2789_v31  ;;  %v3019_v36 = vmul.f32 %v3447_v57, %v2794_v58  ;;  %3880 = vset.pattern.permute.xlu1 %v6573_v52  ;;  %3781 = vmatprep.subr.bf16.mxu1 %v3780_v17  ;;  %v2583_v4 = vmax.f32 %v2519_v24, 0.0  ;;  %v1032_v17 = vld [vmem:[%s6427_s3 + $0xc0] sm:$0xff]  ;;  %v6759_v58 = vld [vmem:[#allocation55_spill] sm:$0xff] }
 0x42c   :  { %2109 = vperm.xlu1 %3880, %v1766_v47   ;;  %v2233_v20 = vadd.f32 %v2169_v25, %v1399_v6  ;;  %v2520_v57 = vadd.f32 %v5824_v61, %v5491_v41  ;;  %v3448_v41 = vld [vmem:[%s6427_s3 + $0x4c0] sm:$0xff]  ;;  %v1416_v44 = vmul.f32 %v6759_v58, %v1032_v17  ;;  %v1017_v25 = vld [vmem:[%s6427_s3 + $0x48] sm:$0xff] }
 0x42d   :  { %v3082_v15 = vadd.f32 %v3018_v56, %v2248_v29  ;;  %v3083_v48 = vadd.f32 %v3019_v36, %v2249_v27  ;;  %v2186_v29 = vmul.f32 %v3384_v8, %v5501_v9  ;;  %v3449_v27 = vld [vmem:[%s6427_s3 + $0x4c8] sm:$0xff]  ;;  %v6760_v36 = vld [vmem:[#allocation74_spill] sm:$0xff]  ;;  %v3387_v8 = vld [vmem:[%s6427_s3 + $0x2d8] sm:$0xff] }
 0x42e   :  { %v2709_v43 = vpop.permute.xlu1 %2708  ;;  %3783 = vmatpush3.bf16.msra.mxu1 %v3782_v13  ;;  %v2804_v31 = vpop.permute.xlu0 %2803  ;;  %v2584_v13 = vmax.f32 %v2520_v57, 0.0  ;;  %v1704_v46 = vadd.f32 %v5824_v61, %v6760_v36  ;;  %v3432_v45 = vld [vmem:[%s6427_s3 + $0x440] sm:$0xff]  ;;  %v3433_v6 = vld [vmem:[%s6427_s3 + $0x448] sm:$0xff]  ;;  %v3386_v57 = vld [vmem:[%s6427_s3 + $0x2d0] sm:$0xff] }
 0x42f   :  { %v3784_v11 = vpack.c.bf16 %v3083_v48, %v3082_v15  ;;  %v3002_v59 = vmul.f32 %v3430_v3, %v2709_v43  ;;  %v2250_v9 = vadd.f32 %v2186_v29, %v1416_v44  ;;  %v3021_v15 = vmul.f32 %v3449_v27, %v2804_v31  ;;  %v6761_v43 = vld [vmem:[#allocation84_spill] sm:$0xff] }
 0x430   :  { %2024 = vperm.xlu1 %3880, %v1749_v33   ;;  %v3368_v33 = vld [vmem:[%s6427_s3 + $0x240] sm:$0xff]  ;;  %v1768_v3 = vmax.f32 %v1704_v46, 0.0  ;;  %v1687_v62 = vadd.f32 %v5824_v61, %v6761_v43  ;;  %v6766_v29 = vld [vmem:[#allocation4_spill] sm:$0xff]  ;;  %v2188_v31 = vmul.f32 %v3386_v57, %v5508_v7  ;;  %v2522_v46 = vadd.f32 %v5824_v61, %v5503_v12  ;;  %v6768_v43 = vld [vmem:[#allocation77_spill] sm:$0xff] }
 0x431   :  { %3785 = vmatprep.subr.bf16.mxu1 %v3784_v11  ;;  %v3066_v53 = vadd.f32 %v3002_v59, %v2232_v39  ;;  %v2170_v2 = vmul.f32 %v3368_v33, %v6762_v0  ;;  %v6763_v59 = vld [vmem:[#allocation92_spill] sm:$0xff]  ;;  %v1706_v12 = vadd.f32 %v5824_v61, %v6768_v43  ;;  %v3388_v57 = vld [vmem:[%s6427_s3 + $0x2e0] sm:$0xff] }
 0x432   :  { %v2714_v35 = vpop.permute.xlu1 %2713  ;;  %v1401_v39 = vmul.f32 %v6763_v59, %v1017_v25  ;;  %v1751_v10 = vmax.f32 %v1687_v62, 0.0  ;;  %v2814_v58 = vpop.permute.xlu0 %2813  ;;  %v3450_v44 = vld [vmem:[%s6427_s3 + $0x4d0] sm:$0xff]  ;;  %v1019_v62 = vld [vmem:[%s6427_s3 + $0x58] sm:$0xff]  ;;  %v3436_v43 = vld [vmem:[%s6427_s3 + $0x460] sm:$0xff] }
 0x433   :  { %v3003_v55 = vmul.f32 %v3431_v30, %v2714_v35  ;;  %v2171_v30 = vmul.f32 %v3369_v26, %v5459_v34  ;;  %v6764_v35 = vld [vmem:[#allocation102_spill] sm:$0xff]  ;;  %v2537_v34 = vadd.f32 %v5824_v61, %v5389_v28  ;;  %v3370_v33 = vld [vmem:[%s6427_s3 + $0x250] sm:$0xff]  ;;  %v3371_v26 = vld [vmem:[%s6427_s3 + $0x258] sm:$0xff] }
 0x434   :  { %3881 = vset.pattern.permute.xlu1 %v6718_v49  ;;  %v1018_v25 = vld [vmem:[%s6427_s3 + $0x50] sm:$0xff] }
 0x435   :  { %v3067_v54 = vadd.f32 %v3003_v55, %v2233_v20  ;;  %2938 = vperm.xlu1 %3881, %v2599_v22   ;;  %v1400_v20 = vmul.f32 %v6764_v35, %v1016_v1  ;;  %v3434_v1 = vld [vmem:[%s6427_s3 + $0x450] sm:$0xff] }
 0x437   :  { %v3786_v14 = vpack.c.bf16 %v3067_v54, %v3066_v53  ;;  %v1970_v5 = vpop.permute.xlu1 %1969  ;;  %v2234_v55 = vadd.f32 %v2170_v2, %v1400_v20  ;;  %v2235_v53 = vadd.f32 %v2171_v30, %v1401_v39  ;;  %v2173_v2 = vmul.f32 %v3371_v26, %v5464_v50  ;;  %v6771_v39 = vld [vmem:[#allocation103_spill] sm:$0xff] }
 0x438   :  { %v2187_v47 = vmul.f32 %v3385_v51, %v1970_v5  ;;  %v6765_v5 = vld [vmem:[#allocation70_spill] sm:$0xff]  ;;  %v1402_v35 = vmul.f32 %v6771_v39, %v1018_v25 }
 0x439   :  { %2858 = vperm.xlu1 %3881, %v2583_v4   ;;  %3787 = vmatpush3.bf16.msra.mxu1 %v3786_v14  ;;  %v1035_v4 = vld [vmem:[%s6427_s3 + $0xd8] sm:$0xff]  ;;  %v2601_v14 = vmax.f32 %v2537_v34, 0.0  ;;  %v2521_v28 = vadd.f32 %v5824_v61, %v6765_v5 }
 0x43a   :  { %v2251_v56 = vadd.f32 %v2187_v47, %v1417_v18  ;;  %v1419_v27 = vmul.f32 %v6766_v29, %v1035_v4  ;;  %v1037_v4 = vld [vmem:[%s6427_s3 + $0xe8] sm:$0xff] }
 0x43b   :  { %v2585_v36 = vmax.f32 %v2521_v28, 0.0 }
 0x43c   :  { %v2799_v60 = vpop.permute.xlu1 %2798  ;;  %v3085_v16 = vadd.f32 %v3021_v15, %v2251_v56 }
 0x43d   :  { %v3020_v48 = vmul.f32 %v3448_v41, %v2799_v60  ;;  %2863 = vperm.xlu1 %3881, %v2584_v13   ;;  %v3451_v41 = vld [vmem:[%s6427_s3 + $0x4d8] sm:$0xff] }
 0x43e   :  { %v6767_v13 = vld [vmem:[#allocation29_spill] sm:$0xff]  ;;  %v3023_v15 = vmul.f32 %v3451_v41, %v2814_v58  ;;  %v2824_v41 = vpop.permute.xlu0 %2823  ;;  %v3452_v58 = vld [vmem:[%s6427_s3 + $0x4e0] sm:$0xff] }
 0x43f   :  { %v3084_v38 = vadd.f32 %v3020_v48, %v2250_v9  ;;  %v1418_v56 = vmul.f32 %v6767_v13, %v1034_v32 }
 0x440   :  { %v2719_v11 = vpop.permute.xlu1 %2718 }
 0x441   :  { %3882 = vset.pattern.permute.xlu1 %v6573_v52  ;;  %v3788_v63 = vpack.c.bf16 %v3085_v16, %v3084_v38  ;;  %v3004_v22 = vmul.f32 %v3432_v45, %v2719_v11  ;;  %v2252_v7 = vadd.f32 %v2188_v31, %v1418_v56  ;;  %v2586_v16 = vmax.f32 %v2522_v46, 0.0  ;;  %v6769_v11 = vld [vmem:[#allocation26_spill] sm:$0xff]  ;;  %v3453_v31 = vld [vmem:[%s6427_s3 + $0x4e8] sm:$0xff] }
 0x442   :  { %2119 = vperm.xlu1 %3882, %v1768_v3   ;;  %v2172_v0 = vmul.f32 %v3370_v33, %v6769_v11  ;;  %v6777_v11 = vld [vmem:[#allocation98_spill] sm:$0xff] }
 0x443   :  { %3789 = vmatprep.subr.bf16.mxu1 %v3788_v63  ;;  %v3068_v51 = vadd.f32 %v3004_v22, %v2234_v55  ;;  %v3435_v63 = vld [vmem:[%s6427_s3 + $0x458] sm:$0xff]  ;;  %v1770_v22 = vmax.f32 %v1706_v12, 0.0 }
 0x444   :  { %v2724_v24 = vpop.permute.xlu1 %2723  ;;  %v2236_v34 = vadd.f32 %v2172_v0, %v1402_v35 }
 0x445   :  { %v3005_v54 = vmul.f32 %v3433_v6, %v2724_v24  ;;  %v6770_v6 = vld [vmem:[#allocation95_spill] sm:$0xff] }
 0x446   :  { %2034 = vperm.xlu1 %3882, %v1751_v10   ;;  %v1403_v59 = vmul.f32 %v6770_v6, %v1019_v62  ;;  %v6772_v10 = vld [vmem:[#allocation85_spill] sm:$0xff]  ;;  %v6776_v62 = vld [vmem:[#allocation11_spill] sm:$0xff] }
 0x447   :  { %v3069_v40 = vadd.f32 %v3005_v54, %v2235_v53  ;;  %v1689_v24 = vadd.f32 %v5824_v61, %v6772_v10 }
 0x448   :  { %v2237_v53 = vadd.f32 %v2173_v2, %v1403_v59  ;;  %v6778_v2 = vld [vmem:[#allocation45_spill] sm:$0xff]  ;;  %v6779_v59 = vld [vmem:[#allocation79_spill] sm:$0xff] }
 0x449   :  { %v3790_v17 = vpack.c.bf16 %v3069_v40, %v3068_v51  ;;  %v1980_v47 = vpop.permute.xlu1 %1979  ;;  %v3389_v40 = vld [vmem:[%s6427_s3 + $0x2e8] sm:$0xff]  ;;  %v1708_v39 = vadd.f32 %v5824_v61, %v6779_v59 }
 0x44a   :  { %v2189_v18 = vmul.f32 %v3387_v8, %v1980_v47  ;;  %3883 = vset.pattern.permute.xlu1 %v6718_v49  ;;  %v1753_v8 = vmax.f32 %v1689_v24, 0.0  ;;  %v1036_v47 = vld [vmem:[%s6427_s3 + $0xe0] sm:$0xff] }
 0x44b   :  { %2948 = vperm.xlu1 %3883, %v2601_v14   ;;  %3791 = vmatpush3.bf16.msra.mxu1 %v3790_v17  ;;  %v6773_v14 = vld [vmem:[#allocation50_spill] sm:$0xff] }
 0x44c   :  { %v2253_v60 = vadd.f32 %v2189_v18, %v1419_v27  ;;  %v2539_v5 = vadd.f32 %v5824_v61, %v6773_v14  ;;  %v6774_v18 = vld [vmem:[#allocation36_spill] sm:$0xff]  ;;  %v2190_v27 = vmul.f32 %v3388_v57, %v5511_v21  ;;  %v6781_v14 = vld [vmem:[#allocation7_spill] sm:$0xff] }
 0x44d   :  { %v1421_v29 = vmul.f32 %v6774_v18, %v1037_v4  ;;  %v1038_v4 = vld [vmem:[%s6427_s3 + $0xf0] sm:$0xff]  ;;  %v2834_v18 = vpop.permute.xlu0 %2833 }
 0x44e   :  { %v2809_v9 = vpop.permute.xlu1 %2808  ;;  %v3087_v38 = vadd.f32 %v3023_v15, %v2253_v60  ;;  %v2603_v56 = vmax.f32 %v2539_v5, 0.0  ;;  %v3372_v15 = vld [vmem:[%s6427_s3 + $0x260] sm:$0xff] }
 0x44f   :  { %v3022_v48 = vmul.f32 %v3450_v44, %v2809_v9  ;;  %2868 = vperm.xlu1 %3883, %v2585_v36   ;;  %v6775_v44 = vld [vmem:[#allocation57_spill] sm:$0xff]  ;;  %v2523_v36 = vadd.f32 %v5824_v61, %v5405_v37  ;;  %v3025_v9 = vmul.f32 %v3453_v31, %v2824_v41  ;;  %v2524_v37 = vadd.f32 %v5824_v61, %v5515_v23 }
 0x450   :  { %v1420_v13 = vmul.f32 %v6775_v44, %v1036_v47  ;;  %v2174_v25 = vmul.f32 %v3372_v15, %v6776_v62  ;;  %v6784_v41 = vld [vmem:[#allocation73_spill] sm:$0xff]  ;;  %v6785_v15 = vld [vmem:[#allocation19_spill] sm:$0xff] }
 0x451   :  { %v3086_v3 = vadd.f32 %v3022_v48, %v2252_v7  ;;  %v3373_v48 = vld [vmem:[%s6427_s3 + $0x268] sm:$0xff]  ;;  %v2587_v33 = vmax.f32 %v2523_v36, 0.0 }
 0x452   :  { %v2729_v45 = vpop.permute.xlu1 %2728  ;;  %v2254_v21 = vadd.f32 %v2190_v27, %v1420_v13  ;;  %v6783_v27 = vld [vmem:[#allocation32_spill] sm:$0xff] }
 0x453   :  { %2873 = vperm.xlu1 %3883, %v2586_v16   ;;  %v3792_v30 = vpack.c.bf16 %v3087_v38, %v3086_v3  ;;  %v3006_v20 = vmul.f32 %v3434_v1, %v2729_v45  ;;  %v1021_v38 = vld [vmem:[%s6427_s3 + $0x68] sm:$0xff]  ;;  %v1020_v3 = vld [vmem:[%s6427_s3 + $0x60] sm:$0xff]  ;;  %v2175_v1 = vmul.f32 %v3373_v48, %v5472_v19  ;;  %v1422_v31 = vmul.f32 %v6783_v27, %v1038_v4 }
 0x454   :  { %v3437_v45 = vld [vmem:[%s6427_s3 + $0x468] sm:$0xff]  ;;  %v1405_v0 = vmul.f32 %v6777_v11, %v1021_v38  ;;  %v2525_v48 = vadd.f32 %v5824_v61, %v6785_v15  ;;  %v3392_v15 = vld [vmem:[%s6427_s3 + $0x300] sm:$0xff] }
 0x455   :  { %3793 = vmatprep.subr.bf16.mxu1 %v3792_v30  ;;  %v3070_v54 = vadd.f32 %v3006_v20, %v2236_v34  ;;  %v1404_v30 = vmul.f32 %v6778_v2, %v1020_v3  ;;  %v6780_v34 = vld [vmem:[#allocation60_spill] sm:$0xff]  ;;  %v6786_v3 = vld [vmem:[#allocation59_spill] sm:$0xff] }
 0x456   :  { %v2734_v55 = vpop.permute.xlu1 %2733  ;;  %v6789_v11 = vld [vmem:[#allocation47_spill] sm:$0xff]  ;;  %v2589_v2 = vmax.f32 %v2525_v48, 0.0 }
 0x457   :  { %v3007_v50 = vmul.f32 %v3435_v63, %v2734_v55  ;;  %3884 = vset.pattern.permute.xlu1 %v6573_v52  ;;  %v2588_v63 = vmax.f32 %v2524_v37, 0.0  ;;  %v2238_v20 = vadd.f32 %v2174_v25, %v1404_v30  ;;  %v3391_v55 = vld [vmem:[%s6427_s3 + $0x2f8] sm:$0xff]  ;;  %v6790_v30 = vld [vmem:[#allocation2_spill] sm:$0xff]  ;;  %v1057_v4 = vld [vmem:[%s6427_s3 + $0x188] sm:$0xff] }
 0x458   :  { %2129 = vperm.xlu1 %3884, %v1770_v22   ;;  %v2239_v22 = vadd.f32 %v2175_v1, %v1405_v0  ;;  %v6788_v1 = vld [vmem:[#allocation41_spill] sm:$0xff]  ;;  %v3473_v27 = vld [vmem:[%s6427_s3 + $0x588] sm:$0xff] }
 0x459   :  { %v3071_v51 = vadd.f32 %v3007_v50, %v2237_v53  ;;  %v1691_v53 = vadd.f32 %v5824_v61, %v6780_v34  ;;  %v1772_v50 = vmax.f32 %v1708_v39, 0.0  ;;  %v1041_v48 = vld [vmem:[%s6427_s3 + $0x108] sm:$0xff] }
 0x45b   :  { %v3794_v28 = vpack.c.bf16 %v3071_v51, %v3070_v54  ;;  %v1990_v17 = vpop.permute.xlu1 %1989  ;;  %v1039_v54 = vld [vmem:[%s6427_s3 + $0xf8] sm:$0xff]  ;;  %v3390_v51 = vld [vmem:[%s6427_s3 + $0x2f0] sm:$0xff]  ;;  %v1755_v47 = vmax.f32 %v1691_v53, 0.0 }
 0x45c   :  { %v2191_v32 = vmul.f32 %v3389_v40, %v1990_v17  ;;  %2044 = vperm.xlu1 %3884, %v1753_v8   ;;  %v1423_v5 = vmul.f32 %v6781_v14, %v1039_v54  ;;  %v3124_v54 = vld [vmem:[%s6428_s4] sm:$0xff] }
 0x45d   :  { %3795 = vmatpush3.bf16.msra.mxu1 %v3794_v28  ;;  %v6782_v28 = vld [vmem:[#allocation56_spill] sm:$0xff] }
 0x45e   :  { %v2255_v46 = vadd.f32 %v2191_v32, %v1421_v29  ;;  %v2192_v17 = vmul.f32 %v3390_v51, %v6782_v28  ;;  %v3455_v32 = vld [vmem:[%s6427_s3 + $0x4f8] sm:$0xff]  ;;  %v3454_v29 = vld [vmem:[%s6427_s3 + $0x4f0] sm:$0xff]  ;;  %v6792_v51 = vld [vmem:[#allocation62_spill] sm:$0xff] }
 0x45f   :  { %v3027_v36 = vmul.f32 %v3455_v32, %v2834_v18  ;;  %v1056_v28 = vld [vmem:[%s6427_s3 + $0x180] sm:$0xff]  ;;  %v6794_v32 = vld [vmem:[#allocation31_spill] sm:$0xff] }
 0x460   :  { %v2819_v60 = vpop.permute.xlu1 %2818  ;;  %3885 = vset.pattern.permute.xlu1 %v6718_v49  ;;  %v3089_v26 = vadd.f32 %v3025_v9, %v2255_v46  ;;  %v1023_v9 = vld [vmem:[%s6427_s3 + $0x78] sm:$0xff] }
 0x461   :  { %v3024_v7 = vmul.f32 %v3452_v58, %v2819_v60  ;;  %2958 = vperm.xlu1 %3885, %v2603_v56   ;;  %v2541_v58 = vadd.f32 %v5824_v61, %v6784_v41  ;;  %v2256_v56 = vadd.f32 %v2192_v17, %v1422_v31  ;;  %v3374_v60 = vld [vmem:[%s6427_s3 + $0x270] sm:$0xff]  ;;  %v6793_v17 = vld [vmem:[#allocation90_spill] sm:$0xff]  ;;  %v2924_v31 = vpop.permute.xlu0 %2923 }
 0x462   :  { %v3472_v41 = vld [vmem:[%s6427_s3 + $0x580] sm:$0xff] }
 0x463   :  { %v3088_v16 = vadd.f32 %v3024_v7, %v2254_v21  ;;  %v3375_v21 = vld [vmem:[%s6427_s3 + $0x278] sm:$0xff]  ;;  %v2605_v7 = vmax.f32 %v2541_v58, 0.0 }
 0x464   :  { %v2739_v12 = vpop.permute.xlu1 %2738  ;;  %v6795_v58 = vld [vmem:[#allocation101_spill] sm:$0xff] }
 0x465   :  { %2878 = vperm.xlu1 %3885, %v2587_v33   ;;  %v3796_v23 = vpack.c.bf16 %v3089_v26, %v3088_v16  ;;  %v3008_v6 = vmul.f32 %v3436_v43, %v2739_v12  ;;  %v1022_v26 = vld [vmem:[%s6427_s3 + $0x70] sm:$0xff]  ;;  %v2176_v43 = vmul.f32 %v3374_v60, %v6786_v3  ;;  %v6787_v12 = vld [vmem:[#allocation27_spill] sm:$0xff]  ;;  %v1040_v3 = vld [vmem:[%s6427_s3 + $0x100] sm:$0xff] }
 0x466   :  { %v3438_v16 = vld [vmem:[%s6427_s3 + $0x470] sm:$0xff]  ;;  %v2177_v62 = vmul.f32 %v3375_v21, %v6787_v12  ;;  %v1406_v0 = vmul.f32 %v6789_v11, %v1022_v26  ;;  %v3045_v21 = vmul.f32 %v3473_v27, %v2924_v31  ;;  %v3475_v31 = vld [vmem:[%s6427_s3 + $0x598] sm:$0xff] }
 0x467   :  { %3797 = vmatprep.subr.bf16.mxu1 %v3796_v23  ;;  %v3072_v10 = vadd.f32 %v3008_v6, %v2238_v20  ;;  %v1407_v23 = vmul.f32 %v6788_v1, %v1023_v9 }
 0x468   :  { %v2744_v35 = vpop.permute.xlu1 %2743  ;;  %v2240_v39 = vadd.f32 %v2176_v43, %v1406_v0  ;;  %v3456_v43 = vld [vmem:[%s6427_s3 + $0x500] sm:$0xff]  ;;  %v3457_v0 = vld [vmem:[%s6427_s3 + $0x508] sm:$0xff] }
 0x469   :  { %v3009_v19 = vmul.f32 %v3437_v45, %v2744_v35  ;;  %2883 = vperm.xlu1 %3885, %v2588_v63   ;;  %v3439_v45 = vld [vmem:[%s6427_s3 + $0x478] sm:$0xff]  ;;  %v2526_v63 = vadd.f32 %v5824_v61, %v6790_v30  ;;  %v2241_v35 = vadd.f32 %v2177_v62, %v1407_v23  ;;  %v6798_v62 = vld [vmem:[#allocation34_spill] sm:$0xff] }
 0x46b   :  { %v3073_v24 = vadd.f32 %v3009_v19, %v2239_v22  ;;  %v2590_v22 = vmax.f32 %v2526_v63, 0.0 }
 0x46d   :  { %v3798_v40 = vpack.c.bf16 %v3073_v24, %v3072_v10  ;;  %v2000_v8 = vpop.permute.xlu1 %1999  ;;  %3886 = vset.pattern.permute.xlu1 %v6573_v52  ;;  %v6791_v24 = vld [vmem:[#allocation81_spill] sm:$0xff] }
 0x46e   :  { %v2193_v57 = vmul.f32 %v3391_v55, %v2000_v8  ;;  %2139 = vperm.xlu1 %3886, %v1772_v50   ;;  %v1710_v55 = vadd.f32 %v5824_v61, %v6791_v24  ;;  %v3409_v50 = vld [vmem:[%s6427_s3 + $0x388] sm:$0xff] }
 0x46f   :  { %3799 = vmatpush3.bf16.msra.mxu1 %v3798_v40  ;;  %v1693_v40 = vadd.f32 %v5824_v61, %v6792_v51  ;;  %v3411_v51 = vld [vmem:[%s6427_s3 + $0x398] sm:$0xff] }
 0x470   :  { %v2257_v44 = vadd.f32 %v2193_v57, %v1423_v5  ;;  %v1774_v8 = vmax.f32 %v1710_v55, 0.0  ;;  %v3408_v57 = vld [vmem:[%s6427_s3 + $0x380] sm:$0xff] }
 0x471   :  { %v2210_v18 = vmul.f32 %v3408_v57, %v6794_v32  ;;  %v1059_v57 = vld [vmem:[%s6427_s3 + $0x198] sm:$0xff] }
 0x472   :  { %v2829_v13 = vpop.permute.xlu1 %2828  ;;  %2054 = vperm.xlu1 %3886, %v1755_v47   ;;  %v3091_v33 = vadd.f32 %v3027_v36, %v2257_v44  ;;  %v1441_v47 = vmul.f32 %v6793_v17, %v1057_v4  ;;  %v1440_v44 = vmul.f32 %v6795_v58, %v1056_v28  ;;  %v1058_v17 = vld [vmem:[%s6427_s3 + $0x190] sm:$0xff] }
 0x473   :  { %v3026_v46 = vmul.f32 %v3454_v29, %v2829_v13  ;;  %v1757_v29 = vmax.f32 %v1693_v40, 0.0  ;;  %v6796_v13 = vld [vmem:[#allocation76_spill] sm:$0xff] }
 0x474   :  { %v2274_v60 = vadd.f32 %v2210_v18, %v1440_v44  ;;  %v6803_v40 = vld [vmem:[#allocation64_spill] sm:$0xff]  ;;  %v6805_v18 = vld [vmem:[#allocation66_spill] sm:$0xff] }
 0x475   :  { %v3090_v37 = vadd.f32 %v3026_v46, %v2256_v56  ;;  %v2543_v56 = vadd.f32 %v5824_v61, %v6796_v13  ;;  %v3474_v58 = vld [vmem:[%s6427_s3 + $0x590] sm:$0xff]  ;;  %v6807_v13 = vld [vmem:[#allocation23_spill] sm:$0xff] }
 0x476   :  { %v2749_v38 = vpop.permute.xlu1 %2748  ;;  %3887 = vset.pattern.permute.xlu1 %v6718_v49 }
 0x477   :  { %2968 = vperm.xlu1 %3887, %v2605_v7   ;;  %v3800_v25 = vpack.c.bf16 %v3091_v33, %v3090_v37  ;;  %v3010_v6 = vmul.f32 %v3438_v16, %v2749_v38  ;;  %v3393_v7 = vld [vmem:[%s6427_s3 + $0x308] sm:$0xff]  ;;  %v2607_v33 = vmax.f32 %v2543_v56, 0.0  ;;  %v6797_v37 = vld [vmem:[#allocation52_spill] sm:$0xff]  ;;  %v2545_v56 = vadd.f32 %v5824_v61, %v6807_v13 }
 0x478   :  { %v2527_v26 = vadd.f32 %v5824_v61, %v6797_v37  ;;  %v6808_v37 = vld [vmem:[#allocation54_spill] sm:$0xff] }
 0x479   :  { %3801 = vmatprep.subr.bf16.mxu1 %v3800_v25  ;;  %v3074_v19 = vadd.f32 %v3010_v6, %v2240_v39  ;;  %v2195_v25 = vmul.f32 %v3393_v7, %v6798_v62  ;;  %v6801_v6 = vld [vmem:[#allocation5_spill] sm:$0xff] }
 0x47a   :  { %v2754_v59 = vpop.permute.xlu1 %2753  ;;  %v2591_v63 = vmax.f32 %v2527_v26, 0.0  ;;  %v3395_v7 = vld [vmem:[%s6427_s3 + $0x318] sm:$0xff]  ;;  %v2529_v26 = vadd.f32 %v5824_v61, %v6808_v37  ;;  %v6817_v37 = vld [vmem:[#allocation40_spill] sm:$0xff] }
 0x47b   :  { %v3011_v20 = vmul.f32 %v3439_v45, %v2754_v59  ;;  %2888 = vperm.xlu1 %3887, %v2589_v2   ;;  %v6799_v45 = vld [vmem:[#allocation39_spill] sm:$0xff]  ;;  %v6800_v2 = vld [vmem:[#allocation14_spill] sm:$0xff]  ;;  %v2528_v59 = vadd.f32 %v5824_v61, %v6801_v6  ;;  %v6809_v62 = vld [vmem:[#allocation37_spill] sm:$0xff] }
 0x47c   :  { %v1425_v11 = vmul.f32 %v6799_v45, %v1041_v48  ;;  %v1424_v30 = vmul.f32 %v6800_v2, %v1040_v3  ;;  %v1043_v48 = vld [vmem:[%s6427_s3 + $0x118] sm:$0xff]  ;;  %v1042_v3 = vld [vmem:[%s6427_s3 + $0x110] sm:$0xff]  ;;  %v6810_v45 = vld [vmem:[#allocation10_spill] sm:$0xff] }
 0x47d   :  { %v3075_v10 = vadd.f32 %v3011_v20, %v2241_v35  ;;  %v6811_v2 = vld [vmem:[#allocation42_spill] sm:$0xff]  ;;  %v6812_v6 = vld [vmem:[#allocation75_spill] sm:$0xff] }
 0x47e   :  { %v2259_v20 = vadd.f32 %v2195_v25, %v1425_v11  ;;  %v2197_v25 = vmul.f32 %v3395_v7, %v6809_v62  ;;  %v1427_v11 = vmul.f32 %v6810_v45, %v1043_v48 }
 0x47f   :  { %v3802_v34 = vpack.c.bf16 %v3075_v10, %v3074_v19  ;;  %v2090_v53 = vpop.permute.xlu1 %2089  ;;  %2893 = vperm.xlu1 %3887, %v2590_v22   ;;  %v2592_v10 = vmax.f32 %v2528_v59, 0.0  ;;  %v2530_v59 = vadd.f32 %v5824_v61, %v6812_v6 }
 0x480   :  { %v2211_v14 = vmul.f32 %v3409_v50, %v2090_v53 }
 0x481   :  { %3803 = vmatpush3.bf16.msra.mxu1 %v3802_v34  ;;  %v6802_v34 = vld [vmem:[#allocation82_spill] sm:$0xff] }
 0x482   :  { %v2275_v36 = vadd.f32 %v2211_v14, %v1441_v47  ;;  %v1712_v53 = vadd.f32 %v5824_v61, %v6802_v34  ;;  %v3410_v14 = vld [vmem:[%s6427_s3 + $0x390] sm:$0xff]  ;;  %v6804_v47 = vld [vmem:[#allocation93_spill] sm:$0xff] }
 0x483   :  { %v2005_v5 = vpop.permute.xlu1 %2004  ;;  %3888 = vset.pattern.permute.xlu1 %v6573_v52  ;;  %v1443_v32 = vmul.f32 %v6804_v47, %v1059_v57  ;;  %v6814_v57 = vld [vmem:[#allocation69_spill] sm:$0xff]  ;;  %v3476_v47 = vld [vmem:[%s6427_s3 + $0x5a0] sm:$0xff] }
 0x484   :  { %2149 = vperm.xlu1 %3888, %v1774_v8   ;;  %3200 = vmatmul.mubr.f32.vlgmr.msra.gmra.mrb[22].mxu1 %v3124_v54  ;;  %v3109_v16 = vadd.f32 %v3045_v21, %v2275_v36  ;;  %v2194_v1 = vmul.f32 %v3392_v15, %v2005_v5  ;;  %v1695_v8 = vadd.f32 %v5824_v61, %v6803_v40  ;;  %v1776_v4 = vmax.f32 %v1712_v53, 0.0  ;;  %v3394_v15 = vld [vmem:[%s6427_s3 + $0x310] sm:$0xff]  ;;  %v3413_v53 = vld [vmem:[%s6427_s3 + $0x3a8] sm:$0xff]  ;;  %v1060_v40 = vld [vmem:[%s6427_s3 + $0x1a0] sm:$0xff] }
 0x485   :  { %v1061_v61 = vld [vmem:[%s6427_s3 + $0x1a8] sm:$0xff] }
 0x486   :  { %v2258_v22 = vadd.f32 %v2194_v1, %v1424_v30  ;;  %v1759_v27 = vmax.f32 %v1695_v8, 0.0  ;;  %v1426_v30 = vmul.f32 %v6811_v2, %v1042_v3  ;;  %v6813_v8 = vld [vmem:[#allocation97_spill] sm:$0xff] }
 0x487   :  { %v1063_v2 = vld [vmem:[%s6427_s3 + $0x1b8] sm:$0xff] }
 0x488   :  { %v2919_v46 = vpop.permute.xlu1 %2918  ;;  %2064 = vperm.xlu1 %3888, %v1757_v29   ;;  %v2212_v29 = vmul.f32 %v3410_v14, %v6805_v18 }
 0x489   :  { %v3044_v9 = vmul.f32 %v3472_v41, %v2919_v46  ;;  %v2934_v41 = vpop.permute.xlu0 %2933 }
 0x48a   :  { %v3047_v21 = vmul.f32 %v3475_v31, %v2934_v41 }
 0x48b   :  { %v3108_v38 = vadd.f32 %v3044_v9, %v2274_v60 }
 0x48c   :  { %v2839_v12 = vpop.permute.xlu1 %2838  ;;  %3889 = vset.pattern.permute.xlu1 %v6718_v49 }
 0x48d   :  { %2978 = vperm.xlu1 %3889, %v2607_v33   ;;  %v3804_v23 = vpack.c.bf16 %v3109_v16, %v3108_v38  ;;  %v3028_v39 = vmul.f32 %v3456_v43, %v2839_v12  ;;  %v2609_v33 = vmax.f32 %v2545_v56, 0.0  ;;  %v3458_v43 = vld [vmem:[%s6427_s3 + $0x510] sm:$0xff] }
 0x48f   :  { %3805 = vmatprep.subr.bf16.mxu1 %v3804_v23  ;;  %v3092_v24 = vadd.f32 %v3028_v39, %v2258_v22 }
 0x490   :  { %v2844_v35 = vpop.permute.xlu1 %2843 }
 0x491   :  { %v3029_v19 = vmul.f32 %v3457_v0, %v2844_v35  ;;  %2898 = vperm.xlu1 %3889, %v2591_v63   ;;  %v3459_v0 = vld [vmem:[%s6427_s3 + $0x518] sm:$0xff]  ;;  %v2593_v63 = vmax.f32 %v2529_v26, 0.0  ;;  %v2261_v35 = vadd.f32 %v2197_v25, %v1427_v11 }
 0x493   :  { %v3093_v55 = vadd.f32 %v3029_v19, %v2259_v20  ;;  %v2594_v19 = vmax.f32 %v2530_v59, 0.0  ;;  %v1062_v59 = vld [vmem:[%s6427_s3 + $0x1b0] sm:$0xff] }
 0x495   :  { %v3806_v50 = vpack.c.bf16 %v3093_v55, %v3092_v24  ;;  %v2100_v54 = vpop.permute.xlu1 %2099  ;;  %2903 = vperm.xlu1 %3889, %v2592_v10  }
 0x496   :  { %v2213_v5 = vmul.f32 %v3411_v51, %v2100_v54 }
 0x497   :  { %3807 = vmatpush3.bf16.msra.mxu1 %v3806_v50  ;;  %v3412_v50 = vld [vmem:[%s6427_s3 + $0x3a0] sm:$0xff] }
 0x498   :  { %v2277_v36 = vadd.f32 %v2213_v5, %v1443_v32  ;;  %v2214_v14 = vmul.f32 %v3412_v50, %v6814_v57  ;;  %v3127_v5 = vld [vmem:[%s6428_s4 + $0x18] sm:$0xff]  ;;  %v6815_v32 = vld [vmem:[#allocation20_spill] sm:$0xff] }
 0x499   :  { %v2015_v28 = vpop.permute.xlu1 %2014  ;;  %3890 = vset.pattern.permute.xlu1 %v6573_v52  ;;  %v6806_v52 = vld [vmem:[#allocation16_spill] sm:$0xff]  ;;  %3269 = vmatprep.mubr.f32.mxu1 %v3127_v5  ;;  %v1444_v18 = vmul.f32 %v6815_v32, %v1060_v40  ;;  %v1047_v57 = vld [vmem:[%s6427_s3 + $0x138] sm:$0xff] }
 0x49a   :  { %2159 = vperm.xlu1 %3890, %v1776_v4   ;;  %v1442_v44 = vmul.f32 %v6806_v52, %v1058_v17  ;;  %v3111_v16 = vadd.f32 %v3047_v21, %v2277_v36  ;;  %v2196_v1 = vmul.f32 %v3394_v15, %v2015_v28  ;;  %v1445_v4 = vmul.f32 %v6813_v8, %v1061_v61  ;;  %v3477_v28 = vld [vmem:[%s6427_s3 + $0x5a8] sm:$0xff]  ;;  %v2944_v17 = vpop.permute.xlu0 %2943  ;;  %v3398_v40 = vld [vmem:[%s6427_s3 + $0x330] sm:$0xff] }
 0x49b   :  { %v2278_v31 = vadd.f32 %v2214_v14, %v1444_v18  ;;  %v3049_v41 = vmul.f32 %v3477_v28, %v2944_v17  ;;  %v3397_v52 = vld [vmem:[%s6427_s3 + $0x328] sm:$0xff]  ;;  %v1046_v14 = vld [vmem:[%s6427_s3 + $0x130] sm:$0xff]  ;;  %v6822_v17 = vld [vmem:[#allocation78_spill] sm:$0xff] }
 0x49c   :  { %v2276_v60 = vadd.f32 %v2212_v29, %v1442_v44  ;;  %v2260_v20 = vadd.f32 %v2196_v1, %v1426_v30  ;;  %v3396_v44 = vld [vmem:[%s6427_s3 + $0x320] sm:$0xff]  ;;  %v1045_v36 = vld [vmem:[%s6427_s3 + $0x128] sm:$0xff]  ;;  %v3414_v30 = vld [vmem:[%s6427_s3 + $0x3b0] sm:$0xff] }
 0x49d   :  { %v1429_v26 = vmul.f32 %v6817_v37, %v1045_v36  ;;  %v3462_v5 = vld [vmem:[%s6427_s3 + $0x530] sm:$0xff] }
 0x49e   :  { %v2929_v46 = vpop.permute.xlu1 %2928  ;;  %2074 = vperm.xlu1 %3890, %v1759_v27  }
 0x49f   :  { %v3046_v9 = vmul.f32 %v3474_v58, %v2929_v46  ;;  %v1044_v46 = vld [vmem:[%s6427_s3 + $0x120] sm:$0xff] }
 0x4a1   :  { %v3110_v38 = vadd.f32 %v3046_v9, %v2276_v60  ;;  %v3460_v60 = vld [vmem:[%s6427_s3 + $0x520] sm:$0xff]  ;;  %v6816_v9 = vld [vmem:[#allocation8_spill] sm:$0xff] }
 0x4a2   :  { %v2849_v12 = vpop.permute.xlu1 %2848  ;;  %3892 = vset.pattern.permute.xlu1 %v6718_v49  ;;  %v2199_v7 = vmul.f32 %v3397_v52, %v6816_v9 }
 0x4a3   :  { %2988 = vperm.xlu1 %3892, %v2609_v33   ;;  %v3808_v23 = vpack.c.bf16 %v3111_v16, %v3110_v38  ;;  %v3030_v39 = vmul.f32 %v3458_v43, %v2849_v12  ;;  %v3461_v33 = vld [vmem:[%s6427_s3 + $0x528] sm:$0xff]  ;;  %v6818_v16 = vld [vmem:[#allocation6_spill] sm:$0xff] }
 0x4a4   :  { %v1428_v38 = vmul.f32 %v6818_v16, %v1044_v46  ;;  %v2263_v12 = vadd.f32 %v2199_v7, %v1429_v26  ;;  %v3417_v7 = vld [vmem:[%s6427_s3 + $0x3c8] sm:$0xff]  ;;  %v1064_v26 = vld [vmem:[%s6427_s3 + $0x1c0] sm:$0xff] }
 0x4a5   :  { %3809 = vmatprep.subr.bf16.mxu1 %v3808_v23  ;;  %v3094_v10 = vadd.f32 %v3030_v39, %v2260_v20  ;;  %v6819_v39 = vld [vmem:[#allocation12_spill] sm:$0xff]  ;;  %v6825_v16 = vld [vmem:[#allocation43_spill] sm:$0xff] }
 0x4a6   :  { %v2854_v49 = vpop.permute.xlu1 %2853 }
 0x4a7   :  { %v3031_v22 = vmul.f32 %v3459_v0, %v2854_v49  ;;  %2908 = vperm.xlu1 %3892, %v2593_v63   ;;  %v3415_v0 = vld [vmem:[%s6427_s3 + $0x3b8] sm:$0xff]  ;;  %v1447_v49 = vmul.f32 %v6819_v39, %v1063_v2 }
 0x4a9   :  { %v3095_v24 = vadd.f32 %v3031_v22, %v2261_v35  ;;  %v6820_v35 = vld [vmem:[#allocation72_spill] sm:$0xff]  ;;  %v3479_v22 = vld [vmem:[%s6427_s3 + $0x5b8] sm:$0xff] }
 0x4aa   :  { %v2216_v20 = vmul.f32 %v3414_v30, %v6820_v35  ;;  %v1048_v35 = vld [vmem:[%s6427_s3 + $0x140] sm:$0xff] }
 0x4ab   :  { %v3810_v55 = vpack.c.bf16 %v3095_v24, %v3094_v10  ;;  %v2110_v34 = vpop.permute.xlu1 %2109  ;;  %2913 = vperm.xlu1 %3892, %v2594_v19   ;;  %v2954_v19 = vpop.permute.xlu0 %2953  ;;  %v3478_v10 = vld [vmem:[%s6427_s3 + $0x5b0] sm:$0xff] }
 0x4ac   :  { %v2215_v54 = vmul.f32 %v3413_v53, %v2110_v34  ;;  %v6821_v24 = vld [vmem:[#allocation104_spill] sm:$0xff]  ;;  %v3051_v50 = vmul.f32 %v3479_v22, %v2954_v19  ;;  %v6828_v19 = vld [vmem:[#allocation58_spill] sm:$0xff] }
 0x4ad   :  { %3811 = vmatpush3.bf16.msra.mxu1 %v3810_v55  ;;  %v1446_v55 = vmul.f32 %v6821_v24, %v1062_v59 }
 0x4ae   :  { %v2279_v29 = vadd.f32 %v2215_v54, %v1445_v4 }
 0x4af   :  { %v2025_v51 = vpop.permute.xlu1 %2024  ;;  %v2280_v61 = vadd.f32 %v2216_v20, %v1446_v55  ;;  %v3464_v20 = vld [vmem:[%s6427_s3 + $0x540] sm:$0xff] }
 0x4b0   :  { %v3113_v13 = vadd.f32 %v3049_v41, %v2279_v29  ;;  %v2198_v15 = vmul.f32 %v3396_v44, %v2025_v51  ;;  %v3399_v51 = vld [vmem:[%s6427_s3 + $0x338] sm:$0xff]  ;;  %v6824_v41 = vld [vmem:[#allocation18_spill] sm:$0xff] }
 0x4b1   :  { %v3463_v29 = vld [vmem:[%s6427_s3 + $0x538] sm:$0xff] }
 0x4b2   :  { %v2262_v62 = vadd.f32 %v2198_v15, %v1428_v38  ;;  %v1065_v15 = vld [vmem:[%s6427_s3 + $0x1c8] sm:$0xff] }
 0x4b3   :  { %v1449_v38 = vmul.f32 %v6825_v16, %v1065_v15 }
 0x4b4   :  { %v2939_v27 = vpop.permute.xlu1 %2938 }
 0x4b5   :  { %v3048_v58 = vmul.f32 %v3476_v47, %v2939_v27  ;;  %v2201_v47 = vmul.f32 %v3399_v51, %v6822_v17  ;;  %v6823_v27 = vld [vmem:[#allocation3_spill] sm:$0xff] }
 0x4b7   :  { %v3112_v56 = vadd.f32 %v3048_v58, %v2278_v31  ;;  %v1431_v31 = vmul.f32 %v6823_v27, %v1047_v57  ;;  %v1430_v58 = vmul.f32 %v6824_v41, %v1046_v14  ;;  %v6831_v41 = vld [vmem:[#allocation24_spill] sm:$0xff] }
 0x4b8   :  { %v2859_v21 = vpop.permute.xlu1 %2858 }
 0x4b9   :  { %v3812_v48 = vpack.c.bf16 %v3113_v13, %v3112_v56  ;;  %v3032_v3 = vmul.f32 %v3460_v60, %v2859_v21  ;;  %v2265_v13 = vadd.f32 %v2201_v47, %v1431_v31  ;;  %v3419_v47 = vld [vmem:[%s6427_s3 + $0x3d8] sm:$0xff]  ;;  %v1066_v31 = vld [vmem:[%s6427_s3 + $0x1d0] sm:$0xff] }
 0x4bb   :  { %3813 = vmatprep.subr.bf16.mxu1 %v3812_v48  ;;  %v3096_v1 = vadd.f32 %v3032_v3, %v2262_v62  ;;  %v3416_v48 = vld [vmem:[%s6427_s3 + $0x3c0] sm:$0xff]  ;;  %v6826_v3 = vld [vmem:[#allocation80_spill] sm:$0xff]  ;;  %v2964_v62 = vpop.permute.xlu0 %2963 }
 0x4bc   :  { %v2864_v43 = vpop.permute.xlu1 %2863 }
 0x4bd   :  { %v3033_v25 = vmul.f32 %v3461_v33, %v2864_v43  ;;  %v2218_v43 = vmul.f32 %v3416_v48, %v6826_v3  ;;  %v1050_v3 = vld [vmem:[%s6427_s3 + $0x150] sm:$0xff] }
 0x4bf   :  { %v3097_v23 = vadd.f32 %v3033_v25, %v2263_v12  ;;  %v3481_v12 = vld [vmem:[%s6427_s3 + $0x5c8] sm:$0xff]  ;;  %v3480_v25 = vld [vmem:[%s6427_s3 + $0x5c0] sm:$0xff] }
 0x4c0   :  { %v3053_v2 = vmul.f32 %v3481_v12, %v2964_v62  ;;  %v6834_v62 = vld [vmem:[#allocation63_spill] sm:$0xff] }
 0x4c1   :  { %v3814_v45 = vpack.c.bf16 %v3097_v23, %v3096_v1  ;;  %v2120_v11 = vpop.permute.xlu1 %2119  ;;  %v6827_v1 = vld [vmem:[#allocation28_spill] sm:$0xff] }
 0x4c2   :  { %v2217_v63 = vmul.f32 %v3415_v0, %v2120_v11  ;;  %v1448_v23 = vmul.f32 %v6827_v1, %v1064_v26 }
 0x4c3   :  { %3815 = vmatpush3.bf16.msra.mxu1 %v3814_v45 }
 0x4c4   :  { %v2281_v34 = vadd.f32 %v2217_v63, %v1447_v49  ;;  %v2282_v0 = vadd.f32 %v2218_v43, %v1448_v23  ;;  %v3401_v63 = vld [vmem:[%s6427_s3 + $0x348] sm:$0xff]  ;;  %v3466_v43 = vld [vmem:[%s6427_s3 + $0x550] sm:$0xff] }
 0x4c5   :  { %v2035_v6 = vpop.permute.xlu1 %2034  ;;  %v1049_v49 = vld [vmem:[%s6427_s3 + $0x148] sm:$0xff] }
 0x4c6   :  { %v3115_v8 = vadd.f32 %v3051_v50, %v2281_v34  ;;  %v2200_v32 = vmul.f32 %v3398_v40, %v2035_v6  ;;  %v3400_v6 = vld [vmem:[%s6427_s3 + $0x340] sm:$0xff]  ;;  %v3465_v34 = vld [vmem:[%s6427_s3 + $0x548] sm:$0xff] }
 0x4c7   :  { %v6830_v50 = vld [vmem:[#allocation38_spill] sm:$0xff] }
 0x4c8   :  { %v2264_v56 = vadd.f32 %v2200_v32, %v1430_v58  ;;  %v1067_v32 = vld [vmem:[%s6427_s3 + $0x1d8] sm:$0xff] }
 0x4c9   :  { %v1451_v58 = vmul.f32 %v6831_v41, %v1067_v32 }
 0x4ca   :  { %v2949_v53 = vpop.permute.xlu1 %2948 }
 0x4cb   :  { %v3050_v54 = vmul.f32 %v3478_v10, %v2949_v53  ;;  %v2203_v10 = vmul.f32 %v3401_v63, %v6828_v19  ;;  %v6829_v53 = vld [vmem:[#allocation35_spill] sm:$0xff] }
 0x4cd   :  { %v3114_v4 = vadd.f32 %v3050_v54, %v2280_v61  ;;  %v1433_v61 = vmul.f32 %v6829_v53, %v1049_v49  ;;  %v1432_v54 = vmul.f32 %v6830_v50, %v1048_v35  ;;  %v6837_v50 = vld [vmem:[#allocation13_spill] sm:$0xff] }
 0x4ce   :  { %v2869_v28 = vpop.permute.xlu1 %2868 }
 0x4cf   :  { %v3816_v18 = vpack.c.bf16 %v3115_v8, %v3114_v4  ;;  %v3034_v52 = vmul.f32 %v3462_v5, %v2869_v28  ;;  %v2267_v8 = vadd.f32 %v2203_v10, %v1433_v61  ;;  %v3421_v10 = vld [vmem:[%s6427_s3 + $0x3e8] sm:$0xff]  ;;  %v1068_v61 = vld [vmem:[%s6427_s3 + $0x1e0] sm:$0xff] }
 0x4d1   :  { %3817 = vmatprep.subr.bf16.mxu1 %v3816_v18  ;;  %v3098_v46 = vadd.f32 %v3034_v52, %v2264_v56  ;;  %v3418_v18 = vld [vmem:[%s6427_s3 + $0x3d0] sm:$0xff]  ;;  %v6832_v52 = vld [vmem:[#allocation61_spill] sm:$0xff]  ;;  %v2974_v56 = vpop.permute.xlu0 %2973 }
 0x4d2   :  { %v2874_v44 = vpop.permute.xlu1 %2873 }
 0x4d3   :  { %v3035_v36 = vmul.f32 %v3463_v29, %v2874_v44  ;;  %v2220_v44 = vmul.f32 %v3418_v18, %v6832_v52  ;;  %v1052_v52 = vld [vmem:[%s6427_s3 + $0x160] sm:$0xff] }
 0x4d5   :  { %v3099_v60 = vadd.f32 %v3035_v36, %v2265_v13  ;;  %v3483_v13 = vld [vmem:[%s6427_s3 + $0x5d8] sm:$0xff]  ;;  %v3482_v36 = vld [vmem:[%s6427_s3 + $0x5d0] sm:$0xff] }
 0x4d6   :  { %v3055_v15 = vmul.f32 %v3483_v13, %v2974_v56  ;;  %v6840_v56 = vld [vmem:[#allocation68_spill] sm:$0xff] }
 0x4d7   :  { %v3818_v21 = vpack.c.bf16 %v3099_v60, %v3098_v46  ;;  %v2130_v9 = vpop.permute.xlu1 %2129  ;;  %v6833_v46 = vld [vmem:[#allocation49_spill] sm:$0xff] }
 0x4d8   :  { %v2219_v33 = vmul.f32 %v3417_v7, %v2130_v9  ;;  %v1450_v60 = vmul.f32 %v6833_v46, %v1066_v31 }
 0x4d9   :  { %3819 = vmatpush3.bf16.msra.mxu1 %v3818_v21 }
 0x4da   :  { %v2283_v45 = vadd.f32 %v2219_v33, %v1449_v38  ;;  %v2284_v7 = vadd.f32 %v2220_v44, %v1450_v60  ;;  %v3403_v33 = vld [vmem:[%s6427_s3 + $0x358] sm:$0xff]  ;;  %v3468_v44 = vld [vmem:[%s6427_s3 + $0x560] sm:$0xff] }
 0x4db   :  { %v2045_v37 = vpop.permute.xlu1 %2044  ;;  %v1051_v38 = vld [vmem:[%s6427_s3 + $0x158] sm:$0xff] }
 0x4dc   :  { %v3117_v59 = vadd.f32 %v3053_v2, %v2283_v45  ;;  %v2202_v24 = vmul.f32 %v3400_v6, %v2045_v37  ;;  %v3402_v37 = vld [vmem:[%s6427_s3 + $0x350] sm:$0xff]  ;;  %v3467_v45 = vld [vmem:[%s6427_s3 + $0x558] sm:$0xff]  ;;  %v6836_v2 = vld [vmem:[#allocation87_spill] sm:$0xff] }
 0x4de   :  { %v2266_v4 = vadd.f32 %v2202_v24, %v1432_v54  ;;  %v1069_v24 = vld [vmem:[%s6427_s3 + $0x1e8] sm:$0xff] }
 0x4df   :  { %v1453_v54 = vmul.f32 %v6837_v50, %v1069_v24 }
 0x4e0   :  { %v2959_v11 = vpop.permute.xlu1 %2958 }
 0x4e1   :  { %v3052_v30 = vmul.f32 %v3480_v25, %v2959_v11  ;;  %v2205_v25 = vmul.f32 %v3403_v33, %v6834_v62  ;;  %v6835_v11 = vld [vmem:[#allocation86_spill] sm:$0xff] }
 0x4e3   :  { %v3116_v39 = vadd.f32 %v3052_v30, %v2282_v0  ;;  %v1435_v0 = vmul.f32 %v6835_v11, %v1051_v38  ;;  %v1434_v30 = vmul.f32 %v6836_v2, %v1050_v3  ;;  %v6843_v2 = vld [vmem:[#allocation17_spill] sm:$0xff] }
 0x4e4   :  { %v2879_v22 = vpop.permute.xlu1 %2878 }
 0x4e5   :  { %v3820_v55 = vpack.c.bf16 %v3117_v59, %v3116_v39  ;;  %v3036_v51 = vmul.f32 %v3464_v20, %v2879_v22  ;;  %v2269_v59 = vadd.f32 %v2205_v25, %v1435_v0  ;;  %v3423_v25 = vld [vmem:[%s6427_s3 + $0x3f8] sm:$0xff]  ;;  %v1070_v0 = vld [vmem:[%s6427_s3 + $0x1f0] sm:$0xff] }
 0x4e7   :  { %3821 = vmatprep.subr.bf16.mxu1 %v3820_v55  ;;  %v3100_v14 = vadd.f32 %v3036_v51, %v2266_v4  ;;  %v3420_v55 = vld [vmem:[%s6427_s3 + $0x3e0] sm:$0xff]  ;;  %v6838_v51 = vld [vmem:[#allocation65_spill] sm:$0xff]  ;;  %v2984_v4 = vpop.permute.xlu0 %2983 }
 0x4e8   :  { %v2884_v40 = vpop.permute.xlu1 %2883 }
 0x4e9   :  { %v3037_v57 = vmul.f32 %v3465_v34, %v2884_v40  ;;  %v2222_v40 = vmul.f32 %v3420_v55, %v6838_v51  ;;  %v1054_v51 = vld [vmem:[%s6427_s3 + $0x170] sm:$0xff] }
 0x4eb   :  { %v3101_v5 = vadd.f32 %v3037_v57, %v2267_v8  ;;  %v3485_v8 = vld [vmem:[%s6427_s3 + $0x5e8] sm:$0xff]  ;;  %v3484_v57 = vld [vmem:[%s6427_s3 + $0x5e0] sm:$0xff] }
 0x4ec   :  { %v3057_v32 = vmul.f32 %v3485_v8, %v2984_v4 }
 0x4ed   :  { %v3822_v28 = vpack.c.bf16 %v3101_v5, %v3100_v14  ;;  %v2140_v17 = vpop.permute.xlu1 %2139  ;;  %v6839_v14 = vld [vmem:[#allocation51_spill] sm:$0xff] }
 0x4ee   :  { %v2221_v29 = vmul.f32 %v3419_v47, %v2140_v17  ;;  %v1452_v5 = vmul.f32 %v6839_v14, %v1068_v61 }
 0x4ef   :  { %3823 = vmatpush3.bf16.msra.mxu1 %v3822_v28 }
 0x4f0   :  { %v2285_v21 = vadd.f32 %v2221_v29, %v1451_v58  ;;  %v2286_v47 = vadd.f32 %v2222_v40, %v1452_v5  ;;  %v3405_v29 = vld [vmem:[%s6427_s3 + $0x368] sm:$0xff]  ;;  %v3470_v40 = vld [vmem:[%s6427_s3 + $0x570] sm:$0xff]  ;;  %v3471_v5 = vld [vmem:[%s6427_s3 + $0x578] sm:$0xff] }
 0x4f1   :  { %v2055_v27 = vpop.permute.xlu1 %2054  ;;  %v1053_v58 = vld [vmem:[%s6427_s3 + $0x168] sm:$0xff] }
 0x4f2   :  { %v3119_v26 = vadd.f32 %v3055_v15, %v2285_v21  ;;  %v2204_v1 = vmul.f32 %v3402_v37, %v2055_v27  ;;  %v3404_v27 = vld [vmem:[%s6427_s3 + $0x360] sm:$0xff]  ;;  %v3469_v21 = vld [vmem:[%s6427_s3 + $0x568] sm:$0xff] }
 0x4f3   :  { %v6842_v15 = vld [vmem:[#allocation91_spill] sm:$0xff] }
 0x4f4   :  { %v2268_v39 = vadd.f32 %v2204_v1, %v1434_v30  ;;  %v1071_v1 = vld [vmem:[%s6427_s3 + $0x1f8] sm:$0xff] }
 0x4f5   :  { %v1455_v30 = vmul.f32 %v6843_v2, %v1071_v1 }
 0x4f6   :  { %v2969_v9 = vpop.permute.xlu1 %2968 }
 0x4f7   :  { %v3054_v48 = vmul.f32 %v3482_v36, %v2969_v9  ;;  %v2207_v36 = vmul.f32 %v3405_v29, %v6840_v56  ;;  %v6841_v9 = vld [vmem:[#allocation88_spill] sm:$0xff] }
 0x4f9   :  { %v3118_v16 = vadd.f32 %v3054_v48, %v2284_v7  ;;  %v1437_v7 = vmul.f32 %v6841_v9, %v1053_v58  ;;  %v1436_v48 = vmul.f32 %v6842_v15, %v1052_v52 }
 0x4fa   :  { %v2889_v12 = vpop.permute.xlu1 %2888 }
 0x4fb   :  { %v3824_v23 = vpack.c.bf16 %v3119_v26, %v3118_v16  ;;  %v3038_v63 = vmul.f32 %v3466_v43, %v2889_v12  ;;  %v2271_v26 = vadd.f32 %v2207_v36, %v1437_v7 }
 0x4fd   :  { %3825 = vmatprep.subr.bf16.mxu1 %v3824_v23  ;;  %v3102_v35 = vadd.f32 %v3038_v63, %v2268_v39  ;;  %v3422_v23 = vld [vmem:[%s6427_s3 + $0x3f0] sm:$0xff]  ;;  %v6844_v63 = vld [vmem:[#allocation105_spill] sm:$0xff]  ;;  %v2994_v39 = vpop.permute.xlu0 %2993 }
 0x4fe   :  { %v2894_v6 = vpop.permute.xlu1 %2893 }
 0x4ff   :  { %v3039_v49 = vmul.f32 %v3467_v45, %v2894_v6  ;;  %v2224_v6 = vmul.f32 %v3422_v23, %v6844_v63 }
 0x501   :  { %v3103_v20 = vadd.f32 %v3039_v49, %v2269_v59  ;;  %v3487_v59 = vld [vmem:[%s6427_s3 + $0x5f8] sm:$0xff]  ;;  %v3486_v49 = vld [vmem:[%s6427_s3 + $0x5f0] sm:$0xff] }
 0x502   :  { %v3059_v24 = vmul.f32 %v3487_v59, %v2994_v39 }
 0x503   :  { %v3826_v22 = vpack.c.bf16 %v3103_v20, %v3102_v35  ;;  %v2150_v19 = vpop.permute.xlu1 %2149  ;;  %v6845_v35 = vld [vmem:[#allocation53_spill] sm:$0xff] }
 0x504   :  { %v2223_v34 = vmul.f32 %v3421_v10, %v2150_v19  ;;  %v1454_v20 = vmul.f32 %v6845_v35, %v1070_v0 }
 0x505   :  { %3827 = vmatpush3.bf16.msra.mxu1 %v3826_v22 }
 0x506   :  { %v2287_v28 = vadd.f32 %v2223_v34, %v1453_v54  ;;  %v2288_v10 = vadd.f32 %v2224_v6, %v1454_v20  ;;  %v3407_v34 = vld [vmem:[%s6427_s3 + $0x378] sm:$0xff] }
 0x507   :  { %v2065_v53 = vpop.permute.xlu1 %2064  ;;  %v1055_v54 = vld [vmem:[%s6427_s3 + $0x178] sm:$0xff]  ;;  %v2209_v4 = vmul.f32 %v3407_v34, %v5699_v42  ;;  %v3126_v42 = vld [vmem:[%s6428_s4 + $0x10] sm:$0xff] }
 0x508   :  { %v3121_v31 = vadd.f32 %v3057_v32, %v2287_v28  ;;  %v2206_v46 = vmul.f32 %v3404_v27, %v2065_v53  ;;  %v3406_v53 = vld [vmem:[%s6427_s3 + $0x370] sm:$0xff]  ;;  %v6846_v28 = vld [vmem:[#allocation89_spill] sm:$0xff] }
 0x50a   :  { %v2270_v16 = vadd.f32 %v2206_v46, %v1436_v48  ;;  %v3488_v46 = vld [vmem:[%s6429_s5] ss:$0 sm:$0xff] }
 0x50c   :  { %v2979_v17 = vpop.permute.xlu1 %2978 }
 0x50d   :  { %v3056_v18 = vmul.f32 %v3484_v57, %v2979_v17  ;;  %v1439_v17 = vmul.f32 %v6846_v28, %v1055_v54 }
 0x50f   :  { %v3120_v41 = vadd.f32 %v3056_v18, %v2286_v47  ;;  %v6847_v47 = vld [vmem:[#allocation96_spill] sm:$0xff]  ;;  %v2273_v27 = vadd.f32 %v2209_v4, %v1439_v17 }
 0x510   :  { %v2899_v13 = vpop.permute.xlu1 %2898  ;;  %v1438_v32 = vmul.f32 %v6847_v47, %v1054_v51 }
 0x511   :  { %v3828_v60 = vpack.c.bf16 %v3121_v31, %v3120_v41  ;;  %v3040_v33 = vmul.f32 %v3468_v44, %v2899_v13 }
 0x513   :  { %3829 = vmatprep.subr.bf16.mxu1 %v3828_v60  ;;  %v3104_v3 = vadd.f32 %v3040_v33, %v2270_v16 }
 0x514   :  { %v2904_v37 = vpop.permute.xlu1 %2903 }
 0x515   :  { %v3041_v38 = vmul.f32 %v3469_v21, %v2904_v37 }
 0x517   :  { %v3105_v43 = vadd.f32 %v3041_v38, %v2271_v26 }
 0x519   :  { %v3830_v12 = vpack.c.bf16 %v3105_v43, %v3104_v3  ;;  %v2160_v62 = vpop.permute.xlu1 %2159 }
 0x51a   :  { %v2225_v45 = vmul.f32 %v3423_v25, %v2160_v62 }
 0x51b   :  { %3831 = vmatpush3.bf16.msra.mxu1 %v3830_v12 }
 0x51c   :  { %v2289_v22 = vadd.f32 %v2225_v45, %v1455_v30 }
 0x51d   :  { %v2075_v11 = vpop.permute.xlu1 %2074 }
 0x51e   :  { %v3123_v61 = vadd.f32 %v3059_v24, %v2289_v22  ;;  %v2208_v57 = vmul.f32 %v3406_v53, %v2075_v11 }
 0x520   :  { %v2272_v31 = vadd.f32 %v2208_v57, %v1438_v32 }
 0x522   :  { %v2989_v19 = vpop.permute.xlu1 %2988 }
 0x523   :  { %v3058_v55 = vmul.f32 %v3486_v49, %v2989_v19 }
 0x525   :  { %v3122_v50 = vadd.f32 %v3058_v55, %v2288_v10 }
 0x526   :  { %v2909_v8 = vpop.permute.xlu1 %2908 }
 0x527   :  { %v3832_v14 = vpack.c.bf16 %v3123_v61, %v3122_v50  ;;  %v3042_v18 = vmul.f32 %v3470_v40, %v2909_v8 }
 0x529   :  { %3833 = vmatprep.subr.bf16.mxu1 %v3832_v14  ;;  %v3106_v58 = vadd.f32 %v3042_v18, %v2272_v31 }
 0x52a   :  { %v2914_v29 = vpop.permute.xlu1 %2913 }
 0x52b   :  { %v3043_v41 = vmul.f32 %v3471_v5, %v2914_v29 }
 0x52d   :  { %v3107_v52 = vadd.f32 %v3043_v41, %v2273_v27 }
 0x52f   :  { %v3834_v44 = vpack.c.bf16 %v3107_v52, %v3106_v58 }
 0x531   :  { %3835 = vmatpush3.bf16.msra.mxu1 %v3834_v44 }
 0x534   :  { %3270 = vmatmul.mubr.f32.vlgmr.msra.gmra.mrb[24].mxu1 %v3126_v42 }
 0x557   :  { %v3596_v13 = vpop.f32.mrb[22].mxu1 }
 0x558   :  { %v3597_v56 = vpop.f32.mrb[23].mxu1 }
 0x559   :  { %v3598_v36 = vadd.f32 %v3597_v56, %v3596_v13 }
 0x55b   :  { %v3202_v9 = vadd.f32 %v3598_v36, %v3488_v46 }
 0x607   :  { %v3631_v60 = vpop.f32.mrb[24].mxu1 }
 0x608   :  { %v3632_v21 = vpop.f32.mrb[25].mxu1 }
 0x609   :  { %v3633_v7 = vadd.f32 %v3632_v21, %v3631_v60 }
 0x60b   :  { %v3272_v15 = vadd.f32 %v3633_v7, %v3202_v9 }
 0x60d   :  { %v3276_v48 = vsel %vm3275_vm5, %v3272_v15, -inf }
 0x60e   :  { %3277 = vmax.xlane.f32.xlu0 %v3276_v48 }
 0x69b   :  { %v3278_v33 = vpop.xlane.xlu0 %3277 }
 0x69c   :  { %v3279_v37 = vsub.f32 %v3272_v15, %v3278_v33 }
 0x69e   :  { %v3280_v26 = vmul.f32 1.442695, %v3279_v37 }
 0x6a0   :  { %3893 = vpow2.f32 %v3280_v26 }
 0x6aa   :  { %v3894_v16 = vpop.eup %3893 }
 0x6ab   :  { %v3282_v38 = vsel %vm3275_vm5, %v3894_v16, 0.0 }
 0x6ac   :  { %3283 = vadd.xlane.f32.xlu1 %v3282_v38 }
 0x739   :  { %v3284_v3 = vpop.xlane.xlu1 %3283 }
 0x73a   :  { %3895 = vlog2.f32 %v3284_v3 }
 0x744   :  { %v3896_v43 = vpop.eup %3895 }
 0x745   :  { %v3286_v12 = vmul.f32 0.6931472, %v3896_v43 }
 0x747   :  { %v3287_v62 = vadd.f32 %v3286_v12, %v3278_v33 }
 0x749   :  { %v3288_v25 = vsub.f32 %v3272_v15, %v3287_v62 }
 0x74b   :  { %3289 = vst.msk [vmem:[%s6430_s6] sm:$0xff] %vm3275_vm5, %v3288_v25 }

</bundles_post_ra>
